<compile_context>
chip_gen: v5e
topology: v5e:2x2
jax: 0.10.0
libtpu: 0.0.40
codegen_flags: <defaults>
</compile_context>

<pallas_src>
import functools

import jax
import jax.numpy as jnp
from jax.experimental import pallas as pl
from jax.experimental.pallas import tpu as pltpu


def _round_up(x, m):
    return (x + m - 1) // m * m


# ----------------------------- Pallas kernel -------------------------------- #
def _moe_kernel(x_ref, gw_ref, wg_ref, wu_ref, dstk_ref, wsg_ref, wsu_ref, sd_ref,
                sgw_ref, expand_ref, out_ref, logits_ref, acc_ref, wmat_ref,
                *, num_experts, experts_per_chunk, num_chunks, top_k):
    k = pl.program_id(1)          # expert-chunk index (innermost, "arbitrary")

    # ---- chunk 0: router + top-k routing weights + shared expert (seeds the accumulator) --
    @pl.when(k == 0)
    def _():
        x = x_ref[...]                                                       # (TM, H) f32
        # Router logits; gw is lane-padded to >=128 zero columns -> lane-dense store.
        # (Default matmul precision; reference uses HIGHEST. Near-tie expert selection could
        #  in principle differ, but stays well inside the 2e-2 tolerance.)
        logits_full = jnp.dot(x, gw_ref[...], preferred_element_type=jnp.float32)
        logits_ref[...] = logits_full                                        # (TM, E_pad)
        logits = logits_full[:, :num_experts]

        mx = jnp.max(logits, axis=-1, keepdims=True)
        ex = jnp.exp(logits - mx)
        probs = ex / jnp.sum(ex, axis=-1, keepdims=True)                     # (TM, E)

        tm = probs.shape[0]
        ids = jax.lax.broadcasted_iota(jnp.int32, (tm, num_experts), 1)
        weight_mat = jnp.zeros_like(probs)
        remaining = probs
        for _ in range(top_k):                                               # norm_topk_prob=False
            cur_max = jnp.max(remaining, axis=-1, keepdims=True)
            is_max = remaining >= cur_max
            sel = jnp.min(jnp.where(is_max, ids, num_experts), axis=-1, keepdims=True)
            onehot = ids == sel
            weight_mat = weight_mat + jnp.where(onehot, probs, 0.0)
            remaining = jnp.where(onehot, -jnp.inf, remaining)

        # Stash per-chunk routing-weight slices (static unroll; num_chunks is static).
        for c in range(num_chunks):
            wmat_ref[c, :, :] = weight_mat[:, c * experts_per_chunk:(c + 1) * experts_per_chunk]

        # Shared expert SwiGLU + sigmoid shared-expert gate -> initialize accumulator.
        xb0 = x.astype(jnp.bfloat16)
        gs = jnp.dot(xb0, wsg_ref[...], preferred_element_type=jnp.float32)  # (TM, I)
        us = jnp.dot(xb0, wsu_ref[...], preferred_element_type=jnp.float32)
        hs = ((gs * jax.nn.sigmoid(gs)) * us).astype(jnp.bfloat16)
        so = jnp.dot(hs, sd_ref[...], preferred_element_type=jnp.float32)    # (TM, H)
        # N=1 gate matmul replaced by a VPU/XLU lane reduction.
        sgate = jax.nn.sigmoid(jnp.sum(x * sgw_ref[...], axis=-1, keepdims=True))
        acc_ref[...] = sgate * so

    # ---- every chunk: routed experts for this chunk of experts ----
    xb = x_ref[...].astype(jnp.bfloat16)
    g = jnp.dot(xb, wg_ref[...], preferred_element_type=jnp.float32)         # (TM, Ec*Im)
    u = jnp.dot(xb, wu_ref[...], preferred_element_type=jnp.float32)
    # Expand chunk routing weights (TM, Ec) -> (TM, Ec*Im) with a tiny one-hot matmul, fold
    # them into h and cast to bf16 in one step (single live f32 intermediate).
    w_exp = jnp.dot(wmat_ref[k], expand_ref[...], preferred_element_type=jnp.float32)
    h = ((g * jax.nn.sigmoid(g)) * u * w_exp).astype(jnp.bfloat16)
    acc_ref[...] += jnp.dot(h, dstk_ref[...], preferred_element_type=jnp.float32)

    @pl.when(k == num_chunks - 1)
    def _():
        out_ref[...] = acc_ref[...].astype(out_ref.dtype)


# ----------------------- one-time weight preparation ------------------------- #
def prepare_moe_weights(params):
    """One-time layout/dtype prep (done once, outside the per-call hot path)."""
    gate_w = params["gate_w"]                     # (E, H)
    eg_w = params["expert_gate_w"]                # (E, Im, H)
    eu_w = params["expert_up_w"]                  # (E, Im, H)
    ed_w = params["expert_down_w"]                # (E, H, Im)
    sg_w = params["shared_gate_w"]                # (I, H)
    su_w = params["shared_up_w"]                  # (I, H)
    sd_w = params["shared_down_w"]                # (H, I)
    sgate_w = params["shared_expert_gate_w"]      # (1, H)

    E, Im, H = eg_w.shape
    I = sg_w.shape[0]
    E_pad = _round_up(E, 128)                     # lane-dense router output width

    # Stacked expert weights, expert-major along the stacked axis (bf16 MXU operands).
    wg = jnp.transpose(eg_w, (2, 0, 1)).reshape(H, E * Im).astype(jnp.bfloat16)
    wu = jnp.transpose(eu_w, (2, 0, 1)).reshape(H, E * Im).astype(jnp.bfloat16)
    dstk = jnp.transpose(ed_w, (0, 2, 1)).reshape(E * Im, H).astype(jnp.bfloat16)
    # Router stays f32 (selection fidelity); pad columns to a lane-dense width with zeros.
    gw = jnp.pad(gate_w.T.astype(jnp.float32), ((0, 0), (0, E_pad - E)))     # (H, E_pad)

    # TODO(synk): on v7x, optionally quantize wg/wu/dstk to fp8 with per-channel scales
    # applied after f32 accumulation to halve streamed-weight bytes again.
    return {
        "gw": gw,
        "wg": wg,
        "wu": wu,
        "dstk": dstk,
        "wsg": sg_w.T.astype(jnp.bfloat16),       # (H, I)
        "wsu": su_w.T.astype(jnp.bfloat16),       # (H, I)
        "sd": sd_w.T.astype(jnp.bfloat16),        # (I, H)
        "sgw": sgate_w.astype(jnp.float32),       # (1, H)
        "dims": (E, Im, I, H, E_pad),
    }


# ------------------------------- wrapper ------------------------------------ #
def time_moe_sparse_experts(hidden_states, kernel_weights, *, top_k, token_tile=512,
                            expert_chunk=None):
    """hidden_states: (B, S, H). Returns (out (B,S,H), router_logits (B*S, E))."""
    B, S, H = hidden_states.shape
    E, Im, I, Hw, E_pad = kernel_weights["dims"]
    assert H == Hw
    T = B * S
    # TODO(synk): pass activations/output in bf16 when the surrounding model runs in bf16;
    # halves per-tile HBM traffic once weights are resident/streamed.
    x = hidden_states.reshape(T, H).astype(jnp.float32)

    # Token tile: large for MXU M-width; shrink for short inputs so the "parallel" axis has
    # at least 2 tiles (keeps both v7x TensorCores busy); pad T up to a tile multiple.
    TM = min(token_tile, _round_up(T, 8))
    if _round_up(T, TM) // TM < 2 and TM > 8:
        TM = _round_up(max(8, _round_up(T, 8) // 2), 8)
    T_pad = _round_up(T, TM)
    if T_pad != T:
        x = jnp.pad(x, ((0, T_pad - T), (0, 0)))

    # Expert chunking: stream chunks of experts through VMEM (bounds residency on v7x).
    # Chunk width must divide E and keep the streamed lane width a multiple of 128.
    if expert_chunk is None:
        valid = [d for d in range(1, E + 1)
                 if E % d == 0 and (d == E or (d * Im) % 128 == 0)]
        budget = 12 << 20                                   # bf16 bytes per streamed chunk
        fitting = [d for d in valid if 3 * H * d * Im * 2 <= budget]
        Ec = max(fitting) if fitting else min(valid)
    else:
        Ec = int(expert_chunk)
        assert E % Ec == 0 and (Ec == E or (Ec * Im) % 128 == 0), "bad expert_chunk"
    n_chunks = E // Ec
    # One-hot expansion (Ec, Ec*Im): maps chunk routing weights onto the chunk's Im lanes.
    expand = jnp.repeat(jnp.eye(Ec, dtype=jnp.float32), Im, axis=1)

    grid = (T_pad // TM, n_chunks)

    # Generation-aware VMEM budget (v5e/v6e 128 MiB, v7x 64 MiB), with headroom.
    try:
        vmem_cap = int(getattr(pltpu.get_tpu_info(), "vmem_capacity_bytes", 64 << 20))
    except Exception:
        vmem_cap = 64 << 20
    f4, b2 = 4, 2
    resident_bytes = (H * E_pad * f4 + 2 * H * I * b2 + I * H * b2 + H * f4
                      + Ec * (Ec * Im) * f4)                       # single-buffered weights
    streamed_bytes = 2 * 3 * H * Ec * Im * b2                      # chunk weights, 2 buffers
    io_bytes = 2 * (2 * TM * H * f4 + TM * E_pad * f4)             # x + out + logits tiles
    scratch_bytes = TM * H * f4 + n_chunks * TM * max(Ec, 128) * f4
    inter_bytes = TM * (3 * Ec * Im + 3 * I + 2 * E_pad) * f4
    est = resident_bytes + streamed_bytes + io_bytes + scratch_bytes + inter_bytes + (16 << 20)
    vmem_limit = int(max(32 << 20, min(est, vmem_cap - (8 << 20))))

    kernel = functools.partial(_moe_kernel, num_experts=E, experts_per_chunk=Ec,
                               num_chunks=n_chunks, top_k=top_k)

    def build(single_buffer_weights):
        def resident(*shape):
            idx = (lambda i, k, n=len(shape): (0,) * n)
            if single_buffer_weights:
                # Grid-invariant weights: single buffer (no re-DMA, halves residency).
                return pl.BlockSpec(shape, idx, pipeline_mode=pl.Buffered(1))
            return pl.BlockSpec(shape, idx)

        in_specs = [
            pl.BlockSpec((TM, H), lambda i, k: (i, 0)),            # x token tile (const in k)
            resident(H, E_pad),                                    # router weight (f32, padded)
            pl.BlockSpec((H, Ec * Im), lambda i, k: (0, k)),       # streamed expert gate chunk
            pl.BlockSpec((H, Ec * Im), lambda i, k: (0, k)),       # streamed expert up chunk
            pl.BlockSpec((Ec * Im, H), lambda i, k: (k, 0)),       # streamed expert down chunk
            resident(H, I),                                        # shared gate
            resident(H, I),                                        # shared up
            resident(I, H),                                        # shared down
            resident(1, H),                                        # shared-expert gate row
            resident(Ec, Ec * Im),                                 # one-hot expansion
        ]
        out_specs = (pl.BlockSpec((TM, H), lambda i, k: (i, 0)),
                     pl.BlockSpec((TM, E_pad), lambda i, k: (i, 0)))
        return pl.pallas_call(
            kernel,
            out_shape=(jax.ShapeDtypeStruct((T_pad, H), jnp.float32),
                       jax.ShapeDtypeStruct((T_pad, E_pad), jnp.float32)),
            grid=grid,
            in_specs=in_specs,
            out_specs=out_specs,
            scratch_shapes=[pltpu.VMEM((TM, H), jnp.float32),          # routed+shared accum
                            pltpu.VMEM((n_chunks, TM, Ec), jnp.float32)],  # routing weights
            compiler_params=pltpu.CompilerParams(
                dimension_semantics=("parallel", "arbitrary"),
                vmem_limit_bytes=vmem_limit),
        )

    args = (x, kernel_weights["gw"], kernel_weights["wg"], kernel_weights["wu"],
            kernel_weights["dstk"], kernel_weights["wsg"], kernel_weights["wsu"],
            kernel_weights["sd"], kernel_weights["sgw"], expand)
    try:
        out, logits = build(True)(*args)
    except Exception:
        # Fallback only covers installs where BlockSpec pipeline_mode / Buffered(1)
        # single-buffering is unavailable; weights then keep the default double buffer.
        out, logits = build(False)(*args)

    # TODO(synk): for v5e (MXU-bound), add a sorted-by-expert grouped-matmul variant via
    # PrefetchScalarGridSpec group offsets to avoid the dense E/top_k FLOP blowup.
    return out[:T].reshape(B, S, H), logits[:T, :E]


# -------------------------- pure-JAX reference ------------------------------ #
def reference_forward(hidden_states, params, *, top_k):
    B, S, H = hidden_states.shape
    x = hidden_states.reshape(-1, H).astype(jnp.float32)
    T = x.shape[0]
    hp = jax.lax.Precision.HIGHEST

    logits = jnp.dot(x, params["gate_w"].T, precision=hp)
    probs = jax.nn.softmax(logits, axis=-1)
    vals, idx = jax.lax.top_k(probs, top_k)                       # (T, k)
    E = params["gate_w"].shape[0]
    w = jnp.zeros((T, E), jnp.float32).at[jnp.arange(T)[:, None], idx].add(vals)

    def swiglu(h, gw, uw, dw):
        g = jnp.dot(h, gw.T, precision=hp)
        u = jnp.dot(h, uw.T, precision=hp)
        return jnp.dot(jax.nn.silu(g) * u, dw.T, precision=hp)

    out = jnp.zeros_like(x)
    for e in range(E):
        oe = swiglu(x, params["expert_gate_w"][e], params["expert_up_w"][e],
                    params["expert_down_w"][e])
        out = out + oe * w[:, e:e + 1]

    shared = swiglu(x, params["shared_gate_w"], params["shared_up_w"],
                    params["shared_down_w"])
    sgate = jax.nn.sigmoid(jnp.dot(x, params["shared_expert_gate_w"].T, precision=hp))
    out = out + sgate * shared
    return out.reshape(B, S, H), logits


# --------------------------------- main -------------------------------------- #
if __name__ == "__main__":
    # Small config consistent with TimeMoeConfig semantics.
    B, S = 2, 16
    hidden_size = 32
    intermediate_size = 128
    num_experts = 8
    top_k = 4
    moe_intermediate_size = intermediate_size // top_k  # 32

    key = jax.random.PRNGKey(0)
    ks = jax.random.split(key, 10)
    init = 0.05

    params = {
        "gate_w": init * jax.random.normal(ks[0], (num_experts, hidden_size), jnp.float32),
        "expert_gate_w": init * jax.random.normal(
            ks[1], (num_experts, moe_intermediate_size, hidden_size), jnp.float32),
        "expert_up_w": init * jax.random.normal(
            ks[2], (num_experts, moe_intermediate_size, hidden_size), jnp.float32),
        "expert_down_w": init * jax.random.normal(
            ks[3], (num_experts, hidden_size, moe_intermediate_size), jnp.float32),
        "shared_gate_w": init * jax.random.normal(
            ks[4], (intermediate_size, hidden_size), jnp.float32),
        "shared_up_w": init * jax.random.normal(
            ks[5], (intermediate_size, hidden_size), jnp.float32),
        "shared_down_w": init * jax.random.normal(
            ks[6], (hidden_size, intermediate_size), jnp.float32),
        "shared_expert_gate_w": init * jax.random.normal(
            ks[7], (1, hidden_size), jnp.float32),
    }

    hidden_states = jax.random.normal(ks[8], (B, S, hidden_size), jnp.float32)

    kernel_weights = prepare_moe_weights(params)   # one-time layout/dtype prep
    # expert_chunk=4 -> 2 expert chunks: exercises the streamed-weight "arbitrary" axis and
    # the VMEM accumulator init/writeback path (the path used at production sizes on v7x).
    out, router_logits = time_moe_sparse_experts(hidden_states, kernel_weights,
                                                 top_k=top_k, expert_chunk=4)
    out = jax.block_until_ready(out)
    router_logits = jax.block_until_ready(router_logits)

    ref_out, ref_logits = reference_forward(hidden_states, params, top_k=top_k)

    def rel_err(a, b):
        return float(jnp.max(jnp.abs(a - b))) / (float(jnp.max(jnp.abs(b))) + 1e-12)

    assert out.shape == (B, S, hidden_size)
    assert router_logits.shape == (B * S, num_experts)
    # Router path is f32 in-kernel; expert/shared matmuls use bf16 operands + f32 accumulate.
    assert rel_err(router_logits, ref_logits) < 2e-2, "router logits mismatch"
    assert rel_err(out, ref_out) < 2e-2, "MoE output mismatch"

    print("KERNEL_OK")
</pallas_src>

<mosaic_0001>
module attributes {stable_mosaic.version = 11 : i64} {
  func.func @_moe_kernel(%arg0: i32, %arg1: i32, %arg2: memref<16x32xf32, #tpu.memory_space<vmem>>, %arg3: memref<32x128xf32, #tpu.memory_space<vmem>>, %arg4: memref<32x128xbf16, #tpu.memory_space<vmem>>, %arg5: memref<32x128xbf16, #tpu.memory_space<vmem>>, %arg6: memref<128x32xbf16, #tpu.memory_space<vmem>>, %arg7: memref<32x128xbf16, #tpu.memory_space<vmem>>, %arg8: memref<32x128xbf16, #tpu.memory_space<vmem>>, %arg9: memref<128x32xbf16, #tpu.memory_space<vmem>>, %arg10: memref<1x32xf32, #tpu.memory_space<vmem>>, %arg11: memref<4x128xf32, #tpu.memory_space<vmem>>, %arg12: memref<16x32xf32, #tpu.memory_space<vmem>>, %arg13: memref<16x128xf32, #tpu.memory_space<vmem>>, %arg14: memref<16x32xf32, #tpu.memory_space<vmem>>, %arg15: memref<2x16x4xf32, #tpu.memory_space<vmem>>) attributes {dimension_semantics = [#tpu.dimension_semantics<parallel>, #tpu.dimension_semantics<arbitrary>], iteration_bounds = array<i64: 2, 2>, scalar_prefetch = 0 : i64, scratch_operands = 2 : i64, tpu.core_type = #tpu.core_type<tc>, window_params = [{transform_indices = @transform_0, window_bounds = array<i64: 16, 32>}, {pipeline_mode = #tpu.pipeline_mode<synchronous>, transform_indices = @transform_1, window_bounds = array<i64: 32, 128>}, {transform_indices = @transform_2, window_bounds = array<i64: 32, 128>}, {transform_indices = @transform_3, window_bounds = array<i64: 32, 128>}, {transform_indices = @transform_4, window_bounds = array<i64: 128, 32>}, {pipeline_mode = #tpu.pipeline_mode<synchronous>, transform_indices = @transform_5, window_bounds = array<i64: 32, 128>}, {pipeline_mode = #tpu.pipeline_mode<synchronous>, transform_indices = @transform_6, window_bounds = array<i64: 32, 128>}, {pipeline_mode = #tpu.pipeline_mode<synchronous>, transform_indices = @transform_7, window_bounds = array<i64: 128, 32>}, {pipeline_mode = #tpu.pipeline_mode<synchronous>, transform_indices = @transform_8, window_bounds = array<i64: 1, 32>}, {pipeline_mode = #tpu.pipeline_mode<synchronous>, transform_indices = @transform_9, window_bounds = array<i64: 4, 128>}, {transform_indices = @transform_10, window_bounds = array<i64: 16, 32>}, {transform_indices = @transform_11, window_bounds = array<i64: 16, 128>}]} {
    %c0_i32 = arith.constant 0 : i32
    %0 = arith.cmpi eq, %arg1, %c0_i32 : i32
    %1 = arith.extui %0 : i1 to i32
    %c0_i32_0 = arith.constant 0 : i32
    %2 = arith.cmpi ne, %1, %c0_i32_0 : i32
    scf.if %2 {
      %c0_21 = arith.constant 0 : index
      %c0_22 = arith.constant 0 : index
      %31 = vector.load %arg2[%c0_21, %c0_22] : memref<16x32xf32, #tpu.memory_space<vmem>>, vector<16x32xf32>
      %c0_23 = arith.constant 0 : index
      %c0_24 = arith.constant 0 : index
      %32 = vector.load %arg3[%c0_23, %c0_24] : memref<32x128xf32, #tpu.memory_space<vmem>>, vector<32x128xf32>
      %cst_25 = arith.constant dense<0.000000e+00> : vector<16x128xf32>
      %33 = tpu.matmul %31, %32, %cst_25 {dimension_numbers = #tpu.dot_dimension_numbers<[1], [0], [0], [1], [0, 0, 1, 1], [], []>} : vector<16x32xf32>, vector<32x128xf32>, vector<16x128xf32> -> vector<16x128xf32>
      %c0_26 = arith.constant 0 : index
      %c0_27 = arith.constant 0 : index
      %34 = vector.load %arg13[%c0_26, %c0_27] : memref<16x128xf32, #tpu.memory_space<vmem>>, vector<16x128xf32>
      tpu.vector_store %arg13[%c0_26, %c0_27], %33 {strides = array<i32>} : memref<16x128xf32, #tpu.memory_space<vmem>>, vector<16x128xf32>,
      %35 = vector.extract_strided_slice %33 {offsets = [0, 0], sizes = [16, 8], strides = [1, 1]} : vector<16x128xf32> to vector<16x8xf32>
      %cst_28 = arith.constant dense<0xFF800000> : vector<16xf32>
      %36 = vector.multi_reduction <maximumf>, %35, %cst_28 [1] : vector<16x8xf32> to vector<16xf32>
      %37 = vector.shape_cast %36 : vector<16xf32> to vector<16x1xf32>
      %38 = vector.broadcast %37 : vector<16x1xf32> to vector<16x8xf32>
      %39 = arith.subf %35, %38 : vector<16x8xf32>
      %40 = math.exp %39 : vector<16x8xf32>
      %cst_29 = arith.constant dense<0.000000e+00> : vector<16xf32>
      %41 = vector.multi_reduction <add>, %40, %cst_29 [1] : vector<16x8xf32> to vector<16xf32>
      %42 = vector.shape_cast %41 : vector<16xf32> to vector<16x1xf32>
      %43 = vector.broadcast %42 : vector<16x1xf32> to vector<16x8xf32>
      %44 = arith.divf %40, %43 : vector<16x8xf32>
      %45 = tpu.iota {dimensions = array<i32: 1>} : vector<16x8xi32>
      %cst_30 = arith.constant 0.000000e+00 : f32
      %46 = vector.broadcast %cst_30 : f32 to vector<16x8xf32>
      %cst_31 = arith.constant dense<0xFF800000> : vector<16xf32>
      %47 = vector.multi_reduction <maximumf>, %44, %cst_31 [1] : vector<16x8xf32> to vector<16xf32>
      %48 = vector.shape_cast %47 : vector<16xf32> to vector<16x1xf32>
      %49 = vector.broadcast %48 : vector<16x1xf32> to vector<16x8xf32>
      %50 = arith.cmpf oge, %44, %49 : vector<16x8xf32>
      %c8_i32 = arith.constant 8 : i32
      %51 = vector.broadcast %c8_i32 : i32 to vector<16x8xi32>
      %52 = arith.select %50, %45, %51 : vector<16x8xi1>, vector<16x8xi32>
      %cst_32 = arith.constant dense<2147483647> : vector<16xi32>
      %53 = vector.multi_reduction <minsi>, %52, %cst_32 [1] : vector<16x8xi32> to vector<16xi32>
      %54 = vector.shape_cast %53 : vector<16xi32> to vector<16x1xi32>
      %55 = vector.broadcast %54 : vector<16x1xi32> to vector<16x8xi32>
      %56 = arith.cmpi eq, %45, %55 : vector<16x8xi32>
      %cst_33 = arith.constant 0.000000e+00 : f32
      %57 = vector.broadcast %cst_33 : f32 to vector<16x8xf32>
      %58 = arith.select %56, %44, %57 : vector<16x8xi1>, vector<16x8xf32>
      %59 = arith.addf %46, %58 : vector<16x8xf32>
      %cst_34 = arith.constant 0xFF800000 : f32
      %60 = vector.broadcast %cst_34 : f32 to vector<16x8xf32>
      %61 = arith.select %56, %60, %44 : vector<16x8xi1>, vector<16x8xf32>
      %cst_35 = arith.constant dense<0xFF800000> : vector<16xf32>
      %62 = vector.multi_reduction <maximumf>, %61, %cst_35 [1] : vector<16x8xf32> to vector<16xf32>
      %63 = vector.shape_cast %62 : vector<16xf32> to vector<16x1xf32>
      %64 = vector.broadcast %63 : vector<16x1xf32> to vector<16x8xf32>
      %65 = arith.cmpf oge, %61, %64 : vector<16x8xf32>
      %c8_i32_36 = arith.constant 8 : i32
      %66 = vector.broadcast %c8_i32_36 : i32 to vector<16x8xi32>
      %67 = arith.select %65, %45, %66 : vector<16x8xi1>, vector<16x8xi32>
      %cst_37 = arith.constant dense<2147483647> : vector<16xi32>
      %68 = vector.multi_reduction <minsi>, %67, %cst_37 [1] : vector<16x8xi32> to vector<16xi32>
      %69 = vector.shape_cast %68 : vector<16xi32> to vector<16x1xi32>
      %70 = vector.broadcast %69 : vector<16x1xi32> to vector<16x8xi32>
      %71 = arith.cmpi eq, %45, %70 : vector<16x8xi32>
      %cst_38 = arith.constant 0.000000e+00 : f32
      %72 = vector.broadcast %cst_38 : f32 to vector<16x8xf32>
      %73 = arith.select %71, %44, %72 : vector<16x8xi1>, vector<16x8xf32>
      %74 = arith.addf %59, %73 : vector<16x8xf32>
      %cst_39 = arith.constant 0xFF800000 : f32
      %75 = vector.broadcast %cst_39 : f32 to vector<16x8xf32>
      %76 = arith.select %71, %75, %61 : vector<16x8xi1>, vector<16x8xf32>
      %cst_40 = arith.constant dense<0xFF800000> : vector<16xf32>
      %77 = vector.multi_reduction <maximumf>, %76, %cst_40 [1] : vector<16x8xf32> to vector<16xf32>
      %78 = vector.shape_cast %77 : vector<16xf32> to vector<16x1xf32>
      %79 = vector.broadcast %78 : vector<16x1xf32> to vector<16x8xf32>
      %80 = arith.cmpf oge, %76, %79 : vector<16x8xf32>
      %c8_i32_41 = arith.constant 8 : i32
      %81 = vector.broadcast %c8_i32_41 : i32 to vector<16x8xi32>
      %82 = arith.select %80, %45, %81 : vector<16x8xi1>, vector<16x8xi32>
      %cst_42 = arith.constant dense<2147483647> : vector<16xi32>
      %83 = vector.multi_reduction <minsi>, %82, %cst_42 [1] : vector<16x8xi32> to vector<16xi32>
      %84 = vector.shape_cast %83 : vector<16xi32> to vector<16x1xi32>
      %85 = vector.broadcast %84 : vector<16x1xi32> to vector<16x8xi32>
      %86 = arith.cmpi eq, %45, %85 : vector<16x8xi32>
      %cst_43 = arith.constant 0.000000e+00 : f32
      %87 = vector.broadcast %cst_43 : f32 to vector<16x8xf32>
      %88 = arith.select %86, %44, %87 : vector<16x8xi1>, vector<16x8xf32>
      %89 = arith.addf %74, %88 : vector<16x8xf32>
      %cst_44 = arith.constant 0xFF800000 : f32
      %90 = vector.broadcast %cst_44 : f32 to vector<16x8xf32>
      %91 = arith.select %86, %90, %76 : vector<16x8xi1>, vector<16x8xf32>
      %cst_45 = arith.constant dense<0xFF800000> : vector<16xf32>
      %92 = vector.multi_reduction <maximumf>, %91, %cst_45 [1] : vector<16x8xf32> to vector<16xf32>
      %93 = vector.shape_cast %92 : vector<16xf32> to vector<16x1xf32>
      %94 = vector.broadcast %93 : vector<16x1xf32> to vector<16x8xf32>
      %95 = arith.cmpf oge, %91, %94 : vector<16x8xf32>
      %c8_i32_46 = arith.constant 8 : i32
      %96 = vector.broadcast %c8_i32_46 : i32 to vector<16x8xi32>
      %97 = arith.select %95, %45, %96 : vector<16x8xi1>, vector<16x8xi32>
      %cst_47 = arith.constant dense<2147483647> : vector<16xi32>
      %98 = vector.multi_reduction <minsi>, %97, %cst_47 [1] : vector<16x8xi32> to vector<16xi32>
      %99 = vector.shape_cast %98 : vector<16xi32> to vector<16x1xi32>
      %100 = vector.broadcast %99 : vector<16x1xi32> to vector<16x8xi32>
      %101 = arith.cmpi eq, %45, %100 : vector<16x8xi32>
      %cst_48 = arith.constant 0.000000e+00 : f32
      %102 = vector.broadcast %cst_48 : f32 to vector<16x8xf32>
      %103 = arith.select %101, %44, %102 : vector<16x8xi1>, vector<16x8xf32>
      %104 = arith.addf %89, %103 : vector<16x8xf32>
      %105 = vector.extract_strided_slice %104 {offsets = [0, 0], sizes = [16, 4], strides = [1, 1]} : vector<16x8xf32> to vector<16x4xf32>
      %c0_49 = arith.constant 0 : index
      %c0_50 = arith.constant 0 : index
      %c0_51 = arith.constant 0 : index
      %106 = vector.load %arg15[%c0_49, %c0_50, %c0_51] : memref<2x16x4xf32, #tpu.memory_space<vmem>>, vector<1x16x4xf32>
      %107 = vector.shape_cast %106 : vector<1x16x4xf32> to vector<16x4xf32>
      %108 = vector.shape_cast %105 : vector<16x4xf32> to vector<1x16x4xf32>
      tpu.vector_store %arg15[%c0_49, %c0_50, %c0_51], %108 {strides = array<i32>} : memref<2x16x4xf32, #tpu.memory_space<vmem>>, vector<1x16x4xf32>,
      %109 = vector.extract_strided_slice %104 {offsets = [0, 4], sizes = [16, 4], strides = [1, 1]} : vector<16x8xf32> to vector<16x4xf32>
      %c1 = arith.constant 1 : index
      %c0_52 = arith.constant 0 : index
      %c0_53 = arith.constant 0 : index
      %110 = vector.load %arg15[%c1, %c0_52, %c0_53] : memref<2x16x4xf32, #tpu.memory_space<vmem>>, vector<1x16x4xf32>
      %111 = vector.shape_cast %110 : vector<1x16x4xf32> to vector<16x4xf32>
      %112 = vector.shape_cast %109 : vector<16x4xf32> to vector<1x16x4xf32>
      tpu.vector_store %arg15[%c1, %c0_52, %c0_53], %112 {strides = array<i32>} : memref<2x16x4xf32, #tpu.memory_space<vmem>>, vector<1x16x4xf32>,
      %113 = arith.truncf %31 : vector<16x32xf32> to vector<16x32xbf16>
      %c0_54 = arith.constant 0 : index
      %c0_55 = arith.constant 0 : index
      %114 = vector.load %arg7[%c0_54, %c0_55] : memref<32x128xbf16, #tpu.memory_space<vmem>>, vector<32x128xbf16>
      %cst_56 = arith.constant dense<0.000000e+00> : vector<16x128xf32>
      %115 = tpu.matmul %113, %114, %cst_56 {dimension_numbers = #tpu.dot_dimension_numbers<[1], [0], [0], [1], [0, 0, 1, 1], [], []>} : vector<16x32xbf16>, vector<32x128xbf16>, vector<16x128xf32> -> vector<16x128xf32>
      %c0_57 = arith.constant 0 : index
      %c0_58 = arith.constant 0 : index
      %116 = vector.load %arg8[%c0_57, %c0_58] : memref<32x128xbf16, #tpu.memory_space<vmem>>, vector<32x128xbf16>
      %cst_59 = arith.constant dense<0.000000e+00> : vector<16x128xf32>
      %117 = tpu.matmul %113, %116, %cst_59 {dimension_numbers = #tpu.dot_dimension_numbers<[1], [0], [0], [1], [0, 0, 1, 1], [], []>} : vector<16x32xbf16>, vector<32x128xbf16>, vector<16x128xf32> -> vector<16x128xf32>
      %118 = arith.negf %115 : vector<16x128xf32>
      %119 = math.exp %118 : vector<16x128xf32>
      %cst_60 = arith.constant 1.000000e+00 : f32
      %120 = vector.broadcast %cst_60 : f32 to vector<16x128xf32>
      %121 = arith.addf %120, %119 : vector<16x128xf32>
      %122 = arith.divf %120, %121 : vector<16x128xf32>
      %123 = arith.mulf %115, %122 : vector<16x128xf32>
      %124 = arith.mulf %123, %117 : vector<16x128xf32>
      %125 = arith.truncf %124 : vector<16x128xf32> to vector<16x128xbf16>
      %c0_61 = arith.constant 0 : index
      %c0_62 = arith.constant 0 : index
      %126 = vector.load %arg9[%c0_61, %c0_62] : memref<128x32xbf16, #tpu.memory_space<vmem>>, vector<128x32xbf16>
      %cst_63 = arith.constant dense<0.000000e+00> : vector<16x32xf32>
      %127 = tpu.matmul %125, %126, %cst_63 {dimension_numbers = #tpu.dot_dimension_numbers<[1], [0], [0], [1], [0, 0, 1, 1], [], []>} : vector<16x128xbf16>, vector<128x32xbf16>, vector<16x32xf32> -> vector<16x32xf32>
      %c0_64 = arith.constant 0 : index
      %c0_65 = arith.constant 0 : index
      %128 = vector.load %arg10[%c0_64, %c0_65] : memref<1x32xf32, #tpu.memory_space<vmem>>, vector<1x32xf32>
      %129 = vector.broadcast %128 : vector<1x32xf32> to vector<16x32xf32>
      %130 = arith.mulf %31, %129 : vector<16x32xf32>
      %cst_66 = arith.constant dense<0.000000e+00> : vector<16xf32>
      %131 = vector.multi_reduction <add>, %130, %cst_66 [1] : vector<16x32xf32> to vector<16xf32>
      %132 = vector.shape_cast %131 : vector<16xf32> to vector<16x1xf32>
      %133 = arith.negf %132 : vector<16x1xf32>
      %134 = math.exp %133 : vector<16x1xf32>
      %cst_67 = arith.constant 1.000000e+00 : f32
      %135 = vector.broadcast %cst_67 : f32 to vector<16x1xf32>
      %136 = arith.addf %135, %134 : vector<16x1xf32>
      %137 = arith.divf %135, %136 : vector<16x1xf32>
      %138 = vector.broadcast %137 : vector<16x1xf32> to vector<16x32xf32>
      %139 = arith.mulf %138, %127 : vector<16x32xf32>
      %c0_68 = arith.constant 0 : index
      %c0_69 = arith.constant 0 : index
      %140 = vector.load %arg14[%c0_68, %c0_69] : memref<16x32xf32, #tpu.memory_space<vmem>>, vector<16x32xf32>
      tpu.vector_store %arg14[%c0_68, %c0_69], %139 {strides = array<i32>} : memref<16x32xf32, #tpu.memory_space<vmem>>, vector<16x32xf32>,
    } else {
    }
    %c0 = arith.constant 0 : index
    %c0_1 = arith.constant 0 : index
    %3 = vector.load %arg2[%c0, %c0_1] : memref<16x32xf32, #tpu.memory_space<vmem>>, vector<16x32xf32>
    %4 = arith.truncf %3 : vector<16x32xf32> to vector<16x32xbf16>
    %c0_2 = arith.constant 0 : index
    %c0_3 = arith.constant 0 : index
    %5 = vector.load %arg4[%c0_2, %c0_3] : memref<32x128xbf16, #tpu.memory_space<vmem>>, vector<32x128xbf16>
    %cst = arith.constant dense<0.000000e+00> : vector<16x128xf32>
    %6 = tpu.matmul %4, %5, %cst {dimension_numbers = #tpu.dot_dimension_numbers<[1], [0], [0], [1], [0, 0, 1, 1], [], []>} : vector<16x32xbf16>, vector<32x128xbf16>, vector<16x128xf32> -> vector<16x128xf32>
    %c0_4 = arith.constant 0 : index
    %c0_5 = arith.constant 0 : index
    %7 = vector.load %arg5[%c0_4, %c0_5] : memref<32x128xbf16, #tpu.memory_space<vmem>>, vector<32x128xbf16>
    %cst_6 = arith.constant dense<0.000000e+00> : vector<16x128xf32>
    %8 = tpu.matmul %4, %7, %cst_6 {dimension_numbers = #tpu.dot_dimension_numbers<[1], [0], [0], [1], [0, 0, 1, 1], [], []>} : vector<16x32xbf16>, vector<32x128xbf16>, vector<16x128xf32> -> vector<16x128xf32>
    %9 = arith.index_cast %arg1 : i32 to index
    %c0_7 = arith.constant 0 : index
    %c0_8 = arith.constant 0 : index
    %10 = vector.load %arg15[%9, %c0_7, %c0_8] : memref<2x16x4xf32, #tpu.memory_space<vmem>>, vector<1x16x4xf32>
    %11 = vector.shape_cast %10 : vector<1x16x4xf32> to vector<16x4xf32>
    %c0_9 = arith.constant 0 : index
    %c0_10 = arith.constant 0 : index
    %12 = vector.load %arg11[%c0_9, %c0_10] : memref<4x128xf32, #tpu.memory_space<vmem>>, vector<4x128xf32>
    %cst_11 = arith.constant dense<0.000000e+00> : vector<16x128xf32>
    %13 = tpu.matmul %11, %12, %cst_11 {dimension_numbers = #tpu.dot_dimension_numbers<[1], [0], [0], [1], [0, 0, 1, 1], [], []>} : vector<16x4xf32>, vector<4x128xf32>, vector<16x128xf32> -> vector<16x128xf32>
    %14 = arith.negf %6 : vector<16x128xf32>
    %15 = math.exp %14 : vector<16x128xf32>
    %cst_12 = arith.constant 1.000000e+00 : f32
    %16 = vector.broadcast %cst_12 : f32 to vector<16x128xf32>
    %17 = arith.addf %16, %15 : vector<16x128xf32>
    %18 = arith.divf %16, %17 : vector<16x128xf32>
    %19 = arith.mulf %6, %18 : vector<16x128xf32>
    %20 = arith.mulf %19, %8 : vector<16x128xf32>
    %21 = arith.mulf %20, %13 : vector<16x128xf32>
    %22 = arith.truncf %21 : vector<16x128xf32> to vector<16x128xbf16>
    %c0_13 = arith.constant 0 : index
    %c0_14 = arith.constant 0 : index
    %23 = vector.load %arg14[%c0_13, %c0_14] : memref<16x32xf32, #tpu.memory_space<vmem>>, vector<16x32xf32>
    %c0_15 = arith.constant 0 : index
    %c0_16 = arith.constant 0 : index
    %24 = vector.load %arg6[%c0_15, %c0_16] : memref<128x32xbf16, #tpu.memory_space<vmem>>, vector<128x32xbf16>
    %cst_17 = arith.constant dense<0.000000e+00> : vector<16x32xf32>
    %25 = tpu.matmul %22, %24, %cst_17 {dimension_numbers = #tpu.dot_dimension_numbers<[1], [0], [0], [1], [0, 0, 1, 1], [], []>} : vector<16x128xbf16>, vector<128x32xbf16>, vector<16x32xf32> -> vector<16x32xf32>
    %26 = arith.addf %23, %25 : vector<16x32xf32>
    %c0_18 = arith.constant 0 : index
    %c0_19 = arith.constant 0 : index
    %27 = vector.load %arg14[%c0_18, %c0_19] : memref<16x32xf32, #tpu.memory_space<vmem>>, vector<16x32xf32>
    tpu.vector_store %arg14[%c0_18, %c0_19], %26 {strides = array<i32>} : memref<16x32xf32, #tpu.memory_space<vmem>>, vector<16x32xf32>,
    %c1_i32 = arith.constant 1 : i32
    %28 = arith.cmpi eq, %arg1, %c1_i32 : i32
    %29 = arith.extui %28 : i1 to i32
    %c0_i32_20 = arith.constant 0 : i32
    %30 = arith.cmpi ne, %29, %c0_i32_20 : i32
    scf.if %30 {
      %c0_21 = arith.constant 0 : index
      %c0_22 = arith.constant 0 : index
      %31 = vector.load %arg14[%c0_21, %c0_22] : memref<16x32xf32, #tpu.memory_space<vmem>>, vector<16x32xf32>
      %c0_23 = arith.constant 0 : index
      %c0_24 = arith.constant 0 : index
      %32 = vector.load %arg12[%c0_23, %c0_24] : memref<16x32xf32, #tpu.memory_space<vmem>>, vector<16x32xf32>
      tpu.vector_store %arg12[%c0_23, %c0_24], %31 {strides = array<i32>} : memref<16x32xf32, #tpu.memory_space<vmem>>, vector<16x32xf32>,
    } else {
    }
    return
  }
  func.func @transform_0(%arg0: i32, %arg1: i32) -> (i32, i32) {
    %c0_i32 = arith.constant 0 : i32
    %c0_i32_0 = arith.constant 0 : i32
    return %arg0, %c0_i32 : i32, i32
  }
  func.func @transform_1(%arg0: i32, %arg1: i32) -> (i32, i32) {
    %c0_i32 = arith.constant 0 : i32
    %c0_i32_0 = arith.constant 0 : i32
    %c0_i32_1 = arith.constant 0 : i32
    return %c0_i32, %c0_i32_0 : i32, i32
  }
  func.func @transform_2(%arg0: i32, %arg1: i32) -> (i32, i32) {
    %c0_i32 = arith.constant 0 : i32
    %c0_i32_0 = arith.constant 0 : i32
    return %c0_i32, %arg1 : i32, i32
  }
  func.func @transform_3(%arg0: i32, %arg1: i32) -> (i32, i32) {
    %c0_i32 = arith.constant 0 : i32
    %c0_i32_0 = arith.constant 0 : i32
    return %c0_i32, %arg1 : i32, i32
  }
  func.func @transform_4(%arg0: i32, %arg1: i32) -> (i32, i32) {
    %c0_i32 = arith.constant 0 : i32
    %c0_i32_0 = arith.constant 0 : i32
    return %arg1, %c0_i32 : i32, i32
  }
  func.func @transform_5(%arg0: i32, %arg1: i32) -> (i32, i32) {
    %c0_i32 = arith.constant 0 : i32
    %c0_i32_0 = arith.constant 0 : i32
    %c0_i32_1 = arith.constant 0 : i32
    return %c0_i32, %c0_i32_0 : i32, i32
  }
  func.func @transform_6(%arg0: i32, %arg1: i32) -> (i32, i32) {
    %c0_i32 = arith.constant 0 : i32
    %c0_i32_0 = arith.constant 0 : i32
    %c0_i32_1 = arith.constant 0 : i32
    return %c0_i32, %c0_i32_0 : i32, i32
  }
  func.func @transform_7(%arg0: i32, %arg1: i32) -> (i32, i32) {
    %c0_i32 = arith.constant 0 : i32
    %c0_i32_0 = arith.constant 0 : i32
    %c0_i32_1 = arith.constant 0 : i32
    return %c0_i32, %c0_i32_0 : i32, i32
  }
  func.func @transform_8(%arg0: i32, %arg1: i32) -> (i32, i32) {
    %c0_i32 = arith.constant 0 : i32
    %c0_i32_0 = arith.constant 0 : i32
    %c0_i32_1 = arith.constant 0 : i32
    return %c0_i32, %c0_i32_0 : i32, i32
  }
  func.func @transform_9(%arg0: i32, %arg1: i32) -> (i32, i32) {
    %c0_i32 = arith.constant 0 : i32
    %c0_i32_0 = arith.constant 0 : i32
    %c0_i32_1 = arith.constant 0 : i32
    return %c0_i32, %c0_i32_0 : i32, i32
  }
  func.func @transform_10(%arg0: i32, %arg1: i32) -> (i32, i32) {
    %c0_i32 = arith.constant 0 : i32
    %c0_i32_0 = arith.constant 0 : i32
    return %arg0, %c0_i32 : i32, i32
  }
  func.func @transform_11(%arg0: i32, %arg1: i32) -> (i32, i32) {
    %c0_i32 = arith.constant 0 : i32
    %c0_i32_0 = arith.constant 0 : i32
    return %arg0, %c0_i32 : i32, i32
  }
}

module attributes {stable_mosaic.version = 11 : i64} {
  func.func @_moe_kernel(%arg0: i32, %arg1: i32, %arg2: memref<16x32xf32, #tpu.memory_space<vmem>>, %arg3: memref<32x128xf32, #tpu.memory_space<vmem>>, %arg4: memref<32x128xbf16, #tpu.memory_space<vmem>>, %arg5: memref<32x128xbf16, #tpu.memory_space<vmem>>, %arg6: memref<128x32xbf16, #tpu.memory_space<vmem>>, %arg7: memref<32x128xbf16, #tpu.memory_space<vmem>>, %arg8: memref<32x128xbf16, #tpu.memory_space<vmem>>, %arg9: memref<128x32xbf16, #tpu.memory_space<vmem>>, %arg10: memref<1x32xf32, #tpu.memory_space<vmem>>, %arg11: memref<4x128xf32, #tpu.memory_space<vmem>>, %arg12: memref<16x32xf32, #tpu.memory_space<vmem>>, %arg13: memref<16x128xf32, #tpu.memory_space<vmem>>, %arg14: memref<16x32xf32, #tpu.memory_space<vmem>>, %arg15: memref<2x16x4xf32, #tpu.memory_space<vmem>>) attributes {dimension_semantics = [#tpu.dimension_semantics<parallel>, #tpu.dimension_semantics<arbitrary>], iteration_bounds = array<i64: 2, 2>, scalar_prefetch = 0 : i64, scratch_operands = 2 : i64, tpu.core_type = #tpu.core_type<tc>, window_params = [{transform_indices = @transform_0, window_bounds = array<i64: 16, 32>}, {pipeline_mode = #tpu.pipeline_mode<synchronous>, transform_indices = @transform_1, window_bounds = array<i64: 32, 128>}, {transform_indices = @transform_2, window_bounds = array<i64: 32, 128>}, {transform_indices = @transform_3, window_bounds = array<i64: 32, 128>}, {transform_indices = @transform_4, window_bounds = array<i64: 128, 32>}, {pipeline_mode = #tpu.pipeline_mode<synchronous>, transform_indices = @transform_5, window_bounds = array<i64: 32, 128>}, {pipeline_mode = #tpu.pipeline_mode<synchronous>, transform_indices = @transform_6, window_bounds = array<i64: 32, 128>}, {pipeline_mode = #tpu.pipeline_mode<synchronous>, transform_indices = @transform_7, window_bounds = array<i64: 128, 32>}, {pipeline_mode = #tpu.pipeline_mode<synchronous>, transform_indices = @transform_8, window_bounds = array<i64: 1, 32>}, {pipeline_mode = #tpu.pipeline_mode<synchronous>, transform_indices = @transform_9, window_bounds = array<i64: 4, 128>}, {transform_indices = @transform_10, window_bounds = array<i64: 16, 32>}, {transform_indices = @transform_11, window_bounds = array<i64: 16, 128>}]} {
    %c0_i32 = arith.constant 0 : i32
    %0 = arith.cmpi eq, %arg1, %c0_i32 : i32
    %1 = arith.extui %0 : i1 to i32
    %c0_i32_0 = arith.constant 0 : i32
    %2 = arith.cmpi ne, %1, %c0_i32_0 : i32
    scf.if %2 {
      %c0_21 = arith.constant 0 : index
      %c0_22 = arith.constant 0 : index
      %31 = vector.load %arg2[%c0_21, %c0_22] : memref<16x32xf32, #tpu.memory_space<vmem>>, vector<16x32xf32>
      %c0_23 = arith.constant 0 : index
      %c0_24 = arith.constant 0 : index
      %32 = vector.load %arg3[%c0_23, %c0_24] : memref<32x128xf32, #tpu.memory_space<vmem>>, vector<32x128xf32>
      %cst_25 = arith.constant dense<0.000000e+00> : vector<16x128xf32>
      %33 = tpu.matmul %31, %32, %cst_25 {dimension_numbers = #tpu.dot_dimension_numbers<[1], [0], [0], [1], [0, 0, 1, 1], [], []>} : vector<16x32xf32>, vector<32x128xf32>, vector<16x128xf32> -> vector<16x128xf32>
      %c0_26 = arith.constant 0 : index
      %c0_27 = arith.constant 0 : index
      %34 = vector.load %arg13[%c0_26, %c0_27] : memref<16x128xf32, #tpu.memory_space<vmem>>, vector<16x128xf32>
      tpu.vector_store %arg13[%c0_26, %c0_27], %33 {strides = array<i32>} : memref<16x128xf32, #tpu.memory_space<vmem>>, vector<16x128xf32>,
      %35 = vector.extract_strided_slice %33 {offsets = [0, 0], sizes = [16, 8], strides = [1, 1]} : vector<16x128xf32> to vector<16x8xf32>
      %cst_28 = arith.constant dense<0xFF800000> : vector<16xf32>
      %36 = vector.multi_reduction <maximumf>, %35, %cst_28 [1] : vector<16x8xf32> to vector<16xf32>
      %37 = vector.shape_cast %36 : vector<16xf32> to vector<16x1xf32>
      %38 = vector.broadcast %37 : vector<16x1xf32> to vector<16x8xf32>
      %39 = arith.subf %35, %38 : vector<16x8xf32>
      %40 = math.exp %39 : vector<16x8xf32>
      %cst_29 = arith.constant dense<0.000000e+00> : vector<16xf32>
      %41 = vector.multi_reduction <add>, %40, %cst_29 [1] : vector<16x8xf32> to vector<16xf32>
      %42 = vector.shape_cast %41 : vector<16xf32> to vector<16x1xf32>
      %43 = vector.broadcast %42 : vector<16x1xf32> to vector<16x8xf32>
      %44 = arith.divf %40, %43 : vector<16x8xf32>
      %45 = tpu.iota {dimensions = array<i32: 1>} : vector<16x8xi32>
      %cst_30 = arith.constant 0.000000e+00 : f32
      %46 = vector.broadcast %cst_30 : f32 to vector<16x8xf32>
      %cst_31 = arith.constant dense<0xFF800000> : vector<16xf32>
      %47 = vector.multi_reduction <maximumf>, %44, %cst_31 [1] : vector<16x8xf32> to vector<16xf32>
      %48 = vector.shape_cast %47 : vector<16xf32> to vector<16x1xf32>
      %49 = vector.broadcast %48 : vector<16x1xf32> to vector<16x8xf32>
      %50 = arith.cmpf oge, %44, %49 : vector<16x8xf32>
      %c8_i32 = arith.constant 8 : i32
      %51 = vector.broadcast %c8_i32 : i32 to vector<16x8xi32>
      %52 = arith.select %50, %45, %51 : vector<16x8xi1>, vector<16x8xi32>
      %cst_32 = arith.constant dense<2147483647> : vector<16xi32>
      %53 = vector.multi_reduction <minsi>, %52, %cst_32 [1] : vector<16x8xi32> to vector<16xi32>
      %54 = vector.shape_cast %53 : vector<16xi32> to vector<16x1xi32>
      %55 = vector.broadcast %54 : vector<16x1xi32> to vector<16x8xi32>
      %56 = arith.cmpi eq, %45, %55 : vector<16x8xi32>
      %cst_33 = arith.constant 0.000000e+00 : f32
      %57 = vector.broadcast %cst_33 : f32 to vector<16x8xf32>
      %58 = arith.select %56, %44, %57 : vector<16x8xi1>, vector<16x8xf32>
      %59 = arith.addf %46, %58 : vector<16x8xf32>
      %cst_34 = arith.constant 0xFF800000 : f32
      %60 = vector.broadcast %cst_34 : f32 to vector<16x8xf32>
      %61 = arith.select %56, %60, %44 : vector<16x8xi1>, vector<16x8xf32>
      %cst_35 = arith.constant dense<0xFF800000> : vector<16xf32>
      %62 = vector.multi_reduction <maximumf>, %61, %cst_35 [1] : vector<16x8xf32> to vector<16xf32>
      %63 = vector.shape_cast %62 : vector<16xf32> to vector<16x1xf32>
      %64 = vector.broadcast %63 : vector<16x1xf32> to vector<16x8xf32>
      %65 = arith.cmpf oge, %61, %64 : vector<16x8xf32>
      %c8_i32_36 = arith.constant 8 : i32
      %66 = vector.broadcast %c8_i32_36 : i32 to vector<16x8xi32>
      %67 = arith.select %65, %45, %66 : vector<16x8xi1>, vector<16x8xi32>
      %cst_37 = arith.constant dense<2147483647> : vector<16xi32>
      %68 = vector.multi_reduction <minsi>, %67, %cst_37 [1] : vector<16x8xi32> to vector<16xi32>
      %69 = vector.shape_cast %68 : vector<16xi32> to vector<16x1xi32>
      %70 = vector.broadcast %69 : vector<16x1xi32> to vector<16x8xi32>
      %71 = arith.cmpi eq, %45, %70 : vector<16x8xi32>
      %cst_38 = arith.constant 0.000000e+00 : f32
      %72 = vector.broadcast %cst_38 : f32 to vector<16x8xf32>
      %73 = arith.select %71, %44, %72 : vector<16x8xi1>, vector<16x8xf32>
      %74 = arith.addf %59, %73 : vector<16x8xf32>
      %cst_39 = arith.constant 0xFF800000 : f32
      %75 = vector.broadcast %cst_39 : f32 to vector<16x8xf32>
      %76 = arith.select %71, %75, %61 : vector<16x8xi1>, vector<16x8xf32>
      %cst_40 = arith.constant dense<0xFF800000> : vector<16xf32>
      %77 = vector.multi_reduction <maximumf>, %76, %cst_40 [1] : vector<16x8xf32> to vector<16xf32>
      %78 = vector.shape_cast %77 : vector<16xf32> to vector<16x1xf32>
      %79 = vector.broadcast %78 : vector<16x1xf32> to vector<16x8xf32>
      %80 = arith.cmpf oge, %76, %79 : vector<16x8xf32>
      %c8_i32_41 = arith.constant 8 : i32
      %81 = vector.broadcast %c8_i32_41 : i32 to vector<16x8xi32>
      %82 = arith.select %80, %45, %81 : vector<16x8xi1>, vector<16x8xi32>
      %cst_42 = arith.constant dense<2147483647> : vector<16xi32>
      %83 = vector.multi_reduction <minsi>, %82, %cst_42 [1] : vector<16x8xi32> to vector<16xi32>
      %84 = vector.shape_cast %83 : vector<16xi32> to vector<16x1xi32>
      %85 = vector.broadcast %84 : vector<16x1xi32> to vector<16x8xi32>
      %86 = arith.cmpi eq, %45, %85 : vector<16x8xi32>
      %cst_43 = arith.constant 0.000000e+00 : f32
      %87 = vector.broadcast %cst_43 : f32 to vector<16x8xf32>
      %88 = arith.select %86, %44, %87 : vector<16x8xi1>, vector<16x8xf32>
      %89 = arith.addf %74, %88 : vector<16x8xf32>
      %cst_44 = arith.constant 0xFF800000 : f32
      %90 = vector.broadcast %cst_44 : f32 to vector<16x8xf32>
      %91 = arith.select %86, %90, %76 : vector<16x8xi1>, vector<16x8xf32>
      %cst_45 = arith.constant dense<0xFF800000> : vector<16xf32>
      %92 = vector.multi_reduction <maximumf>, %91, %cst_45 [1] : vector<16x8xf32> to vector<16xf32>
      %93 = vector.shape_cast %92 : vector<16xf32> to vector<16x1xf32>
      %94 = vector.broadcast %93 : vector<16x1xf32> to vector<16x8xf32>
      %95 = arith.cmpf oge, %91, %94 : vector<16x8xf32>
      %c8_i32_46 = arith.constant 8 : i32
      %96 = vector.broadcast %c8_i32_46 : i32 to vector<16x8xi32>
      %97 = arith.select %95, %45, %96 : vector<16x8xi1>, vector<16x8xi32>
      %cst_47 = arith.constant dense<2147483647> : vector<16xi32>
      %98 = vector.multi_reduction <minsi>, %97, %cst_47 [1] : vector<16x8xi32> to vector<16xi32>
      %99 = vector.shape_cast %98 : vector<16xi32> to vector<16x1xi32>
      %100 = vector.broadcast %99 : vector<16x1xi32> to vector<16x8xi32>
      %101 = arith.cmpi eq, %45, %100 : vector<16x8xi32>
      %cst_48 = arith.constant 0.000000e+00 : f32
      %102 = vector.broadcast %cst_48 : f32 to vector<16x8xf32>
      %103 = arith.select %101, %44, %102 : vector<16x8xi1>, vector<16x8xf32>
      %104 = arith.addf %89, %103 : vector<16x8xf32>
      %105 = vector.extract_strided_slice %104 {offsets = [0, 0], sizes = [16, 4], strides = [1, 1]} : vector<16x8xf32> to vector<16x4xf32>
      %c0_49 = arith.constant 0 : index
      %c0_50 = arith.constant 0 : index
      %c0_51 = arith.constant 0 : index
      %106 = vector.load %arg15[%c0_49, %c0_50, %c0_51] : memref<2x16x4xf32, #tpu.memory_space<vmem>>, vector<1x16x4xf32>
      %107 = vector.shape_cast %106 : vector<1x16x4xf32> to vector<16x4xf32>
      %108 = vector.shape_cast %105 : vector<16x4xf32> to vector<1x16x4xf32>
      tpu.vector_store %arg15[%c0_49, %c0_50, %c0_51], %108 {strides = array<i32>} : memref<2x16x4xf32, #tpu.memory_space<vmem>>, vector<1x16x4xf32>,
      %109 = vector.extract_strided_slice %104 {offsets = [0, 4], sizes = [16, 4], strides = [1, 1]} : vector<16x8xf32> to vector<16x4xf32>
      %c1 = arith.constant 1 : index
      %c0_52 = arith.constant 0 : index
      %c0_53 = arith.constant 0 : index
      %110 = vector.load %arg15[%c1, %c0_52, %c0_53] : memref<2x16x4xf32, #tpu.memory_space<vmem>>, vector<1x16x4xf32>
      %111 = vector.shape_cast %110 : vector<1x16x4xf32> to vector<16x4xf32>
      %112 = vector.shape_cast %109 : vector<16x4xf32> to vector<1x16x4xf32>
      tpu.vector_store %arg15[%c1, %c0_52, %c0_53], %112 {strides = array<i32>} : memref<2x16x4xf32, #tpu.memory_space<vmem>>, vector<1x16x4xf32>,
      %113 = arith.truncf %31 : vector<16x32xf32> to vector<16x32xbf16>
      %c0_54 = arith.constant 0 : index
      %c0_55 = arith.constant 0 : index
      %114 = vector.load %arg7[%c0_54, %c0_55] : memref<32x128xbf16, #tpu.memory_space<vmem>>, vector<32x128xbf16>
      %cst_56 = arith.constant dense<0.000000e+00> : vector<16x128xf32>
      %115 = tpu.matmul %113, %114, %cst_56 {dimension_numbers = #tpu.dot_dimension_numbers<[1], [0], [0], [1], [0, 0, 1, 1], [], []>} : vector<16x32xbf16>, vector<32x128xbf16>, vector<16x128xf32> -> vector<16x128xf32>
      %c0_57 = arith.constant 0 : index
      %c0_58 = arith.constant 0 : index
      %116 = vector.load %arg8[%c0_57, %c0_58] : memref<32x128xbf16, #tpu.memory_space<vmem>>, vector<32x128xbf16>
      %cst_59 = arith.constant dense<0.000000e+00> : vector<16x128xf32>
      %117 = tpu.matmul %113, %116, %cst_59 {dimension_numbers = #tpu.dot_dimension_numbers<[1], [0], [0], [1], [0, 0, 1, 1], [], []>} : vector<16x32xbf16>, vector<32x128xbf16>, vector<16x128xf32> -> vector<16x128xf32>
      %118 = arith.negf %115 : vector<16x128xf32>
      %119 = math.exp %118 : vector<16x128xf32>
      %cst_60 = arith.constant 1.000000e+00 : f32
      %120 = vector.broadcast %cst_60 : f32 to vector<16x128xf32>
      %121 = arith.addf %120, %119 : vector<16x128xf32>
      %122 = arith.divf %120, %121 : vector<16x128xf32>
      %123 = arith.mulf %115, %122 : vector<16x128xf32>
      %124 = arith.mulf %123, %117 : vector<16x128xf32>
      %125 = arith.truncf %124 : vector<16x128xf32> to vector<16x128xbf16>
      %c0_61 = arith.constant 0 : index
      %c0_62 = arith.constant 0 : index
      %126 = vector.load %arg9[%c0_61, %c0_62] : memref<128x32xbf16, #tpu.memory_space<vmem>>, vector<128x32xbf16>
      %cst_63 = arith.constant dense<0.000000e+00> : vector<16x32xf32>
      %127 = tpu.matmul %125, %126, %cst_63 {dimension_numbers = #tpu.dot_dimension_numbers<[1], [0], [0], [1], [0, 0, 1, 1], [], []>} : vector<16x128xbf16>, vector<128x32xbf16>, vector<16x32xf32> -> vector<16x32xf32>
      %c0_64 = arith.constant 0 : index
      %c0_65 = arith.constant 0 : index
      %128 = vector.load %arg10[%c0_64, %c0_65] : memref<1x32xf32, #tpu.memory_space<vmem>>, vector<1x32xf32>
      %129 = vector.broadcast %128 : vector<1x32xf32> to vector<16x32xf32>
      %130 = arith.mulf %31, %129 : vector<16x32xf32>
      %cst_66 = arith.constant dense<0.000000e+00> : vector<16xf32>
      %131 = vector.multi_reduction <add>, %130, %cst_66 [1] : vector<16x32xf32> to vector<16xf32>
      %132 = vector.shape_cast %131 : vector<16xf32> to vector<16x1xf32>
      %133 = arith.negf %132 : vector<16x1xf32>
      %134 = math.exp %133 : vector<16x1xf32>
      %cst_67 = arith.constant 1.000000e+00 : f32
      %135 = vector.broadcast %cst_67 : f32 to vector<16x1xf32>
      %136 = arith.addf %135, %134 : vector<16x1xf32>
      %137 = arith.divf %135, %136 : vector<16x1xf32>
      %138 = vector.broadcast %137 : vector<16x1xf32> to vector<16x32xf32>
      %139 = arith.mulf %138, %127 : vector<16x32xf32>
      %c0_68 = arith.constant 0 : index
      %c0_69 = arith.constant 0 : index
      %140 = vector.load %arg14[%c0_68, %c0_69] : memref<16x32xf32, #tpu.memory_space<vmem>>, vector<16x32xf32>
      tpu.vector_store %arg14[%c0_68, %c0_69], %139 {strides = array<i32>} : memref<16x32xf32, #tpu.memory_space<vmem>>, vector<16x32xf32>,
    } else {
    }
    %c0 = arith.constant 0 : index
    %c0_1 = arith.constant 0 : index
    %3 = vector.load %arg2[%c0, %c0_1] : memref<16x32xf32, #tpu.memory_space<vmem>>, vector<16x32xf32>
    %4 = arith.truncf %3 : vector<16x32xf32> to vector<16x32xbf16>
    %c0_2 = arith.constant 0 : index
    %c0_3 = arith.constant 0 : index
    %5 = vector.load %arg4[%c0_2, %c0_3] : memref<32x128xbf16, #tpu.memory_space<vmem>>, vector<32x128xbf16>
    %cst = arith.constant dense<0.000000e+00> : vector<16x128xf32>
    %6 = tpu.matmul %4, %5, %cst {dimension_numbers = #tpu.dot_dimension_numbers<[1], [0], [0], [1], [0, 0, 1, 1], [], []>} : vector<16x32xbf16>, vector<32x128xbf16>, vector<16x128xf32> -> vector<16x128xf32>
    %c0_4 = arith.constant 0 : index
    %c0_5 = arith.constant 0 : index
    %7 = vector.load %arg5[%c0_4, %c0_5] : memref<32x128xbf16, #tpu.memory_space<vmem>>, vector<32x128xbf16>
    %cst_6 = arith.constant dense<0.000000e+00> : vector<16x128xf32>
    %8 = tpu.matmul %4, %7, %cst_6 {dimension_numbers = #tpu.dot_dimension_numbers<[1], [0], [0], [1], [0, 0, 1, 1], [], []>} : vector<16x32xbf16>, vector<32x128xbf16>, vector<16x128xf32> -> vector<16x128xf32>
    %9 = arith.index_cast %arg1 : i32 to index
    %c0_7 = arith.constant 0 : index
    %c0_8 = arith.constant 0 : index
    %10 = vector.load %arg15[%9, %c0_7, %c0_8] : memref<2x16x4xf32, #tpu.memory_space<vmem>>, vector<1x16x4xf32>
    %11 = vector.shape_cast %10 : vector<1x16x4xf32> to vector<16x4xf32>
    %c0_9 = arith.constant 0 : index
    %c0_10 = arith.constant 0 : index
    %12 = vector.load %arg11[%c0_9, %c0_10] : memref<4x128xf32, #tpu.memory_space<vmem>>, vector<4x128xf32>
    %cst_11 = arith.constant dense<0.000000e+00> : vector<16x128xf32>
    %13 = tpu.matmul %11, %12, %cst_11 {dimension_numbers = #tpu.dot_dimension_numbers<[1], [0], [0], [1], [0, 0, 1, 1], [], []>} : vector<16x4xf32>, vector<4x128xf32>, vector<16x128xf32> -> vector<16x128xf32>
    %14 = arith.negf %6 : vector<16x128xf32>
    %15 = math.exp %14 : vector<16x128xf32>
    %cst_12 = arith.constant 1.000000e+00 : f32
    %16 = vector.broadcast %cst_12 : f32 to vector<16x128xf32>
    %17 = arith.addf %16, %15 : vector<16x128xf32>
    %18 = arith.divf %16, %17 : vector<16x128xf32>
    %19 = arith.mulf %6, %18 : vector<16x128xf32>
    %20 = arith.mulf %19, %8 : vector<16x128xf32>
    %21 = arith.mulf %20, %13 : vector<16x128xf32>
    %22 = arith.truncf %21 : vector<16x128xf32> to vector<16x128xbf16>
    %c0_13 = arith.constant 0 : index
    %c0_14 = arith.constant 0 : index
    %23 = vector.load %arg14[%c0_13, %c0_14] : memref<16x32xf32, #tpu.memory_space<vmem>>, vector<16x32xf32>
    %c0_15 = arith.constant 0 : index
    %c0_16 = arith.constant 0 : index
    %24 = vector.load %arg6[%c0_15, %c0_16] : memref<128x32xbf16, #tpu.memory_space<vmem>>, vector<128x32xbf16>
    %cst_17 = arith.constant dense<0.000000e+00> : vector<16x32xf32>
    %25 = tpu.matmul %22, %24, %cst_17 {dimension_numbers = #tpu.dot_dimension_numbers<[1], [0], [0], [1], [0, 0, 1, 1], [], []>} : vector<16x128xbf16>, vector<128x32xbf16>, vector<16x32xf32> -> vector<16x32xf32>
    %26 = arith.addf %23, %25 : vector<16x32xf32>
    %c0_18 = arith.constant 0 : index
    %c0_19 = arith.constant 0 : index
    %27 = vector.load %arg14[%c0_18, %c0_19] : memref<16x32xf32, #tpu.memory_space<vmem>>, vector<16x32xf32>
    tpu.vector_store %arg14[%c0_18, %c0_19], %26 {strides = array<i32>} : memref<16x32xf32, #tpu.memory_space<vmem>>, vector<16x32xf32>,
    %c1_i32 = arith.constant 1 : i32
    %28 = arith.cmpi eq, %arg1, %c1_i32 : i32
    %29 = arith.extui %28 : i1 to i32
    %c0_i32_20 = arith.constant 0 : i32
    %30 = arith.cmpi ne, %29, %c0_i32_20 : i32
    scf.if %30 {
      %c0_21 = arith.constant 0 : index
      %c0_22 = arith.constant 0 : index
      %31 = vector.load %arg14[%c0_21, %c0_22] : memref<16x32xf32, #tpu.memory_space<vmem>>, vector<16x32xf32>
      %c0_23 = arith.constant 0 : index
      %c0_24 = arith.constant 0 : index
      %32 = vector.load %arg12[%c0_23, %c0_24] : memref<16x32xf32, #tpu.memory_space<vmem>>, vector<16x32xf32>
      tpu.vector_store %arg12[%c0_23, %c0_24], %31 {strides = array<i32>} : memref<16x32xf32, #tpu.memory_space<vmem>>, vector<16x32xf32>,
    } else {
    }
    return
  }
  func.func @transform_0(%arg0: i32, %arg1: i32) -> (i32, i32) {
    %c0_i32 = arith.constant 0 : i32
    %c0_i32_0 = arith.constant 0 : i32
    return %arg0, %c0_i32 : i32, i32
  }
  func.func @transform_1(%arg0: i32, %arg1: i32) -> (i32, i32) {
    %c0_i32 = arith.constant 0 : i32
    %c0_i32_0 = arith.constant 0 : i32
    %c0_i32_1 = arith.constant 0 : i32
    return %c0_i32, %c0_i32_0 : i32, i32
  }
  func.func @transform_2(%arg0: i32, %arg1: i32) -> (i32, i32) {
    %c0_i32 = arith.constant 0 : i32
    %c0_i32_0 = arith.constant 0 : i32
    return %c0_i32, %arg1 : i32, i32
  }
  func.func @transform_3(%arg0: i32, %arg1: i32) -> (i32, i32) {
    %c0_i32 = arith.constant 0 : i32
    %c0_i32_0 = arith.constant 0 : i32
    return %c0_i32, %arg1 : i32, i32
  }
  func.func @transform_4(%arg0: i32, %arg1: i32) -> (i32, i32) {
    %c0_i32 = arith.constant 0 : i32
    %c0_i32_0 = arith.constant 0 : i32
    return %arg1, %c0_i32 : i32, i32
  }
  func.func @transform_5(%arg0: i32, %arg1: i32) -> (i32, i32) {
    %c0_i32 = arith.constant 0 : i32
    %c0_i32_0 = arith.constant 0 : i32
    %c0_i32_1 = arith.constant 0 : i32
    return %c0_i32, %c0_i32_0 : i32, i32
  }
  func.func @transform_6(%arg0: i32, %arg1: i32) -> (i32, i32) {
    %c0_i32 = arith.constant 0 : i32
    %c0_i32_0 = arith.constant 0 : i32
    %c0_i32_1 = arith.constant 0 : i32
    return %c0_i32, %c0_i32_0 : i32, i32
  }
  func.func @transform_7(%arg0: i32, %arg1: i32) -> (i32, i32) {
    %c0_i32 = arith.constant 0 : i32
    %c0_i32_0 = arith.constant 0 : i32
    %c0_i32_1 = arith.constant 0 : i32
    return %c0_i32, %c0_i32_0 : i32, i32
  }
  func.func @transform_8(%arg0: i32, %arg1: i32) -> (i32, i32) {
    %c0_i32 = arith.constant 0 : i32
    %c0_i32_0 = arith.constant 0 : i32
    %c0_i32_1 = arith.constant 0 : i32
    return %c0_i32, %c0_i32_0 : i32, i32
  }
  func.func @transform_9(%arg0: i32, %arg1: i32) -> (i32, i32) {
    %c0_i32 = arith.constant 0 : i32
    %c0_i32_0 = arith.constant 0 : i32
    %c0_i32_1 = arith.constant 0 : i32
    return %c0_i32, %c0_i32_0 : i32, i32
  }
  func.func @transform_10(%arg0: i32, %arg1: i32) -> (i32, i32) {
    %c0_i32 = arith.constant 0 : i32
    %c0_i32_0 = arith.constant 0 : i32
    return %arg0, %c0_i32 : i32, i32
  }
  func.func @transform_11(%arg0: i32, %arg1: i32) -> (i32, i32) {
    %c0_i32 = arith.constant 0 : i32
    %c0_i32_0 = arith.constant 0 : i32
    return %arg0, %c0_i32 : i32, i32
  }
}

</mosaic_0001>

<bundles_post_ra>
// kernel: tpu_custom_call.1
= control target key start
LH: loop header
LB: loop body
LE: loop exit
PB: predicated region body
PF: predicated region fallthrough
CT: control target
= control target key end

     0   :  { %s2462_s0 = inlined_call_operand.vmem [shape: f32[32,32], index: 0, kind: input, shape index: {}]   ;;  %s2463_s1 = inlined_call_operand.vmem [shape: f32[32,128], index: 1, kind: input, shape index: {}]   ;;  %s2464_s2 = inlined_call_operand.vmem [shape: bf16[32,256], index: 2, kind: input, shape index: {}]   ;;  %s2465_s3 = inlined_call_operand.vmem [shape: bf16[32,256], index: 3, kind: input, shape index: {}]   ;;  %s2466_s4 = inlined_call_operand.vmem [shape: bf16[256,32], index: 4, kind: input, shape index: {}]   ;;  %s2467_s5 = inlined_call_operand.vmem [shape: bf16[32,128], index: 5, kind: input, shape index: {}]   ;;  %s2468_s6 = inlined_call_operand.vmem [shape: bf16[32,128], index: 6, kind: input, shape index: {}]   ;;  %s2469_s7 = inlined_call_operand.vmem [shape: bf16[128,32], index: 7, kind: input, shape index: {}]   ;;  %s2470_s8 = inlined_call_operand.vmem [shape: f32[1,32], index: 8, kind: input, shape index: {}]   ;;  %s2471_s9 = inlined_call_operand.vmem [shape: f32[4,128], index: 9, kind: input, shape index: {}]   ;;  %s2472_s10 = inlined_call_operand.hbm [shape: f32[32,32], index: 10, kind: output, shape index: {0}]   ;;  %s2473_s11 = inlined_call_operand.hbm [shape: f32[32,128], index: 11, kind: output, shape index: {1}]  }
   0x1   :  { %2485 = sst [smem:[#allocation23_spill]] %s2464_s2 }
   0x2   :  { %2486 = sst [smem:[#allocation24_spill]] %s2465_s3 }
   0x3   :  { %2487 = sst [smem:[#allocation25_spill]] %s2472_s10 }
   0x4   :  { %2488 = sst [smem:[#allocation26_spill]] %s2473_s11 }
   0x5   :  { %17 = vsyncpa [#allocation7], 0 }
   0x6   :  { %19 = vsyncpa [#allocation7 + $0x1], 0 }
   0x7   :  { %20 = vsyncpa [#allocation9], 0 }
   0x8   :  { %22 = vsyncpa [#allocation9 + $0x1], 0  ;;  %s2058_s17 = smov 0   ;;  %s2060_s18 = smov 0  }
   0x9   :  { %s2062_s19 = smov 0   ;;  %s2064_s20 = smov 0  }
   0xa   :  { %s2066_s21 = smov 0   ;;  %s2068_s22 = smov 0  }
   0xb   :  { %s2070_s23 = smov 0   ;;  %s2072_s24 = smov 0  }
   0xc   :  { %s2074_s25 = smov 0   ;;  %s2076_s26 = smov 0  }
   0xd LB: > { %2489 = sst [smem:[#allocation12_spill]] %s1957_s17  ;;  %s1558_s27 = sadd.s32 4294967295, %s1993_s26   ;;  %s1993_s26 = sphi %s2076_s26, %s28_s26   ;;  %s1989_s25 = sphi %s2074_s25, %s2520_s25   ;;  %s1985_s24 = sphi %s2072_s24, %s2519_s24   ;;  %s1981_s23 = sphi %s2070_s23, %s2518_s23   ;;  %s1977_s22 = sphi %s2068_s22, %s2517_s22   ;;  %s1973_s21 = sphi %s2066_s21, %s2516_s21   ;;  %s1969_s20 = sphi %s2064_s20, %s2515_s20   ;;  %s1965_s19 = sphi %s2062_s19, %s2514_s19   ;;  %s1961_s18 = sphi %s2060_s18, %s2513_s18   ;;  %s1957_s17 = sphi %s2058_s17, %s2512_s17  }
   0xe   : > { %2490 = sst [smem:[#allocation13_spill]] %s1961_s18  ;;  %s1559_s28 = sadd.s32 4294967294, %s1993_s26  }
   0xf   : > { %2491 = sst [smem:[#allocation14_spill]] %s1965_s19  ;;  %s37_s29 = sadd.s32 1, %s1985_s24 }
  0x10   : > { %2492 = sst [smem:[#allocation15_spill]] %s1973_s21  ;;  %s40_s30 = sadd.s32 1, %s1989_s25 }
  0x11   : > { %2493 = sst [smem:[#allocation16_spill]] %s1985_s24  ;;  %p38_p0 = scmp.ge.s32.totalorder %s37_s29, 2 }
  0x12   : > { %2494 = sst [smem:[#allocation17_spill]] %s1989_s25  ;;  %s94_s12 = sadd.s32 1, %s1973_s21 }
  0x13   : > { %p101_p1 = scmp.ne.s32.totalorder %s1973_s21, %s1969_s20  ;;  %p102_p2 = scmp.eq.s32.totalorder %s1993_s26, 0 }
  0x14   : > { %s2522_s29 = smov (%p38_p0, %s37_s29), 0  ;;  %s2524_s30 = smov (!%p38_p0, %s40_s30), %s1989_s25 }
  0x15   : > { %2495 = sst [smem:[#allocation18_spill]] %s2522_s29  ;;  %s91_s13 = ssub.s32 %s1985_s24, %s2522_s29 }
  0x16   : > { %p2121_p3 = por %p102_p2, %p101_p1  ;;  %p42_p4 = scmp.ge.s32.totalorder %s2524_s30, 2 }
  0x17   : > { %p92_p5 = scmp.eq.s32.totalorder %s91_s13, 0  ;;  %s277_s15 = sadd.s32 1, %s1965_s19 }
  0x18   : > { %p287_p6 = scmp.ne.s32.totalorder %s1965_s19, %s1961_s18  ;;  %s2526_s30 = smov (%p42_p4, %s2524_s30), 0 }
  0x19   : > { %2497 = sst [smem:[#allocation19_spill]] %s2526_s30  ;;  %s274_s11 = ssub.s32 %s1989_s25, %s2526_s30 }
  0x1a   : > { %s2131_s16 = scalar_select %p92_p5, %s1973_s21, %s94_s12  }
  0x1b   : > { %p288_p7 = scmp.eq.s32.totalorder %s1558_s27, 3  ;;  %p275_p8 = scmp.eq.s32.totalorder %s274_s11, 0 }
  0x1c   : > { %2498 = sst [smem:[#allocation20_spill]] %s2131_s16  ;;  %p293_p9 = scmp.ne.s32.totalorder %s1961_s18, %s1957_s17 }
  0x1d   : > { %p2137_p10 = por %p288_p7, %p287_p6  ;;  %p294_p11 = scmp.eq.s32.totalorder %s1559_s28, 3 }
  0x1e   : > { %s2142_s29 = scalar_select %p275_p8, %s1965_s19, %s277_s15  }
  0x1f   : > { %p2144_p12 = por %p294_p11, %p293_p9  ;;  %p1561_p13 = scmp.ge.s32.totalorder %s1993_s26, 4 }
  0x20   : > { %2500 = sst [smem:[#allocation21_spill]] %s2142_s29 }
  0x21   : > { %s2501_s13 = scalar_select %p2144_p12, 1, 0 }
  0x22   : > { %354 = sbr.rel (%p1561_p13) target bundleno = 67 (0x43), region = 40 }
  0x23   : > { %2502 = sst [smem:[#allocation22_spill]] %s2501_s13 }
  0x27   : > { %366 = sbr.rel (!%p2121_p3) target bundleno = 53 (0x35), region = 48  ;;  %s368_s11 = sand.u32 (%p2121_p3), 1, %s1973_s21  }
  0x28   : > { %s1563_s27 = sshll.u32 (%p2121_p3), %s1985_s24, 2  ;;  %s1562_s12 = sshll.u32 (%p2121_p3), %s368_s11, 4 }
  0x29   : > { %s2503_s2 = sld [smem:[#allocation23_spill]] (%p2121_p3)  ;;  %s370_s15 = scalar_lea.vmem (%p2121_p3), [#allocation4], %s1562_s12 }
  0x2f   : > { %s372_s28 = scalar_lea.vmem %s2503_s2, %s1563_s27 }
  0x30   : > { %v389_v0 = vld [vmem:[%s372_s28] sm:$0xf]  ;;  %v391_v1 = vld [vmem:[%s372_s28 + $0x8] sm:$0xf]  ;;  %v393_v2 = vld [vmem:[%s372_s28 + $0x10] sm:$0xf] }
  0x31   : > { %390 = vst [vmem:[%s370_s15] sm:$0xf] %v389_v0  ;;  %v395_v3 = vld [vmem:[%s372_s28 + $0x18] sm:$0xf] }
  0x32   : > { %392 = vst [vmem:[%s370_s15 + $0x4] sm:$0xf] %v391_v1 }
  0x33   : > { %394 = vst [vmem:[%s370_s15 + $0x8] sm:$0xf] %v393_v2 }
  0x34   : > { %396 = vst [vmem:[%s370_s15 + $0xc] sm:$0xf] %v395_v3 }
  0x35 PF: > { %428 = sbr.rel (!%p2121_p3) target bundleno = 67 (0x43), region = 89  ;;  %s430_s11 = sand.u32 (%p2121_p3), 1, %s1973_s21  }
  0x36   : > { %s1565_s16 = sshll.u32 (%p2121_p3), %s1985_s24, 2  ;;  %s1564_s29 = sshll.u32 (%p2121_p3), %s430_s11, 4 }
  0x37   : > { %s2504_s3 = sld [smem:[#allocation24_spill]] (%p2121_p3)  ;;  %s432_s12 = scalar_lea.vmem (%p2121_p3), [#allocation5], %s1564_s29 }
  0x3d   : > { %s434_s27 = scalar_lea.vmem %s2504_s3, %s1565_s16 }
  0x3e   : > { %v451_v4 = vld [vmem:[%s434_s27] sm:$0xf]  ;;  %v453_v5 = vld [vmem:[%s434_s27 + $0x8] sm:$0xf]  ;;  %v455_v6 = vld [vmem:[%s434_s27 + $0x10] sm:$0xf] }
  0x3f   : > { %452 = vst [vmem:[%s432_s12] sm:$0xf] %v451_v4  ;;  %v457_v7 = vld [vmem:[%s434_s27 + $0x18] sm:$0xf] }
  0x40   : > { %454 = vst [vmem:[%s432_s12 + $0x4] sm:$0xf] %v453_v5 }
  0x41   : > { %456 = vst [vmem:[%s432_s12 + $0x8] sm:$0xf] %v455_v6 }
  0x42   : > { %458 = vst [vmem:[%s432_s12 + $0xc] sm:$0xf] %v457_v7 }
  0x43 PF: > { %p1566_p0 = scmp.ge.s32.totalorder %s1993_s26, 1  ;;  %p498_p1 = scmp.lt.s32.totalorder %s1993_s26, 5 }
  0x45   : > { %p499_p2 = pnand %p1566_p0, %p498_p1 }
  0x46   : > { %s505_s14 = sand.u32 (!%p499_p2), 1, %s1969_s20   ;;  %s2167_s29 = sand.u32 (!%p499_p2), 1, %s1961_s18  }
  0x47   : > { %502 = sbr.rel (%p499_p2) target bundleno = 2435 (0x983), region = 134  ;;  %s2169_s16 = sshll.u32 (!%p499_p2), %s505_s14, 4 }
  0x48   : > { %s1569_s28 = sshll.u32 (!%p499_p2), %s2167_s29, 4  ;;  %s1571_s15 = sshll.u32 (!%p499_p2), %s1981_s23, 1 }
  0x49   : > { %s2174_s11 = sshll.u32 (!%p499_p2), %s1977_s22, 4  ;;  %p571_p3 = scmp.lt.s32.totalorder (!%p499_p2), %s1571_s15, 3 }
  0x4a   : > { %p577_p4 = scmp.lt.s32.totalorder (!%p499_p2), %s2174_s11, 31  ;;  %s507_s21 = scalar_lea.vmem (!%p499_p2), [#allocation4], %s2169_s16 }
  0x4b   : > { %s514_s19 = scalar_lea.vmem (!%p499_p2), [#allocation5], %s2169_s16  ;;  %s2190_s18 = scalar_lea.vmem (!%p499_p2), [#allocation6], %s1569_s28 }
  0x4c   : > { %s2528_s15 = smov (!%p571_p3, %s1571_s15), 3  ;;  %s2192_s13 = scalar_lea.vmem [#allocation8], %s1569_s28 }
  0x4d   : > { %s578_s25 = scalar_select %p577_p4, %s2174_s11, 31 }
  0x4e   : > { %s1572_s30 = sshll.u32 %s2528_s15, 3  ;;  %p1575_p5 = scmp.ne.s32.totalorder %s1977_s22, 0 }
  0x4f   : > { %s2181_s12 = scalar_lea.vmem %s2462_s0, %s1572_s30  ;;  %s1574_s14 = sshll.u32 %s578_s25, 2 }
  0x50   : > { %s2186_s24 = scalar_lea.vmem %s2466_s4, %s1574_s14  ;;  %588 = sbr.rel (%p1575_p5) target bundleno = 2065 (0x811), region = 146 }
  0x51   : > { %s1995_s3 = smov (!%p1575_p5), 124  }
  0x55   : > { %v594_v8 = vld [vmem:[%s2463_s1 + $0x18] sm:$0xff]  ;;  %v593_v9 = vld [vmem:[%s2463_s1 + $0x10] sm:$0xff]  ;;  %v592_v10 = vld [vmem:[%s2463_s1 + $0x8] sm:$0xff]  ;;  %vm595_vm0 = vcmask 261120   ;;  %vm627_vm1 = vcmask 64512   ;;  %v676_v54 = vlaneseq }
  0x56   : > { %614 = vmatpush.msra.mxu0 %v594_v8  ;;  %v591_v11 = vld [vmem:[%s2463_s1] sm:$0xff]  ;;  %v2213_v13 = vld [vmem:[%s2181_s12 + $0x8] sm:$0xff] }
  0x57   : > { %v2208_v12 = vld [vmem:[%s2181_s12] sm:$0xff]  ;;  %v2231_v55 = vand.u32 127, %v676_v54 }
  0x58   : > { %615 = vmatpush.msra.mxu0 %v593_v9 }
  0x5a   : > { %616 = vmatpush.msra.mxu0 %v592_v10 }
  0x5c   : > { %617 = vmatpush.msra.mxu0 %v591_v11 }
  0x5d   : > { %1576 = vmatmul.msk.f32.vlgmr.msra.gmra.mxu0 %vm595_vm0, %v2208_v12 }
  0x65   : > { %1577 = vmatmul.msk.f32.gmra.mxu0 %vm595_vm0, %v2213_v13 }
  0xda   : > { %v619_v14 = vpop.f32.mrf.mxu0 }
  0xdb   : > { %625 = vst [vmem:[%s2192_s13] sm:$0xff] %v619_v14  ;;  %v628_v15 = vsel %vm627_vm1, %v619_v14, -inf }
  0xdc   : > { %629 = vmax.xlane.f32.xlu0 %v628_v15 }
  0xe2   : > { %v622_v16 = vpop.f32.mrf.mxu0 }
  0xe3   : > { %626 = vst [vmem:[%s2192_s13 + $0x8] sm:$0xff] %v622_v16  ;;  %v631_v17 = vsel %vm627_vm1, %v622_v16, -inf }
  0xe4   : > { %632 = vmax.xlane.f32.xlu0 %v631_v17 }
 0x14f   : > { %v630_v18 = vpop.xlane.xlu0 %629 }
 0x150   : > { %v634_v19 = vsub.f32 %v619_v14, %v630_v18 }
 0x152   : > { %v636_v20 = vmul.f32 1.442695, %v634_v19 }
 0x154   : > { %1819 = vpow2.f32 %v636_v20 }
 0x157   : > { %v633_v21 = vpop.xlane.xlu0 %632 }
 0x158   : > { %v635_v22 = vsub.f32 %v622_v16, %v633_v21 }
 0x15a   : > { %v1820_v23 = vpop.eup %1819  ;;  %v638_v24 = vmul.f32 1.442695, %v635_v22 }
 0x15b   : > { %v640_v25 = vsel %vm627_vm1, %v1820_v23, 0.0 }
 0x15c   : > { %1821 = vpow2.f32 %v638_v24  ;;  %641 = vadd.xlane.f32.xlu1 %v640_v25 }
 0x162   : > { %v1822_v26 = vpop.eup %1821 }
 0x163   : > { %v643_v27 = vsel %vm627_vm1, %v1822_v26, 0.0 }
 0x164   : > { %644 = vadd.xlane.f32.xlu1 %v643_v27 }
 0x1cf   : > { %v642_v28 = vpop.xlane.xlu1 %641 }
 0x1d0   : > { %1823 = vrcp.f32 %v642_v28  ;;  %v657_v33 = vand.u32 2147483648, %v642_v28  ;;  %v655_v35 = vand.u32 2147483647, %v642_v28  ;;  %vm651_vm3 = vweird.f32 %v642_v28 }
 0x1d2   : > { %v658_v38 = vor.u32 1.1754944e-38, %v657_v33  ;;  %vm656_vm5 = vcmp.eq.f32.partialorder %v655_v35, 8.507059e+37 }
 0x1d6   : > { %v1824_v29 = vpop.eup %1823 }
 0x1d7   : > { %v647_v30 = vmul.f32 %v1824_v29, %v642_v28  ;;  %v645_v31 = vpop.xlane.xlu1 %644  ;;  %vm652_vm2 = vweird.f32 %v1824_v29 }
 0x1d8   : > { %1825 = vrcp.f32 %v645_v31  ;;  %vm653_vm4 = vmor %vm651_vm3, %vm652_vm2  ;;  %v672_v44 = vand.u32 2147483648, %v645_v31  ;;  %v670_v46 = vand.u32 2147483647, %v645_v31  ;;  %vm666_vm7 = vweird.f32 %v645_v31 }
 0x1d9   : > { %v648_v32 = vsub.f32 1.0, %v647_v30 }
 0x1da   : > { %v673_v49 = vor.u32 1.1754944e-38, %v672_v44  ;;  %vm671_vm9 = vcmp.eq.f32.partialorder %v670_v46, 8.507059e+37 }
 0x1db   : > { %v649_v34 = vmul.f32 %v1824_v29, %v648_v32 }
 0x1dd   : > { %v650_v36 = vadd.f32 %v1824_v29, %v649_v34 }
 0x1de   : > { %v1826_v37 = vpop.eup %1825 }
 0x1df   : > { %v654_v39 = vsel %vm653_vm4, %v1824_v29, %v650_v36  ;;  %v662_v40 = vmul.f32 %v1826_v37, %v645_v31  ;;  %vm667_vm6 = vweird.f32 %v1826_v37 }
 0x1e0   : > { %v659_v41 = vsel %vm656_vm5, %v658_v38, %v654_v39  ;;  %vm668_vm8 = vmor %vm666_vm7, %vm667_vm6 }
 0x1e1   : > { %v2223_v42 = vmul.f32 %v1820_v23, %v659_v41  ;;  %v663_v43 = vsub.f32 1.0, %v662_v40 }
 0x1e3   : > { %v664_v45 = vmul.f32 %v1826_v37, %v663_v43  ;;  %v678_v47 = vsel %vm627_vm1, %v2223_v42, -inf }
 0x1e4   : > { %679 = vmax.xlane.f32.xlu2 %v678_v47 }
 0x1e5   : > { %v665_v48 = vadd.f32 %v1826_v37, %v664_v45 }
 0x1e7   : > { %v669_v50 = vsel %vm668_vm8, %v1826_v37, %v665_v48 }
 0x1e8   : > { %v674_v51 = vsel %vm671_vm9, %v673_v49, %v669_v50 }
 0x1e9   : > { %v2227_v52 = vmul.f32 %v1822_v26, %v674_v51 }
 0x1eb   : > { %v681_v53 = vsel %vm627_vm1, %v2227_v52, -inf }
 0x1ec   : > { %682 = vmax.xlane.f32.xlu2 %v681_v53 }
 0x257   : > { %v680_v56 = vpop.xlane.xlu2 %679 }
 0x258   : > { %vm684_vm10 = vcmp.ge.f32.partialorder %v2223_v42, %v680_v56 }
 0x259   : > { %v686_v57 = vsel %vm684_vm10, %v2231_v55, 8 }
 0x25a   : > { %v688_v58 = vsel %vm627_vm1, %v686_v57, 2147483647 }
 0x25b   : > { %v690_v59 = vshra.s32 %v688_v58, 16  ;;  %v689_v2 = vand.u32 65535, %v688_v58 }
 0x25d   : > { %v692_v60 = vcvt.s32.f32 %v690_v59  ;;  %v691_v4 = vcvt.s32.f32 %v689_v2 }
 0x25f   : > { %693 = vmin.xlane.f32.xlu0 %v692_v60  ;;  %v683_v61 = vpop.xlane.xlu2 %682 }
 0x260   : > { %vm685_vm11 = vcmp.ge.f32.partialorder %v2227_v52, %v683_v61 }
 0x261   : > { %v687_v62 = vsel %vm685_vm11, %v2231_v55, 8 }
 0x262   : > { %v703_v63 = vsel %vm627_vm1, %v687_v62, 2147483647 }
 0x263   : > { %v705_v0 = vshra.s32 %v703_v63, 16  ;;  %v704_v6 = vand.u32 65535, %v703_v63 }
 0x265   : > { %v707_v1 = vcvt.s32.f32 %v705_v0  ;;  %v706_v8 = vcvt.s32.f32 %v704_v6 }
 0x267   : > { %708 = vmin.xlane.f32.xlu1 %v707_v1 }
 0x2d2   : > { %v694_v3 = vpop.xlane.xlu0 %693 }
 0x2d3   : > { %vm695_vm12 = vcmp.eq.f32.partialorder %v692_v60, %v694_v3  ;;  %v700_v10 = vcvt.f32.s32 %v694_v3 }
 0x2d4   : > { %v696_v5 = vsel %vm695_vm12, %v691_v4, inf }
 0x2d5   : > { %697 = vmin.xlane.f32.xlu2 %v696_v5  ;;  %v701_v14 = vshll.u32 %v700_v10, 16 }
 0x2da   : > { %v709_v7 = vpop.xlane.xlu1 %708 }
 0x2db   : > { %vm710_vm13 = vcmp.eq.f32.partialorder %v707_v1, %v709_v7  ;;  %v715_v17 = vcvt.f32.s32 %v709_v7 }
 0x2dc   : > { %v711_v9 = vsel %vm710_vm13, %v706_v8, inf }
 0x2dd   : > { %712 = vmin.xlane.f32.xlu0 %v711_v9  ;;  %v716_v21 = vshll.u32 %v715_v17, 16 }
 0x348   : > { %v698_v11 = vpop.xlane.xlu2 %697 }
 0x349   : > { %v699_v15 = vcvt.f32.s32 %v698_v11 }
 0x34b   : > { %v702_v16 = vadd.s32 %v701_v14, %v699_v15 }
 0x34d   : > { %vm718_vm14 = vcmp.eq.s32.totalorder %v2231_v55, %v702_v16 }
 0x34e   : > { %v724_v18 = vsel %vm718_vm14, -inf, %v2223_v42  ;;  %v720_v51 = vsel %vm718_vm14, %v2223_v42, 0.0 }
 0x34f   : > { %v726_v19 = vsel %vm627_vm1, %v724_v18, -inf }
 0x350   : > { %727 = vmax.xlane.f32.xlu1 %v726_v19  ;;  %v713_v20 = vpop.xlane.xlu0 %712 }
 0x351   : > { %v714_v22 = vcvt.f32.s32 %v713_v20 }
 0x353   : > { %v717_v23 = vadd.s32 %v716_v21, %v714_v22 }
 0x355   : > { %vm719_vm15 = vcmp.eq.s32.totalorder %v2231_v55, %v717_v23 }
 0x356   : > { %v725_v24 = vsel %vm719_vm15, -inf, %v2227_v52  ;;  %v721_v62 = vsel %vm719_vm15, %v2227_v52, 0.0 }
 0x357   : > { %v729_v25 = vsel %vm627_vm1, %v725_v24, -inf }
 0x358   : > { %730 = vmax.xlane.f32.xlu2 %v729_v25 }
 0x3c3   : > { %v728_v26 = vpop.xlane.xlu1 %727 }
 0x3c4   : > { %vm732_vm2 = vcmp.ge.f32.partialorder %v724_v18, %v728_v26 }
 0x3c5   : > { %v734_v27 = vsel %vm732_vm2, %v2231_v55, 8 }
 0x3c6   : > { %v736_v28 = vsel %vm627_vm1, %v734_v27, 2147483647 }
 0x3c7   : > { %v738_v29 = vshra.s32 %v736_v28, 16  ;;  %v737_v36 = vand.u32 65535, %v736_v28 }
 0x3c9   : > { %v740_v30 = vcvt.s32.f32 %v738_v29  ;;  %v739_v38 = vcvt.s32.f32 %v737_v36 }
 0x3cb   : > { %741 = vmin.xlane.f32.xlu0 %v740_v30  ;;  %v731_v31 = vpop.xlane.xlu2 %730 }
 0x3cc   : > { %vm733_vm3 = vcmp.ge.f32.partialorder %v725_v24, %v731_v31 }
 0x3cd   : > { %v735_v32 = vsel %vm733_vm3, %v2231_v55, 8 }
 0x3ce   : > { %v751_v33 = vsel %vm627_vm1, %v735_v32, 2147483647 }
 0x3cf   : > { %v753_v34 = vshra.s32 %v751_v33, 16  ;;  %v752_v40 = vand.u32 65535, %v751_v33 }
 0x3d1   : > { %v755_v35 = vcvt.s32.f32 %v753_v34  ;;  %v754_v43 = vcvt.s32.f32 %v752_v40 }
 0x3d3   : > { %756 = vmin.xlane.f32.xlu1 %v755_v35 }
 0x43e   : > { %v742_v37 = vpop.xlane.xlu0 %741 }
 0x43f   : > { %vm743_vm4 = vcmp.eq.f32.partialorder %v740_v30, %v742_v37  ;;  %v748_v45 = vcvt.f32.s32 %v742_v37 }
 0x440   : > { %v744_v39 = vsel %vm743_vm4, %v739_v38, inf }
 0x441   : > { %745 = vmin.xlane.f32.xlu2 %v744_v39  ;;  %v749_v47 = vshll.u32 %v748_v45, 16  ;;  %v1700_v45 = vld [vmem:[%s2468_s6 + $0x8] sm:$0xff] }
 0x442   : > { %938 = vmatpush.bf16.msra.mxu2 %v1700_v45 }
 0x446   : > { %v757_v41 = vpop.xlane.xlu1 %756 }
 0x447   : > { %vm758_vm5 = vcmp.eq.f32.partialorder %v755_v35, %v757_v41  ;;  %v763_v50 = vcvt.f32.s32 %v757_v41  ;;  %v1698_v41 = vld [vmem:[%s2467_s5 + $0x8] sm:$0xff] }
 0x448   : > { %v759_v44 = vsel %vm758_vm5, %v754_v43, inf  ;;  %908 = vmatpush.bf16.msra.mxu1 %v1698_v41  ;;  %v1697_v43 = vld [vmem:[%s2467_s5] sm:$0xff] }
 0x449   : > { %760 = vmin.xlane.f32.xlu0 %v759_v44  ;;  %v764_v59 = vshll.u32 %v763_v50, 16  ;;  %v882_v44 = vpack.c.bf16 %v2213_v13, %v2208_v12 }
 0x44c   : > { %909 = vmatpush.bf16.msra.mxu1 %v1697_v43 }
 0x44f   : > { %1586 = vmatmul.msk.bf16.vlgmr.msra.gmra.mxu1 %vm595_vm0, %v882_v44 }
 0x4b4   : > { %v746_v46 = vpop.xlane.xlu2 %745 }
 0x4b5   : > { %v747_v48 = vcvt.f32.s32 %v746_v46  ;;  %v1699_v46 = vld [vmem:[%s2468_s6] sm:$0xff] }
 0x4b6   : > { %939 = vmatpush.bf16.msra.mxu2 %v1699_v46 }
 0x4b7   : > { %v750_v49 = vadd.s32 %v749_v47, %v747_v48 }
 0x4b9   : > { %vm766_vm6 = vcmp.eq.s32.totalorder %v2231_v55, %v750_v49  ;;  %1595 = vmatmul.msk.bf16.vlgmr.msra.gmra.mxu2 %vm595_vm0, %v882_v44  ;;  %v1701_v44 = vld [vmem:[%s2469_s7] sm:$0xff] }
 0x4ba   : > { %v772_v53 = vsel %vm766_vm6, -inf, %v724_v18  ;;  %v768_v54 = vsel %vm766_vm6, %v2223_v42, 0.0 }
 0x4bb   : > { %v774_v56 = vsel %vm627_vm1, %v772_v53, -inf  ;;  %v770_v57 = vadd.f32 %v768_v54, %v720_v51 }
 0x4bc   : > { %775 = vmax.xlane.f32.xlu1 %v774_v56  ;;  %v761_v58 = vpop.xlane.xlu0 %760 }
 0x4bd   : > { %v762_v60 = vcvt.f32.s32 %v761_v58 }
 0x4bf   : > { %v765_v61 = vadd.s32 %v764_v59, %v762_v60 }
 0x4c1   : > { %vm767_vm7 = vcmp.eq.s32.totalorder %v2231_v55, %v765_v61  ;;  %v1708_v61 = vld [vmem:[%s2469_s7 + $0x38] sm:$0xff] }
 0x4c2   : > { %v773_v63 = vsel %vm767_vm7, -inf, %v725_v24  ;;  %v769_v0 = vsel %vm767_vm7, %v2227_v52, 0.0  ;;  %1053 = vmatpush.bf16.msra.mxu3 %v1708_v61 }
 0x4c3   : > { %v777_v1 = vsel %vm627_vm1, %v773_v63, -inf  ;;  %v771_v2 = vadd.f32 %v769_v0, %v721_v62  ;;  %v1818_v0 = vld [vmem:[%s2470_s8] ss:$0 sm:$0xff] }
 0x4c4   : > { %778 = vmax.xlane.f32.xlu2 %v777_v1 }
 0x4cc   : > { %v2299_v59 = vpop.f32.mrf.mxu1 }
 0x4cd   : > { %v1596_v60 = vmul.f32 -1.442695, %v2299_v59 }
 0x4cf   : > { %1827 = vpow2.f32 %v1596_v60 }
 0x4d4   : > { %v2311_v1 = vpop.f32.mrf.mxu1 }
 0x52f   : > { %v776_v3 = vpop.xlane.xlu1 %775 }
 0x530   : > { %vm780_vm8 = vcmp.ge.f32.partialorder %v772_v53, %v776_v3  ;;  %v1597_v3 = vmul.f32 -1.442695, %v2311_v1 }
 0x531   : > { %v782_v4 = vsel %vm780_vm8, %v2231_v55, 8 }
 0x532   : > { %v784_v5 = vsel %vm627_vm1, %v782_v4, 2147483647  ;;  %v1071_v4 = vmul.f32 %v1818_v0, %v2208_v12  ;;  %1829 = vpow2.f32 %v1597_v3  ;;  %v1705_v12 = vld [vmem:[%s2469_s7 + $0x20] sm:$0xff] }
 0x533   : > { %v786_v6 = vshra.s32 %v784_v5, 16  ;;  %v785_v15 = vand.u32 65535, %v784_v5 }
 0x535   : > { %v788_v7 = vcvt.s32.f32 %v786_v6  ;;  %v787_v17 = vcvt.s32.f32 %v785_v15 }
 0x537   : > { %789 = vmin.xlane.f32.xlu0 %v788_v7  ;;  %v779_v8 = vpop.xlane.xlu2 %778 }
 0x538   : > { %vm781_vm9 = vcmp.ge.f32.partialorder %v773_v63, %v779_v8  ;;  %v1706_v8 = vld [vmem:[%s2469_s7 + $0x28] sm:$0xff] }
 0x539   : > { %v783_v9 = vsel %vm781_vm9, %v2231_v55, 8 }
 0x53a   : > { %v799_v10 = vsel %vm627_vm1, %v783_v9, 2147483647  ;;  %v1073_v9 = vsel %vm595_vm0, %v1071_v4, 0.0 }
 0x53b   : > { %v801_v11 = vshra.s32 %v799_v10, 16  ;;  %v800_v19 = vand.u32 65535, %v799_v10 }
 0x53d   : > { %v803_v14 = vcvt.s32.f32 %v801_v11  ;;  %v802_v21 = vcvt.s32.f32 %v800_v19 }
 0x53f   : > { %804 = vmin.xlane.f32.xlu1 %v803_v14 }
 0x5aa   : > { %v790_v16 = vpop.xlane.xlu0 %789 }
 0x5ab   : > { %vm791_vm10 = vcmp.eq.f32.partialorder %v788_v7, %v790_v16  ;;  %v796_v23 = vcvt.f32.s32 %v790_v16 }
 0x5ac   : > { %v792_v18 = vsel %vm791_vm10, %v787_v17, inf }
 0x5ad   : > { %793 = vmin.xlane.f32.xlu2 %v792_v18  ;;  %v797_v25 = vshll.u32 %v796_v23, 16 }
 0x5b2   : > { %v805_v20 = vpop.xlane.xlu1 %804 }
 0x5b3   : > { %vm806_vm11 = vcmp.eq.f32.partialorder %v803_v14, %v805_v20  ;;  %v811_v28 = vcvt.f32.s32 %v805_v20  ;;  %v1072_v14 = vmul.f32 %v1818_v0, %v2213_v13 }
 0x5b4   : > { %v807_v22 = vsel %vm806_vm11, %v802_v21, inf  ;;  %v1704_v21 = vld [vmem:[%s2469_s7 + $0x18] sm:$0xff] }
 0x5b5   : > { %808 = vmin.xlane.f32.xlu0 %v807_v22  ;;  %v812_v34 = vshll.u32 %v811_v28, 16  ;;  %v1076_v22 = vsel %vm595_vm0, %v1072_v14, 0.0 }
 0x620   : > { %v794_v24 = vpop.xlane.xlu2 %793 }
 0x621   : > { %v795_v26 = vcvt.f32.s32 %v794_v24 }
 0x623   : > { %v798_v27 = vadd.s32 %v797_v25, %v795_v26 }
 0x625   : > { %vm814_vm12 = vcmp.eq.s32.totalorder %v2231_v55, %v798_v27  ;;  %v1703_v27 = vld [vmem:[%s2469_s7 + $0x10] sm:$0xff] }
 0x626   : > { %v820_v29 = vsel %vm814_vm12, -inf, %v772_v53  ;;  %v816_v30 = vsel %vm814_vm12, %v2223_v42, 0.0  ;;  %vm868_vm12 = vcmask 31744  }
 0x627   : > { %v822_v31 = vsel %vm627_vm1, %v820_v29, -inf  ;;  %v2272_v32 = vadd.f32 %v816_v30, %v770_v57 }
 0x628   : > { %823 = vmax.xlane.f32.xlu1 %v822_v31  ;;  %v809_v33 = vpop.xlane.xlu0 %808 }
 0x629   : > { %v810_v35 = vcvt.f32.s32 %v809_v33  ;;  %v941_v33 = vpop.f32.mrf.mxu2 }
 0x62b   : > { %v813_v36 = vadd.s32 %v812_v34, %v810_v35 }
 0x62d   : > { %vm815_vm13 = vcmp.eq.s32.totalorder %v2231_v55, %v813_v36  ;;  %v1702_v36 = vld [vmem:[%s2469_s7 + $0x8] sm:$0xff] }
 0x62e   : > { %v821_v37 = vsel %vm815_vm13, -inf, %v773_v63  ;;  %v817_v38 = vsel %vm815_vm13, %v2227_v52, 0.0  ;;  %v1707_v63 = vld [vmem:[%s2469_s7 + $0x30] sm:$0xff] }
 0x62f   : > { %v825_v39 = vsel %vm627_vm1, %v821_v37, -inf  ;;  %v2277_v40 = vadd.f32 %v817_v38, %v771_v2  ;;  %v1828_v2 = vpop.eup %1827  ;;  %1054 = vmatpush.bf16.msra.mxu3 %v1707_v63 }
 0x630   : > { %826 = vmax.xlane.f32.xlu2 %v825_v39  ;;  %v952_v5 = vadd.f32 1.0, %v1828_v2  ;;  %v1830_v15 = vpop.eup %1829 }
 0x631   : > { %v953_v17 = vadd.f32 1.0, %v1830_v15 }
 0x632   : > { %1831 = vrcp.f32 %v952_v5  ;;  %vm959_vm3 = vweird.f32 %v952_v5  ;;  %v965_v13 = vand.u32 2147483648, %v952_v5  ;;  %v963_v26 = vand.u32 2147483647, %v952_v5 }
 0x633   : > { %1055 = vmatpush.bf16.msra.mxu3 %v1706_v8  ;;  %1833 = vrcp.f32 %v953_v17  ;;  %vm974_vm7 = vweird.f32 %v953_v17  ;;  %v978_v39 = vand.u32 2147483647, %v953_v17 }
 0x634   : > { %v966_v31 = vor.u32 1.1754944e-38, %v965_v13  ;;  %vm964_vm6 = vcmp.eq.f32.partialorder %v963_v26, 8.507059e+37 }
 0x635   : > { %vm979_vm10 = vcmp.eq.f32.partialorder %v978_v39, 8.507059e+37 }
 0x637   : > { %1056 = vmatpush.bf16.msra.mxu3 %v1705_v12 }
 0x638   : > { %v1832_v16 = vpop.eup %1831 }
 0x639   : > { %v955_v20 = vmul.f32 %v1832_v16, %v952_v5  ;;  %vm960_vm4 = vweird.f32 %v1832_v16  ;;  %v1834_v30 = vpop.eup %1833 }
 0x63a   : > { %vm2336_vm5 = vmor %vm959_vm3, %vm960_vm4  ;;  %v970_v35 = vmul.f32 %v1834_v30, %v953_v17  ;;  %vm975_vm8 = vweird.f32 %v1834_v30 }
 0x63b   : > { %v956_v24 = vsub.f32 1.0, %v955_v20  ;;  %1057 = vmatpush.bf16.msra.mxu3 %v1704_v21  ;;  %vm976_vm9 = vmor %vm974_vm7, %vm975_vm8 }
 0x63c   : > { %v971_v38 = vsub.f32 1.0, %v970_v35 }
 0x63d   : > { %v957_v25 = vmul.f32 %v1832_v16, %v956_v24 }
 0x63e   : > { %v972_v43 = vmul.f32 %v1834_v30, %v971_v38 }
 0x63f   : > { %1058 = vmatpush.bf16.msra.mxu3 %v1703_v27 }
 0x643   : > { %1059 = vmatpush.bf16.msra.mxu3 %v1702_v36 }
 0x647   : > { %1060 = vmatpush.bf16.msra.mxu3 %v1701_v44 }
 0x69b   : > { %v824_v47 = vpop.xlane.xlu1 %823 }
 0x69c   : > { %vm828_vm14 = vcmp.ge.f32.partialorder %v820_v29, %v824_v47  ;;  %v958_v29 = vadd.f32 %v1832_v16, %v957_v25  ;;  %v973_v47 = vadd.f32 %v1834_v30, %v972_v43 }
 0x69d   : > { %v830_v48 = vsel %vm828_vm14, %v2231_v55, 8 }
 0x69e   : > { %v832_v49 = vsel %vm627_vm1, %v830_v48, 2147483647  ;;  %v962_v34 = vsel %vm2336_vm5, %v1832_v16, %v958_v29  ;;  %v977_v48 = vsel %vm976_vm9, %v1834_v30, %v973_v47 }
 0x69f   : > { %v834_v50 = vshra.s32 %v832_v49, 16  ;;  %v833_v62 = vand.u32 65535, %v832_v49  ;;  %v967_v41 = vsel %vm964_vm6, %v966_v31, %v962_v34 }
 0x6a0   : > { %v984_v46 = vmul.f32 %v967_v41, %v2299_v59 }
 0x6a1   : > { %v836_v51 = vcvt.s32.f32 %v834_v50  ;;  %v835_v7 = vcvt.s32.f32 %v833_v62  ;;  %v943_v50 = vpop.f32.mrf.mxu2 }
 0x6a3   : > { %837 = vmin.xlane.f32.xlu0 %v836_v51  ;;  %v827_v53 = vpop.xlane.xlu2 %826 }
 0x6a4   : > { %vm829_vm15 = vcmp.ge.f32.partialorder %v821_v37, %v827_v53  ;;  %v980_v37 = vand.u32 2147483648, %v953_v17  ;;  %v986_v53 = vmul.f32 %v984_v46, %v941_v33 }
 0x6a5   : > { %v831_v54 = vsel %vm829_vm15, %v2231_v55, 8 }
 0x6a6   : > { %v847_v56 = vsel %vm627_vm1, %v831_v54, 2147483647  ;;  %v981_v45 = vor.u32 1.1754944e-38, %v980_v37 }
 0x6a7   : > { %v849_v57 = vshra.s32 %v847_v56, 16  ;;  %v848_v11 = vand.u32 65535, %v847_v56 }
 0x6a8   : > { %v982_v49 = vsel %vm979_vm10, %v981_v45, %v977_v48 }
 0x6a9   : > { %v851_v58 = vcvt.s32.f32 %v849_v57  ;;  %v850_v19 = vcvt.s32.f32 %v848_v11 }
 0x6ab   : > { %852 = vmin.xlane.f32.xlu1 %v851_v58 }
 0x6b3   : > { %1074 = vadd.xlane.f32.xlu1 %v1073_v9 }
 0x716   : > { %v2315_v6 = vpop.xlane.xlu0 %837 }
 0x717   : > { %vm839_vm1 = vcmp.eq.f32.partialorder %v836_v51, %v2315_v6  ;;  %v985_v51 = vmul.f32 %v982_v49, %v2311_v1  ;;  %v844_v57 = vcvt.f32.s32 %v2315_v6 }
 0x718   : > { %v840_v10 = vsel %vm839_vm1, %v835_v7, inf }
 0x719   : > { %841 = vmin.xlane.f32.xlu2 %v840_v10  ;;  %v987_v54 = vmul.f32 %v985_v51, %v943_v50  ;;  %v845_v62 = vshll.u32 %v844_v57, 16 }
 0x71b   : > { %v988_v56 = vpack.c.bf16 %v987_v54, %v986_v53 }
 0x71d   : > { %1061 = vmatmul.bf16.vlgmr.msra.gmra.mxu3 %v988_v56 }
 0x71e   : > { %v2326_v18 = vpop.xlane.xlu1 %852 }
 0x71f   : > { %vm854_vm2 = vcmp.eq.f32.partialorder %v851_v58, %v2326_v18  ;;  %v859_v0 = vcvt.f32.s32 %v2326_v18 }
 0x720   : > { %v855_v23 = vsel %vm854_vm2, %v850_v19, inf }
 0x721   : > { %856 = vmin.xlane.f32.xlu0 %v855_v23  ;;  %1077 = vadd.xlane.f32.xlu2 %v1076_v22  ;;  %v860_v6 = vshll.u32 %v859_v0, 16 }
 0x726   : > { %v1075_v58 = vpop.xlane.xlu1 %1074 }
 0x727   : > { %v1630_v60 = vmul.f32 -1.442695, %v1075_v58 }
 0x729   : > { %1835 = vpow2.f32 %v1630_v60 }
 0x72f   : > { %v1836_v3 = vpop.eup %1835 }
 0x730   : > { %v1085_v10 = vadd.f32 1.0, %v1836_v3 }
 0x732   : > { %vm1092_vm14 = vweird.f32 %v1085_v10 }
 0x78c   : > { %v842_v61 = vpop.xlane.xlu2 %841 }
 0x78d   : > { %v843_v63 = vcvt.f32.s32 %v842_v61 }
 0x78f   : > { %v846_v59 = vadd.s32 %v845_v62, %v843_v63 }
 0x791   : > { %vm862_vm11 = vcmp.eq.s32.totalorder %v2231_v55, %v846_v59 }
 0x792   : > { %v864_v2 = vsel %vm862_vm11, %v2223_v42, 0.0 }
 0x793   : > { %v866_v1 = vadd.f32 %v864_v2, %v2272_v32 }
 0x794   : > { %v857_v4 = vpop.xlane.xlu0 %856  ;;  %v1078_v5 = vpop.xlane.xlu2 %1077 }
 0x795   : > { %v858_v7 = vcvt.f32.s32 %v857_v4  ;;  %873 = vrot.lane.b32.xlu0 %v866_v1, %s1995_s3  ;;  %v1631_v8 = vmul.f32 -1.442695, %v1078_v5  ;;  %869 = vst.msk [vmem:[#allocation3] sm:$0xff] %vm868_vm12, %v866_v1 }
 0x797   : > { %v861_v9 = vadd.s32 %v860_v6, %v858_v7  ;;  %1837 = vpow2.f32 %v1631_v8 }
 0x798   : > { %1839 = vrcp.f32 %v1085_v10 }
 0x799   : > { %vm863_vm13 = vcmp.eq.s32.totalorder %v2231_v55, %v861_v9  ;;  %v1098_v55 = vand.u32 2147483648, %v1085_v10 }
 0x79a   : > { %v865_v42 = vsel %vm863_vm13, %v2227_v52, 0.0  ;;  %v1096_v52 = vand.u32 2147483647, %v1085_v10 }
 0x79b   : > { %v867_v11 = vadd.f32 %v865_v42, %v2277_v40  ;;  %v1099_v40 = vor.u32 1.1754944e-38, %v1098_v55 }
 0x79c   : > { %vm1097_vm2 = vcmp.eq.f32.partialorder %v1096_v52, 8.507059e+37 }
 0x79d   : > { %v1838_v32 = vpop.eup %1837  ;;  %875 = vrot.lane.b32.xlu1 %v867_v11, %s1995_s3  ;;  %870 = vst.msk [vmem:[#allocation3 + $0x8] sm:$0xff] %vm868_vm12, %v867_v11 }
 0x79e   : > { %v1086_v12 = vadd.f32 1.0, %v1838_v32  ;;  %v1840_v14 = vpop.eup %1839 }
 0x79f   : > { %v1088_v15 = vmul.f32 %v1840_v14, %v1085_v10  ;;  %vm1093_vm15 = vweird.f32 %v1840_v14 }
 0x7a0   : > { %1841 = vrcp.f32 %v1086_v12  ;;  %vm1094_vm1 = vmor %vm1092_vm14, %vm1093_vm15  ;;  %vm1107_vm3 = vweird.f32 %v1086_v12  ;;  %v1113_v13 = vand.u32 2147483648, %v1086_v12  ;;  %v1111_v26 = vand.u32 2147483647, %v1086_v12  ;;  %v1062_v27 = vpop.f32.mrf.mxu3 }
 0x7a1   : > { %v1089_v16 = vsub.f32 1.0, %v1088_v15 }
 0x7a2   : > { %v1114_v29 = vor.u32 1.1754944e-38, %v1113_v13  ;;  %vm1112_vm6 = vcmp.eq.f32.partialorder %v1111_v26, 8.507059e+37 }
 0x7a3   : > { %v1090_v18 = vmul.f32 %v1840_v14, %v1089_v16 }
 0x7a5   : > { %v1091_v20 = vadd.f32 %v1840_v14, %v1090_v18 }
 0x7a6   : > { %v1842_v17 = vpop.eup %1841 }
 0x7a7   : > { %v1103_v19 = vmul.f32 %v1842_v17, %v1086_v12  ;;  %v1095_v22 = vsel %vm1094_vm1, %v1840_v14, %v1091_v20  ;;  %vm1108_vm4 = vweird.f32 %v1842_v17 }
 0x7a8   : > { %v1100_v24 = vsel %vm1097_vm2, %v1099_v40, %v1095_v22  ;;  %vm1109_vm5 = vmor %vm1107_vm3, %vm1108_vm4  ;;  %v1064_v33 = vpop.f32.mrf.mxu3 }
 0x7a9   : > { %v1104_v21 = vsub.f32 1.0, %v1103_v19  ;;  %v1117_v28 = vmul.f32 %v1100_v24, %v1062_v27 }
 0x7ab   : > { %v1105_v23 = vmul.f32 %v1842_v17, %v1104_v21  ;;  %1119 = vst.msk [vmem:[#allocation2] sm:$0xff] %vm595_vm0, %v1117_v28 }
 0x7ad   : > { %v1106_v25 = vadd.f32 %v1842_v17, %v1105_v23 }
 0x7af   : > { %v1110_v30 = vsel %vm1109_vm5, %v1842_v17, %v1106_v25 }
 0x7b0   : > { %v1115_v31 = vsel %vm1112_vm6, %v1114_v29, %v1110_v30 }
 0x7b1   : > { %v1118_v34 = vmul.f32 %v1115_v31, %v1064_v33 }
 0x7b3   : > { %1120 = vst.msk [vmem:[#allocation2 + $0x8] sm:$0xff] %vm595_vm0, %v1118_v34 }
 0x807   : > { %v874_v35 = vpop.permute.xlu0 %873 }
 0x808   : > { %880 = vst.msk [vmem:[#allocation3 + $0x10] sm:$0xff] %vm868_vm12, %v874_v35 }
 0x80f   : > { %v876_v36 = vpop.permute.xlu1 %875 }
 0x810   : > { %881 = vst.msk [vmem:[#allocation3 + $0x18] sm:$0xff] %vm868_vm12, %v876_v36 }
 0x811 PF: > { %v1710_v37 = vld [vmem:[%s507_s21 + $0x8] sm:$0xff]  ;;  %vm1200_vm7 = vcmask 1043456   ;;  %v1709_v38 = vld [vmem:[%s507_s21] sm:$0xff]  ;;  %vm1193_vm0 = vcmask 31744   ;;  %s1189_s27 = scalar_lea.vmem [#allocation3], %s2174_s11  ;;  %vm1140_vm8 = vcmask 261120  }
 0x812   : > { %v1121_v39 = vld [vmem:[%s2181_s12] sm:$0xff]  ;;  %v1712_v41 = vld [vmem:[%s514_s19 + $0x8] sm:$0xff]  ;;  %1150 = vmatpush.bf16.msra.mxu0 %v1710_v37  ;;  %v1719_v50 = vld [vmem:[%s2186_s24 + $0x30] sm:$0xff]  ;;  %p1688_p6 = scmp.ne.s32.totalorder %s1977_s22, 1 }
 0x813   : > { %v1122_v43 = vld [vmem:[%s2181_s12 + $0x8] sm:$0xff]  ;;  %v1192_v44 = vld [vmem:[%s2471_s9] sm:$0xf]  ;;  %1180 = vmatpush.bf16.msra.mxu1 %v1712_v41  ;;  %v1720_v49 = vld [vmem:[%s2186_s24 + $0x38] sm:$0xff] }
 0x814   : > { %v1711_v46 = vld [vmem:[%s514_s19] sm:$0xff]  ;;  %1651 = vmatpush.msk.msra.mxu2 %vm1200_vm7, %v1192_v44  ;;  %v1123_v47 = vpack.c.bf16 %v1122_v43, %v1121_v39  ;;  %1338 = vmatpush.bf16.msra.mxu3 %v1720_v49  ;;  %v1718_v51 = vld [vmem:[%s2186_s24 + $0x28] sm:$0xff]  ;;  %v1716_v54 = vld [vmem:[%s2186_s24 + $0x18] sm:$0xff] }
 0x815   : > { %v1717_v53 = vld [vmem:[%s2186_s24 + $0x20] sm:$0xff]  ;;  %v1715_v57 = vld [vmem:[%s2186_s24 + $0x10] sm:$0xff]  ;;  %v1714_v60 = vld [vmem:[%s2186_s24 + $0x8] sm:$0xff] }
 0x816   : > { %1151 = vmatpush.bf16.msra.mxu0 %v1709_v38  ;;  %v1713_v62 = vld [vmem:[%s2186_s24] sm:$0xff]  ;;  %v1273_v33 = vld [vmem:[#allocation2 + $0x8] sm:$0xff] }
 0x817   : > { %v1190_v45 = vld [vmem:[%s1189_s27] sm:$0xff]  ;;  %1181 = vmatpush.bf16.msra.mxu1 %v1711_v46  ;;  %v1191_v48 = vld [vmem:[%s1189_s27 + $0x8] sm:$0xff] }
 0x818   : > { %1652 = vmatmul.msk.f32.vlgmr.msra.gmra.mxu2 %vm1193_vm0, %v1190_v45  ;;  %1339 = vmatpush.bf16.msra.mxu3 %v1719_v50  ;;  %v1272_v29 = vld [vmem:[#allocation2] sm:$0xff] }
 0x819   : > { %1640 = vmatmul.msk.bf16.vlgmr.msra.gmra.mxu0 %vm1140_vm8, %v1123_v47 }
 0x81a   : > { %1649 = vmatmul.msk.bf16.vlgmr.msra.gmra.mxu1 %vm1140_vm8, %v1123_v47 }
 0x81c   : > { %1340 = vmatpush.bf16.msra.mxu3 %v1718_v51 }
 0x820   : > { %1653 = vmatmul.msk.f32.gmra.mxu2 %vm1193_vm0, %v1191_v48  ;;  %1341 = vmatpush.bf16.msra.mxu3 %v1717_v53 }
 0x824   : > { %1342 = vmatpush.bf16.msra.mxu3 %v1716_v54 }
 0x828   : > { %1343 = vmatpush.bf16.msra.mxu3 %v1715_v57 }
 0x82c   : > { %1344 = vmatpush.bf16.msra.mxu3 %v1714_v60 }
 0x830   : > { %1345 = vmatpush.bf16.msra.mxu3 %v1713_v62 }
 0x896   : > { %v1153_v56 = vpop.f32.mrf.mxu0 }
 0x897   : > { %v1654_v58 = vmul.f32 -1.442695, %v1153_v56  ;;  %v1183_v12 = vpop.f32.mrf.mxu1 }
 0x899   : > { %1843 = vpow2.f32 %v1654_v58 }
 0x89b   : > { %v1221_v14 = vpop.f32.mrf.mxu2 }
 0x89e   : > { %v1155_v61 = vpop.f32.mrf.mxu0 }
 0x89f   : > { %v1844_v63 = vpop.eup %1843  ;;  %v1655_v59 = vmul.f32 -1.442695, %v1155_v61  ;;  %v1185_v24 = vpop.f32.mrf.mxu1 }
 0x8a0   : > { %v1233_v0 = vadd.f32 1.0, %v1844_v63 }
 0x8a1   : > { %1845 = vpow2.f32 %v1655_v59 }
 0x8a2   : > { %1847 = vrcp.f32 %v1233_v0  ;;  %v1246_v7 = vand.u32 2147483648, %v1233_v0  ;;  %vm1240_vm10 = vweird.f32 %v1233_v0  ;;  %v1244_v9 = vand.u32 2147483647, %v1233_v0 }
 0x8a3   : > { %v1224_v13 = vpop.f32.mrf.mxu2 }
 0x8a4   : > { %v1247_v32 = vor.u32 1.1754944e-38, %v1246_v7  ;;  %vm1245_vm12 = vcmp.eq.f32.partialorder %v1244_v9, 8.507059e+37 }
 0x8a7   : > { %v1846_v2 = vpop.eup %1845 }
 0x8a8   : > { %v1848_v1 = vpop.eup %1847  ;;  %v1234_v3 = vadd.f32 1.0, %v1846_v2 }
 0x8a9   : > { %v1236_v4 = vmul.f32 %v1848_v1, %v1233_v0  ;;  %vm1241_vm9 = vweird.f32 %v1848_v1 }
 0x8aa   : > { %1849 = vrcp.f32 %v1234_v3  ;;  %vm1242_vm11 = vmor %vm1240_vm10, %vm1241_vm9  ;;  %v1261_v17 = vand.u32 2147483648, %v1234_v3  ;;  %v1259_v19 = vand.u32 2147483647, %v1234_v3  ;;  %vm1255_vm14 = vweird.f32 %v1234_v3 }
 0x8ab   : > { %v1237_v5 = vsub.f32 1.0, %v1236_v4 }
 0x8ac   : > { %v1262_v52 = vor.u32 1.1754944e-38, %v1261_v17  ;;  %vm1260_vm1 = vcmp.eq.f32.partialorder %v1259_v19, 8.507059e+37 }
 0x8ad   : > { %v1238_v6 = vmul.f32 %v1848_v1, %v1237_v5 }
 0x8af   : > { %v1239_v8 = vadd.f32 %v1848_v1, %v1238_v6 }
 0x8b0   : > { %v1850_v10 = vpop.eup %1849 }
 0x8b1   : > { %v1243_v42 = vsel %vm1242_vm11, %v1848_v1, %v1239_v8  ;;  %v1251_v11 = vmul.f32 %v1850_v10, %v1234_v3  ;;  %vm1256_vm13 = vweird.f32 %v1850_v10 }
 0x8b2   : > { %v1248_v16 = vsel %vm1245_vm12, %v1247_v32, %v1243_v42  ;;  %vm1257_vm15 = vmor %vm1255_vm14, %vm1256_vm13 }
 0x8b3   : > { %v1252_v15 = vsub.f32 1.0, %v1251_v11  ;;  %v1265_v55 = vmul.f32 %v1248_v16, %v1153_v56 }
 0x8b5   : > { %v1253_v18 = vmul.f32 %v1850_v10, %v1252_v15  ;;  %v1267_v23 = vmul.f32 %v1265_v55, %v1183_v12 }
 0x8b7   : > { %v1254_v20 = vadd.f32 %v1850_v10, %v1253_v18  ;;  %v1269_v26 = vmul.f32 %v1267_v23, %v1221_v14 }
 0x8b9   : > { %v1258_v21 = vsel %vm1257_vm15, %v1850_v10, %v1254_v20 }
 0x8ba   : > { %v1263_v40 = vsel %vm1260_vm1, %v1262_v52, %v1258_v21 }
 0x8bb   : > { %v1266_v22 = vmul.f32 %v1263_v40, %v1155_v61 }
 0x8bd   : > { %v1268_v25 = vmul.f32 %v1266_v22, %v1185_v24 }
 0x8bf   : > { %v1270_v27 = vmul.f32 %v1268_v25, %v1224_v13 }
 0x8c1   : > { %v1271_v28 = vpack.c.bf16 %v1270_v27, %v1269_v26 }
 0x8c3   : > { %1346 = vmatmul.bf16.vlgmr.msra.gmra.mxu3 %v1271_v28 }
 0x946   : > { %v1347_v30 = vpop.f32.mrf.mxu3 }
 0x947   : > { %v1352_v31 = vadd.f32 %v1347_v30, %v1272_v29 }
 0x949   : > { %1354 = vst.msk [vmem:[#allocation2] sm:$0xff] %vm1140_vm8, %v1352_v31 }
 0x94d   : > { %1359 = sbr.rel (%p1688_p6) target bundleno = 2394 (0x95a), region = 150 }
 0x94e   : > { %v1349_v34 = vpop.f32.mrf.mxu3 }
 0x94f   : > { %v1353_v35 = vadd.f32 %v1349_v34, %v1273_v33 }
 0x951   : > { %1355 = vst.msk [vmem:[#allocation2 + $0x8] sm:$0xff] %vm1140_vm8, %v1353_v35 }
 0x952   : > { %v1360_v36 = vld [vmem:[#allocation2] sm:$0xff] }
 0x953   : > { %1362 = vst.msk [vmem:[%s2190_s18] sm:$0xff] %vm1140_vm8, %v1360_v36 }
 0x958   : > { %v1361_v37 = vld [vmem:[#allocation2 + $0x8] sm:$0xff] }
 0x959   : > { %1363 = vst.msk [vmem:[%s2190_s18 + $0x8] sm:$0xff] %vm1140_vm8, %v1361_v37 }
 0x95a PF: > { %s1721_s19 = sshll.u32 %s1981_s23, 4  ;;  %s2507_s16 = sld [smem:[#allocation25_spill]] }
 0x95b   : > { %s1382_s22 = sshll.u32 %s2190_s18, 4  ;;  %s1365_s17 = scalar_lea.sflag [#allocation7], %s2167_s29  ;;  %s1383_s22 = int_to_ptr.vmem [resolvable:$true] %s1382_s22 }
 0x960   : > { %s1381_s11 = scalar_lea.hbm %s2507_s16, %s1721_s19  ;;  %s1871_s23 = scalar_lea.hbm %s2507_s16, 32 }
 0x961   : > { %s1384_s12 = sshll.u32 %s1381_s11, 4  ;;  %s1385_s12 = int_to_ptr.hbm [resolvable:$true] %s1384_s12 }
 0x962   : > { %s1865_s20 = sshra.s32 %s1385_s12, 4  ;;  %s1866_s20 = int_to_ptr.hbm [resolvable:$true] %s1865_s20 }
 0x963   : > { %s1867_s14 = scalar_lea.hbm %s1866_s20, 16  ;;  %p1872_p11 = scmp.lt.s32.totalorder %s1866_s20, %s2507_s16 }
 0x964   : > { %p1868_p7 = scmp.ne.s32.totalorder %s1866_s20, %s1867_s14  ;;  %p1873_p13 = scmp.lt.s32.totalorder %s1871_s23, %s1867_s14 }
 0x966   : > { %p1869_p8 = pnand %p1868_p7, %p2137_p10  ;;  %p1874_p0 = por %p1873_p13, %p1872_p11 }
 0x968   : > { %p1870_p9 = pneg %p1869_p8 }
 0x96a   : > { %p1875_p1 = pnand %p1874_p0, %p1870_p9 }
 0x96c   : > { %1878 = shalt.err (!%p1875_p1)
}
 0x96d   : > { %s1996_s18 = smov 128   ;;  %s1997_s30 = smov 8  }
 0x96e   : > { %1723 = dma.vmem_to_hbm [thread:$0]  (%p2137_p10), %s1383_s22, 256, %s1385_s12, %s1365_s17, %s1996_s18, %s1996_s18, %s1997_s30  }
 0x96f   : > { %s2508_s21 = sld [smem:[#allocation26_spill]]  ;;  %s1399_s15 = sshll.u32 %s2192_s13, 4  ;;  %s1400_s15 = int_to_ptr.vmem [resolvable:$true] %s1399_s15 }
 0x970   : > { %s1370_s20 = scalar_lea.sflag [#allocation9], %s2167_s29 }
 0x975   : > { %s2509_s11 = smov %s2508_s21  ;;  %s1398_s24 = scalar_lea.hbm %s2508_s21, %s1721_s19 }
 0x976   : > { %s1401_s25 = sshll.u32 %s1398_s24, 4  ;;  %s1899_s22 = scalar_lea.hbm %s2509_s11, 32  ;;  %s1402_s25 = int_to_ptr.hbm [resolvable:$true] %s1401_s25 }
 0x977   : > { %s1893_s14 = sshra.s32 %s1402_s25, 4  ;;  %s1894_s14 = int_to_ptr.hbm [resolvable:$true] %s1893_s14 }
 0x978   : > { %s1895_s23 = scalar_lea.hbm %s1894_s14, 16  ;;  %p1900_p5 = scmp.lt.s32.totalorder %s1894_s14, %s2509_s11 }
 0x979   : > { %p1896_p2 = scmp.ne.s32.totalorder %s1894_s14, %s1895_s23  ;;  %p1901_p6 = scmp.lt.s32.totalorder %s1899_s22, %s1895_s23 }
 0x97b   : > { %p1897_p3 = pnand %p1896_p2, %p2137_p10  ;;  %p1902_p7 = por %p1901_p6, %p1900_p5 }
 0x97d   : > { %p1898_p4 = pneg %p1897_p3 }
 0x97f   : > { %p1903_p8 = pnand %p1902_p7, %p1898_p4 }
 0x981   : > { %1906 = shalt.err (!%p1903_p8)
}
 0x982   : > { %1724 = dma.vmem_to_hbm [thread:$0]  (%p2137_p10), %s1400_s15, 256, %s1402_s25, %s1370_s20, %s1996_s18, %s1996_s18, %s1997_s30  }
 0x983 PF: > { %s2510_s13 = sld [smem:[#allocation12_spill]]  ;;  %p1734_p9 = scmp.ge.s32.totalorder %s1993_s26, 2 }
 0x985   : > { %p1728_p11 = pnand %p1734_p9, %p2144_p12 }
 0x987   : > { %p1729_p13 = pneg %p1728_p11 }
 0x989   : > { %s1416_s19 = sand.u32 1, %s2510_s13  }
 0x98a   : > { %s1417_s28 = scalar_lea.sflag [#allocation7], %s1416_s19 }
 0x98b   : > { %1948 = dma.done.wait (%p1729_p13), %s1417_s28, 256  }
 0x98c   : > { %1950 = vsyncadd (%p1729_p13), %s1417_s28, 4294967040  ;;  %s1427_s27 = scalar_lea.sflag [#allocation9], %s1416_s19 }
 0x98d   : > { %1952 = dma.done.wait (%p1729_p13), %s1427_s27, 256  }
 0x98e   : > { %1954 = vsyncadd (%p1729_p13), %s1427_s27, 4294967040  ;;  %s28_s26 = sadd.s32 1, %s1993_s26   ;;  %s2512_s17 = sld [smem:[#allocation13_spill]] }
 0x98f   : > { %p25_p0 = scmp.ge.s32.totalorder %s28_s26, 6   ;;  %s2513_s18 = sld [smem:[#allocation14_spill]] }
 0x990   : > { %s2514_s19 = sld [smem:[#allocation21_spill]] }
 0x991   : > { %s2515_s20 = sld [smem:[#allocation15_spill]] }
 0x992   : > { %s2516_s21 = sld [smem:[#allocation20_spill]]  ;;  %27 = sbr.rel (!%p25_p0) target bundleno = 13 (0xd), region = 223 }
 0x993   : > { %s2517_s22 = sld [smem:[#allocation16_spill]] }
 0x994   : > { %s2518_s23 = sld [smem:[#allocation17_spill]] }
 0x995   : > { %s2519_s24 = sld [smem:[#allocation18_spill]] }
 0x996   : > { %s2520_s25 = sld [smem:[#allocation19_spill]] }
 0x997   :  { %1433 = vsyncpa [#allocation7], 1 }
 0x998   :  { %1435 = vsyncpa [#allocation7 + $0x1], 1 }
 0x999   :  { %1436 = vsyncpa [#allocation9], 1 }
 0x99a   :  { %1438 = vsyncpa [#allocation9 + $0x1], 1 }

// kernel: tpu_custom_call.1
= control target key start
LH: loop header
LB: loop body
LE: loop exit
PB: predicated region body
PF: predicated region fallthrough
CT: control target
= control target key end

     0   :  { %s2462_s0 = inlined_call_operand.vmem [shape: f32[32,32], index: 0, kind: input, shape index: {}]   ;;  %s2463_s1 = inlined_call_operand.vmem [shape: f32[32,128], index: 1, kind: input, shape index: {}]   ;;  %s2464_s2 = inlined_call_operand.vmem [shape: bf16[32,256], index: 2, kind: input, shape index: {}]   ;;  %s2465_s3 = inlined_call_operand.vmem [shape: bf16[32,256], index: 3, kind: input, shape index: {}]   ;;  %s2466_s4 = inlined_call_operand.vmem [shape: bf16[256,32], index: 4, kind: input, shape index: {}]   ;;  %s2467_s5 = inlined_call_operand.vmem [shape: bf16[32,128], index: 5, kind: input, shape index: {}]   ;;  %s2468_s6 = inlined_call_operand.vmem [shape: bf16[32,128], index: 6, kind: input, shape index: {}]   ;;  %s2469_s7 = inlined_call_operand.vmem [shape: bf16[128,32], index: 7, kind: input, shape index: {}]   ;;  %s2470_s8 = inlined_call_operand.vmem [shape: f32[1,32], index: 8, kind: input, shape index: {}]   ;;  %s2471_s9 = inlined_call_operand.vmem [shape: f32[4,128], index: 9, kind: input, shape index: {}]   ;;  %s2472_s10 = inlined_call_operand.hbm [shape: f32[32,32], index: 10, kind: output, shape index: {0}]   ;;  %s2473_s11 = inlined_call_operand.hbm [shape: f32[32,128], index: 11, kind: output, shape index: {1}]  }
   0x1   :  { %2485 = sst [smem:[#allocation23_spill]] %s2464_s2 }
   0x2   :  { %2486 = sst [smem:[#allocation24_spill]] %s2465_s3 }
   0x3   :  { %2487 = sst [smem:[#allocation25_spill]] %s2472_s10 }
   0x4   :  { %2488 = sst [smem:[#allocation26_spill]] %s2473_s11 }
   0x5   :  { %17 = vsyncpa [#allocation7], 0 }
   0x6   :  { %19 = vsyncpa [#allocation7 + $0x1], 0 }
   0x7   :  { %20 = vsyncpa [#allocation9], 0 }
   0x8   :  { %22 = vsyncpa [#allocation9 + $0x1], 0  ;;  %s2058_s17 = smov 0   ;;  %s2060_s18 = smov 0  }
   0x9   :  { %s2062_s19 = smov 0   ;;  %s2064_s20 = smov 0  }
   0xa   :  { %s2066_s21 = smov 0   ;;  %s2068_s22 = smov 0  }
   0xb   :  { %s2070_s23 = smov 0   ;;  %s2072_s24 = smov 0  }
   0xc   :  { %s2074_s25 = smov 0   ;;  %s2076_s26 = smov 0  }
   0xd LB: > { %2489 = sst [smem:[#allocation12_spill]] %s1957_s17  ;;  %s1558_s27 = sadd.s32 4294967295, %s1993_s26   ;;  %s1993_s26 = sphi %s2076_s26, %s28_s26   ;;  %s1989_s25 = sphi %s2074_s25, %s2520_s25   ;;  %s1985_s24 = sphi %s2072_s24, %s2519_s24   ;;  %s1981_s23 = sphi %s2070_s23, %s2518_s23   ;;  %s1977_s22 = sphi %s2068_s22, %s2517_s22   ;;  %s1973_s21 = sphi %s2066_s21, %s2516_s21   ;;  %s1969_s20 = sphi %s2064_s20, %s2515_s20   ;;  %s1965_s19 = sphi %s2062_s19, %s2514_s19   ;;  %s1961_s18 = sphi %s2060_s18, %s2513_s18   ;;  %s1957_s17 = sphi %s2058_s17, %s2512_s17  }
   0xe   : > { %2490 = sst [smem:[#allocation13_spill]] %s1961_s18  ;;  %s1559_s28 = sadd.s32 4294967294, %s1993_s26  }
   0xf   : > { %2491 = sst [smem:[#allocation14_spill]] %s1965_s19  ;;  %s37_s29 = sadd.s32 1, %s1985_s24 }
  0x10   : > { %2492 = sst [smem:[#allocation15_spill]] %s1973_s21  ;;  %s40_s30 = sadd.s32 1, %s1989_s25 }
  0x11   : > { %2493 = sst [smem:[#allocation16_spill]] %s1985_s24  ;;  %p38_p0 = scmp.ge.s32.totalorder %s37_s29, 2 }
  0x12   : > { %2494 = sst [smem:[#allocation17_spill]] %s1989_s25  ;;  %s94_s12 = sadd.s32 1, %s1973_s21 }
  0x13   : > { %p101_p1 = scmp.ne.s32.totalorder %s1973_s21, %s1969_s20  ;;  %p102_p2 = scmp.eq.s32.totalorder %s1993_s26, 0 }
  0x14   : > { %s2522_s29 = smov (%p38_p0, %s37_s29), 0  ;;  %s2524_s30 = smov (!%p38_p0, %s40_s30), %s1989_s25 }
  0x15   : > { %2495 = sst [smem:[#allocation18_spill]] %s2522_s29  ;;  %s91_s13 = ssub.s32 %s1985_s24, %s2522_s29 }
  0x16   : > { %p2121_p3 = por %p102_p2, %p101_p1  ;;  %p42_p4 = scmp.ge.s32.totalorder %s2524_s30, 2 }
  0x17   : > { %p92_p5 = scmp.eq.s32.totalorder %s91_s13, 0  ;;  %s277_s15 = sadd.s32 1, %s1965_s19 }
  0x18   : > { %p287_p6 = scmp.ne.s32.totalorder %s1965_s19, %s1961_s18  ;;  %s2526_s30 = smov (%p42_p4, %s2524_s30), 0 }
  0x19   : > { %2497 = sst [smem:[#allocation19_spill]] %s2526_s30  ;;  %s274_s11 = ssub.s32 %s1989_s25, %s2526_s30 }
  0x1a   : > { %s2131_s16 = scalar_select %p92_p5, %s1973_s21, %s94_s12  }
  0x1b   : > { %p288_p7 = scmp.eq.s32.totalorder %s1558_s27, 3  ;;  %p275_p8 = scmp.eq.s32.totalorder %s274_s11, 0 }
  0x1c   : > { %2498 = sst [smem:[#allocation20_spill]] %s2131_s16  ;;  %p293_p9 = scmp.ne.s32.totalorder %s1961_s18, %s1957_s17 }
  0x1d   : > { %p2137_p10 = por %p288_p7, %p287_p6  ;;  %p294_p11 = scmp.eq.s32.totalorder %s1559_s28, 3 }
  0x1e   : > { %s2142_s29 = scalar_select %p275_p8, %s1965_s19, %s277_s15  }
  0x1f   : > { %p2144_p12 = por %p294_p11, %p293_p9  ;;  %p1561_p13 = scmp.ge.s32.totalorder %s1993_s26, 4 }
  0x20   : > { %2500 = sst [smem:[#allocation21_spill]] %s2142_s29 }
  0x21   : > { %s2501_s13 = scalar_select %p2144_p12, 1, 0 }
  0x22   : > { %354 = sbr.rel (%p1561_p13) target bundleno = 67 (0x43), region = 40 }
  0x23   : > { %2502 = sst [smem:[#allocation22_spill]] %s2501_s13 }
  0x27   : > { %366 = sbr.rel (!%p2121_p3) target bundleno = 53 (0x35), region = 48  ;;  %s368_s11 = sand.u32 (%p2121_p3), 1, %s1973_s21  }
  0x28   : > { %s1563_s27 = sshll.u32 (%p2121_p3), %s1985_s24, 2  ;;  %s1562_s12 = sshll.u32 (%p2121_p3), %s368_s11, 4 }
  0x29   : > { %s2503_s2 = sld [smem:[#allocation23_spill]] (%p2121_p3)  ;;  %s370_s15 = scalar_lea.vmem (%p2121_p3), [#allocation4], %s1562_s12 }
  0x2f   : > { %s372_s28 = scalar_lea.vmem %s2503_s2, %s1563_s27 }
  0x30   : > { %v389_v0 = vld [vmem:[%s372_s28] sm:$0xf]  ;;  %v391_v1 = vld [vmem:[%s372_s28 + $0x8] sm:$0xf]  ;;  %v393_v2 = vld [vmem:[%s372_s28 + $0x10] sm:$0xf] }
  0x31   : > { %390 = vst [vmem:[%s370_s15] sm:$0xf] %v389_v0  ;;  %v395_v3 = vld [vmem:[%s372_s28 + $0x18] sm:$0xf] }
  0x32   : > { %392 = vst [vmem:[%s370_s15 + $0x4] sm:$0xf] %v391_v1 }
  0x33   : > { %394 = vst [vmem:[%s370_s15 + $0x8] sm:$0xf] %v393_v2 }
  0x34   : > { %396 = vst [vmem:[%s370_s15 + $0xc] sm:$0xf] %v395_v3 }
  0x35 PF: > { %428 = sbr.rel (!%p2121_p3) target bundleno = 67 (0x43), region = 89  ;;  %s430_s11 = sand.u32 (%p2121_p3), 1, %s1973_s21  }
  0x36   : > { %s1565_s16 = sshll.u32 (%p2121_p3), %s1985_s24, 2  ;;  %s1564_s29 = sshll.u32 (%p2121_p3), %s430_s11, 4 }
  0x37   : > { %s2504_s3 = sld [smem:[#allocation24_spill]] (%p2121_p3)  ;;  %s432_s12 = scalar_lea.vmem (%p2121_p3), [#allocation5], %s1564_s29 }
  0x3d   : > { %s434_s27 = scalar_lea.vmem %s2504_s3, %s1565_s16 }
  0x3e   : > { %v451_v4 = vld [vmem:[%s434_s27] sm:$0xf]  ;;  %v453_v5 = vld [vmem:[%s434_s27 + $0x8] sm:$0xf]  ;;  %v455_v6 = vld [vmem:[%s434_s27 + $0x10] sm:$0xf] }
  0x3f   : > { %452 = vst [vmem:[%s432_s12] sm:$0xf] %v451_v4  ;;  %v457_v7 = vld [vmem:[%s434_s27 + $0x18] sm:$0xf] }
  0x40   : > { %454 = vst [vmem:[%s432_s12 + $0x4] sm:$0xf] %v453_v5 }
  0x41   : > { %456 = vst [vmem:[%s432_s12 + $0x8] sm:$0xf] %v455_v6 }
  0x42   : > { %458 = vst [vmem:[%s432_s12 + $0xc] sm:$0xf] %v457_v7 }
  0x43 PF: > { %p1566_p0 = scmp.ge.s32.totalorder %s1993_s26, 1  ;;  %p498_p1 = scmp.lt.s32.totalorder %s1993_s26, 5 }
  0x45   : > { %p499_p2 = pnand %p1566_p0, %p498_p1 }
  0x46   : > { %s505_s14 = sand.u32 (!%p499_p2), 1, %s1969_s20   ;;  %s2167_s29 = sand.u32 (!%p499_p2), 1, %s1961_s18  }
  0x47   : > { %502 = sbr.rel (%p499_p2) target bundleno = 2435 (0x983), region = 134  ;;  %s2169_s16 = sshll.u32 (!%p499_p2), %s505_s14, 4 }
  0x48   : > { %s1569_s28 = sshll.u32 (!%p499_p2), %s2167_s29, 4  ;;  %s1571_s15 = sshll.u32 (!%p499_p2), %s1981_s23, 1 }
  0x49   : > { %s2174_s11 = sshll.u32 (!%p499_p2), %s1977_s22, 4  ;;  %p571_p3 = scmp.lt.s32.totalorder (!%p499_p2), %s1571_s15, 3 }
  0x4a   : > { %p577_p4 = scmp.lt.s32.totalorder (!%p499_p2), %s2174_s11, 31  ;;  %s507_s21 = scalar_lea.vmem (!%p499_p2), [#allocation4], %s2169_s16 }
  0x4b   : > { %s514_s19 = scalar_lea.vmem (!%p499_p2), [#allocation5], %s2169_s16  ;;  %s2190_s18 = scalar_lea.vmem (!%p499_p2), [#allocation6], %s1569_s28 }
  0x4c   : > { %s2528_s15 = smov (!%p571_p3, %s1571_s15), 3  ;;  %s2192_s13 = scalar_lea.vmem [#allocation8], %s1569_s28 }
  0x4d   : > { %s578_s25 = scalar_select %p577_p4, %s2174_s11, 31 }
  0x4e   : > { %s1572_s30 = sshll.u32 %s2528_s15, 3  ;;  %p1575_p5 = scmp.ne.s32.totalorder %s1977_s22, 0 }
  0x4f   : > { %s2181_s12 = scalar_lea.vmem %s2462_s0, %s1572_s30  ;;  %s1574_s14 = sshll.u32 %s578_s25, 2 }
  0x50   : > { %s2186_s24 = scalar_lea.vmem %s2466_s4, %s1574_s14  ;;  %588 = sbr.rel (%p1575_p5) target bundleno = 2065 (0x811), region = 146 }
  0x51   : > { %s1995_s3 = smov (!%p1575_p5), 124  }
  0x55   : > { %v594_v8 = vld [vmem:[%s2463_s1 + $0x18] sm:$0xff]  ;;  %v593_v9 = vld [vmem:[%s2463_s1 + $0x10] sm:$0xff]  ;;  %v592_v10 = vld [vmem:[%s2463_s1 + $0x8] sm:$0xff]  ;;  %vm595_vm0 = vcmask 261120   ;;  %vm627_vm1 = vcmask 64512   ;;  %v676_v54 = vlaneseq }
  0x56   : > { %614 = vmatpush.msra.mxu0 %v594_v8  ;;  %v591_v11 = vld [vmem:[%s2463_s1] sm:$0xff]  ;;  %v2213_v13 = vld [vmem:[%s2181_s12 + $0x8] sm:$0xff] }
  0x57   : > { %v2208_v12 = vld [vmem:[%s2181_s12] sm:$0xff]  ;;  %v2231_v55 = vand.u32 127, %v676_v54 }
  0x58   : > { %615 = vmatpush.msra.mxu0 %v593_v9 }
  0x5a   : > { %616 = vmatpush.msra.mxu0 %v592_v10 }
  0x5c   : > { %617 = vmatpush.msra.mxu0 %v591_v11 }
  0x5d   : > { %1576 = vmatmul.msk.f32.vlgmr.msra.gmra.mxu0 %vm595_vm0, %v2208_v12 }
  0x65   : > { %1577 = vmatmul.msk.f32.gmra.mxu0 %vm595_vm0, %v2213_v13 }
  0xda   : > { %v619_v14 = vpop.f32.mrf.mxu0 }
  0xdb   : > { %625 = vst [vmem:[%s2192_s13] sm:$0xff] %v619_v14  ;;  %v628_v15 = vsel %vm627_vm1, %v619_v14, -inf }
  0xdc   : > { %629 = vmax.xlane.f32.xlu0 %v628_v15 }
  0xe2   : > { %v622_v16 = vpop.f32.mrf.mxu0 }
  0xe3   : > { %626 = vst [vmem:[%s2192_s13 + $0x8] sm:$0xff] %v622_v16  ;;  %v631_v17 = vsel %vm627_vm1, %v622_v16, -inf }
  0xe4   : > { %632 = vmax.xlane.f32.xlu0 %v631_v17 }
 0x14f   : > { %v630_v18 = vpop.xlane.xlu0 %629 }
 0x150   : > { %v634_v19 = vsub.f32 %v619_v14, %v630_v18 }
 0x152   : > { %v636_v20 = vmul.f32 1.442695, %v634_v19 }
 0x154   : > { %1819 = vpow2.f32 %v636_v20 }
 0x157   : > { %v633_v21 = vpop.xlane.xlu0 %632 }
 0x158   : > { %v635_v22 = vsub.f32 %v622_v16, %v633_v21 }
 0x15a   : > { %v1820_v23 = vpop.eup %1819  ;;  %v638_v24 = vmul.f32 1.442695, %v635_v22 }
 0x15b   : > { %v640_v25 = vsel %vm627_vm1, %v1820_v23, 0.0 }
 0x15c   : > { %1821 = vpow2.f32 %v638_v24  ;;  %641 = vadd.xlane.f32.xlu1 %v640_v25 }
 0x162   : > { %v1822_v26 = vpop.eup %1821 }
 0x163   : > { %v643_v27 = vsel %vm627_vm1, %v1822_v26, 0.0 }
 0x164   : > { %644 = vadd.xlane.f32.xlu1 %v643_v27 }
 0x1cf   : > { %v642_v28 = vpop.xlane.xlu1 %641 }
 0x1d0   : > { %1823 = vrcp.f32 %v642_v28  ;;  %v657_v33 = vand.u32 2147483648, %v642_v28  ;;  %v655_v35 = vand.u32 2147483647, %v642_v28  ;;  %vm651_vm3 = vweird.f32 %v642_v28 }
 0x1d2   : > { %v658_v38 = vor.u32 1.1754944e-38, %v657_v33  ;;  %vm656_vm5 = vcmp.eq.f32.partialorder %v655_v35, 8.507059e+37 }
 0x1d6   : > { %v1824_v29 = vpop.eup %1823 }
 0x1d7   : > { %v647_v30 = vmul.f32 %v1824_v29, %v642_v28  ;;  %v645_v31 = vpop.xlane.xlu1 %644  ;;  %vm652_vm2 = vweird.f32 %v1824_v29 }
 0x1d8   : > { %1825 = vrcp.f32 %v645_v31  ;;  %vm653_vm4 = vmor %vm651_vm3, %vm652_vm2  ;;  %v672_v44 = vand.u32 2147483648, %v645_v31  ;;  %v670_v46 = vand.u32 2147483647, %v645_v31  ;;  %vm666_vm7 = vweird.f32 %v645_v31 }
 0x1d9   : > { %v648_v32 = vsub.f32 1.0, %v647_v30 }
 0x1da   : > { %v673_v49 = vor.u32 1.1754944e-38, %v672_v44  ;;  %vm671_vm9 = vcmp.eq.f32.partialorder %v670_v46, 8.507059e+37 }
 0x1db   : > { %v649_v34 = vmul.f32 %v1824_v29, %v648_v32 }
 0x1dd   : > { %v650_v36 = vadd.f32 %v1824_v29, %v649_v34 }
 0x1de   : > { %v1826_v37 = vpop.eup %1825 }
 0x1df   : > { %v654_v39 = vsel %vm653_vm4, %v1824_v29, %v650_v36  ;;  %v662_v40 = vmul.f32 %v1826_v37, %v645_v31  ;;  %vm667_vm6 = vweird.f32 %v1826_v37 }
 0x1e0   : > { %v659_v41 = vsel %vm656_vm5, %v658_v38, %v654_v39  ;;  %vm668_vm8 = vmor %vm666_vm7, %vm667_vm6 }
 0x1e1   : > { %v2223_v42 = vmul.f32 %v1820_v23, %v659_v41  ;;  %v663_v43 = vsub.f32 1.0, %v662_v40 }
 0x1e3   : > { %v664_v45 = vmul.f32 %v1826_v37, %v663_v43  ;;  %v678_v47 = vsel %vm627_vm1, %v2223_v42, -inf }
 0x1e4   : > { %679 = vmax.xlane.f32.xlu2 %v678_v47 }
 0x1e5   : > { %v665_v48 = vadd.f32 %v1826_v37, %v664_v45 }
 0x1e7   : > { %v669_v50 = vsel %vm668_vm8, %v1826_v37, %v665_v48 }
 0x1e8   : > { %v674_v51 = vsel %vm671_vm9, %v673_v49, %v669_v50 }
 0x1e9   : > { %v2227_v52 = vmul.f32 %v1822_v26, %v674_v51 }
 0x1eb   : > { %v681_v53 = vsel %vm627_vm1, %v2227_v52, -inf }
 0x1ec   : > { %682 = vmax.xlane.f32.xlu2 %v681_v53 }
 0x257   : > { %v680_v56 = vpop.xlane.xlu2 %679 }
 0x258   : > { %vm684_vm10 = vcmp.ge.f32.partialorder %v2223_v42, %v680_v56 }
 0x259   : > { %v686_v57 = vsel %vm684_vm10, %v2231_v55, 8 }
 0x25a   : > { %v688_v58 = vsel %vm627_vm1, %v686_v57, 2147483647 }
 0x25b   : > { %v690_v59 = vshra.s32 %v688_v58, 16  ;;  %v689_v2 = vand.u32 65535, %v688_v58 }
 0x25d   : > { %v692_v60 = vcvt.s32.f32 %v690_v59  ;;  %v691_v4 = vcvt.s32.f32 %v689_v2 }
 0x25f   : > { %693 = vmin.xlane.f32.xlu0 %v692_v60  ;;  %v683_v61 = vpop.xlane.xlu2 %682 }
 0x260   : > { %vm685_vm11 = vcmp.ge.f32.partialorder %v2227_v52, %v683_v61 }
 0x261   : > { %v687_v62 = vsel %vm685_vm11, %v2231_v55, 8 }
 0x262   : > { %v703_v63 = vsel %vm627_vm1, %v687_v62, 2147483647 }
 0x263   : > { %v705_v0 = vshra.s32 %v703_v63, 16  ;;  %v704_v6 = vand.u32 65535, %v703_v63 }
 0x265   : > { %v707_v1 = vcvt.s32.f32 %v705_v0  ;;  %v706_v8 = vcvt.s32.f32 %v704_v6 }
 0x267   : > { %708 = vmin.xlane.f32.xlu1 %v707_v1 }
 0x2d2   : > { %v694_v3 = vpop.xlane.xlu0 %693 }
 0x2d3   : > { %vm695_vm12 = vcmp.eq.f32.partialorder %v692_v60, %v694_v3  ;;  %v700_v10 = vcvt.f32.s32 %v694_v3 }
 0x2d4   : > { %v696_v5 = vsel %vm695_vm12, %v691_v4, inf }
 0x2d5   : > { %697 = vmin.xlane.f32.xlu2 %v696_v5  ;;  %v701_v14 = vshll.u32 %v700_v10, 16 }
 0x2da   : > { %v709_v7 = vpop.xlane.xlu1 %708 }
 0x2db   : > { %vm710_vm13 = vcmp.eq.f32.partialorder %v707_v1, %v709_v7  ;;  %v715_v17 = vcvt.f32.s32 %v709_v7 }
 0x2dc   : > { %v711_v9 = vsel %vm710_vm13, %v706_v8, inf }
 0x2dd   : > { %712 = vmin.xlane.f32.xlu0 %v711_v9  ;;  %v716_v21 = vshll.u32 %v715_v17, 16 }
 0x348   : > { %v698_v11 = vpop.xlane.xlu2 %697 }
 0x349   : > { %v699_v15 = vcvt.f32.s32 %v698_v11 }
 0x34b   : > { %v702_v16 = vadd.s32 %v701_v14, %v699_v15 }
 0x34d   : > { %vm718_vm14 = vcmp.eq.s32.totalorder %v2231_v55, %v702_v16 }
 0x34e   : > { %v724_v18 = vsel %vm718_vm14, -inf, %v2223_v42  ;;  %v720_v51 = vsel %vm718_vm14, %v2223_v42, 0.0 }
 0x34f   : > { %v726_v19 = vsel %vm627_vm1, %v724_v18, -inf }
 0x350   : > { %727 = vmax.xlane.f32.xlu1 %v726_v19  ;;  %v713_v20 = vpop.xlane.xlu0 %712 }
 0x351   : > { %v714_v22 = vcvt.f32.s32 %v713_v20 }
 0x353   : > { %v717_v23 = vadd.s32 %v716_v21, %v714_v22 }
 0x355   : > { %vm719_vm15 = vcmp.eq.s32.totalorder %v2231_v55, %v717_v23 }
 0x356   : > { %v725_v24 = vsel %vm719_vm15, -inf, %v2227_v52  ;;  %v721_v62 = vsel %vm719_vm15, %v2227_v52, 0.0 }
 0x357   : > { %v729_v25 = vsel %vm627_vm1, %v725_v24, -inf }
 0x358   : > { %730 = vmax.xlane.f32.xlu2 %v729_v25 }
 0x3c3   : > { %v728_v26 = vpop.xlane.xlu1 %727 }
 0x3c4   : > { %vm732_vm2 = vcmp.ge.f32.partialorder %v724_v18, %v728_v26 }
 0x3c5   : > { %v734_v27 = vsel %vm732_vm2, %v2231_v55, 8 }
 0x3c6   : > { %v736_v28 = vsel %vm627_vm1, %v734_v27, 2147483647 }
 0x3c7   : > { %v738_v29 = vshra.s32 %v736_v28, 16  ;;  %v737_v36 = vand.u32 65535, %v736_v28 }
 0x3c9   : > { %v740_v30 = vcvt.s32.f32 %v738_v29  ;;  %v739_v38 = vcvt.s32.f32 %v737_v36 }
 0x3cb   : > { %741 = vmin.xlane.f32.xlu0 %v740_v30  ;;  %v731_v31 = vpop.xlane.xlu2 %730 }
 0x3cc   : > { %vm733_vm3 = vcmp.ge.f32.partialorder %v725_v24, %v731_v31 }
 0x3cd   : > { %v735_v32 = vsel %vm733_vm3, %v2231_v55, 8 }
 0x3ce   : > { %v751_v33 = vsel %vm627_vm1, %v735_v32, 2147483647 }
 0x3cf   : > { %v753_v34 = vshra.s32 %v751_v33, 16  ;;  %v752_v40 = vand.u32 65535, %v751_v33 }
 0x3d1   : > { %v755_v35 = vcvt.s32.f32 %v753_v34  ;;  %v754_v43 = vcvt.s32.f32 %v752_v40 }
 0x3d3   : > { %756 = vmin.xlane.f32.xlu1 %v755_v35 }
 0x43e   : > { %v742_v37 = vpop.xlane.xlu0 %741 }
 0x43f   : > { %vm743_vm4 = vcmp.eq.f32.partialorder %v740_v30, %v742_v37  ;;  %v748_v45 = vcvt.f32.s32 %v742_v37 }
 0x440   : > { %v744_v39 = vsel %vm743_vm4, %v739_v38, inf }
 0x441   : > { %745 = vmin.xlane.f32.xlu2 %v744_v39  ;;  %v749_v47 = vshll.u32 %v748_v45, 16  ;;  %v1700_v45 = vld [vmem:[%s2468_s6 + $0x8] sm:$0xff] }
 0x442   : > { %938 = vmatpush.bf16.msra.mxu2 %v1700_v45 }
 0x446   : > { %v757_v41 = vpop.xlane.xlu1 %756 }
 0x447   : > { %vm758_vm5 = vcmp.eq.f32.partialorder %v755_v35, %v757_v41  ;;  %v763_v50 = vcvt.f32.s32 %v757_v41  ;;  %v1698_v41 = vld [vmem:[%s2467_s5 + $0x8] sm:$0xff] }
 0x448   : > { %v759_v44 = vsel %vm758_vm5, %v754_v43, inf  ;;  %908 = vmatpush.bf16.msra.mxu1 %v1698_v41  ;;  %v1697_v43 = vld [vmem:[%s2467_s5] sm:$0xff] }
 0x449   : > { %760 = vmin.xlane.f32.xlu0 %v759_v44  ;;  %v764_v59 = vshll.u32 %v763_v50, 16  ;;  %v882_v44 = vpack.c.bf16 %v2213_v13, %v2208_v12 }
 0x44c   : > { %909 = vmatpush.bf16.msra.mxu1 %v1697_v43 }
 0x44f   : > { %1586 = vmatmul.msk.bf16.vlgmr.msra.gmra.mxu1 %vm595_vm0, %v882_v44 }
 0x4b4   : > { %v746_v46 = vpop.xlane.xlu2 %745 }
 0x4b5   : > { %v747_v48 = vcvt.f32.s32 %v746_v46  ;;  %v1699_v46 = vld [vmem:[%s2468_s6] sm:$0xff] }
 0x4b6   : > { %939 = vmatpush.bf16.msra.mxu2 %v1699_v46 }
 0x4b7   : > { %v750_v49 = vadd.s32 %v749_v47, %v747_v48 }
 0x4b9   : > { %vm766_vm6 = vcmp.eq.s32.totalorder %v2231_v55, %v750_v49  ;;  %1595 = vmatmul.msk.bf16.vlgmr.msra.gmra.mxu2 %vm595_vm0, %v882_v44  ;;  %v1701_v44 = vld [vmem:[%s2469_s7] sm:$0xff] }
 0x4ba   : > { %v772_v53 = vsel %vm766_vm6, -inf, %v724_v18  ;;  %v768_v54 = vsel %vm766_vm6, %v2223_v42, 0.0 }
 0x4bb   : > { %v774_v56 = vsel %vm627_vm1, %v772_v53, -inf  ;;  %v770_v57 = vadd.f32 %v768_v54, %v720_v51 }
 0x4bc   : > { %775 = vmax.xlane.f32.xlu1 %v774_v56  ;;  %v761_v58 = vpop.xlane.xlu0 %760 }
 0x4bd   : > { %v762_v60 = vcvt.f32.s32 %v761_v58 }
 0x4bf   : > { %v765_v61 = vadd.s32 %v764_v59, %v762_v60 }
 0x4c1   : > { %vm767_vm7 = vcmp.eq.s32.totalorder %v2231_v55, %v765_v61  ;;  %v1708_v61 = vld [vmem:[%s2469_s7 + $0x38] sm:$0xff] }
 0x4c2   : > { %v773_v63 = vsel %vm767_vm7, -inf, %v725_v24  ;;  %v769_v0 = vsel %vm767_vm7, %v2227_v52, 0.0  ;;  %1053 = vmatpush.bf16.msra.mxu3 %v1708_v61 }
 0x4c3   : > { %v777_v1 = vsel %vm627_vm1, %v773_v63, -inf  ;;  %v771_v2 = vadd.f32 %v769_v0, %v721_v62  ;;  %v1818_v0 = vld [vmem:[%s2470_s8] ss:$0 sm:$0xff] }
 0x4c4   : > { %778 = vmax.xlane.f32.xlu2 %v777_v1 }
 0x4cc   : > { %v2299_v59 = vpop.f32.mrf.mxu1 }
 0x4cd   : > { %v1596_v60 = vmul.f32 -1.442695, %v2299_v59 }
 0x4cf   : > { %1827 = vpow2.f32 %v1596_v60 }
 0x4d4   : > { %v2311_v1 = vpop.f32.mrf.mxu1 }
 0x52f   : > { %v776_v3 = vpop.xlane.xlu1 %775 }
 0x530   : > { %vm780_vm8 = vcmp.ge.f32.partialorder %v772_v53, %v776_v3  ;;  %v1597_v3 = vmul.f32 -1.442695, %v2311_v1 }
 0x531   : > { %v782_v4 = vsel %vm780_vm8, %v2231_v55, 8 }
 0x532   : > { %v784_v5 = vsel %vm627_vm1, %v782_v4, 2147483647  ;;  %v1071_v4 = vmul.f32 %v1818_v0, %v2208_v12  ;;  %1829 = vpow2.f32 %v1597_v3  ;;  %v1705_v12 = vld [vmem:[%s2469_s7 + $0x20] sm:$0xff] }
 0x533   : > { %v786_v6 = vshra.s32 %v784_v5, 16  ;;  %v785_v15 = vand.u32 65535, %v784_v5 }
 0x535   : > { %v788_v7 = vcvt.s32.f32 %v786_v6  ;;  %v787_v17 = vcvt.s32.f32 %v785_v15 }
 0x537   : > { %789 = vmin.xlane.f32.xlu0 %v788_v7  ;;  %v779_v8 = vpop.xlane.xlu2 %778 }
 0x538   : > { %vm781_vm9 = vcmp.ge.f32.partialorder %v773_v63, %v779_v8  ;;  %v1706_v8 = vld [vmem:[%s2469_s7 + $0x28] sm:$0xff] }
 0x539   : > { %v783_v9 = vsel %vm781_vm9, %v2231_v55, 8 }
 0x53a   : > { %v799_v10 = vsel %vm627_vm1, %v783_v9, 2147483647  ;;  %v1073_v9 = vsel %vm595_vm0, %v1071_v4, 0.0 }
 0x53b   : > { %v801_v11 = vshra.s32 %v799_v10, 16  ;;  %v800_v19 = vand.u32 65535, %v799_v10 }
 0x53d   : > { %v803_v14 = vcvt.s32.f32 %v801_v11  ;;  %v802_v21 = vcvt.s32.f32 %v800_v19 }
 0x53f   : > { %804 = vmin.xlane.f32.xlu1 %v803_v14 }
 0x5aa   : > { %v790_v16 = vpop.xlane.xlu0 %789 }
 0x5ab   : > { %vm791_vm10 = vcmp.eq.f32.partialorder %v788_v7, %v790_v16  ;;  %v796_v23 = vcvt.f32.s32 %v790_v16 }
 0x5ac   : > { %v792_v18 = vsel %vm791_vm10, %v787_v17, inf }
 0x5ad   : > { %793 = vmin.xlane.f32.xlu2 %v792_v18  ;;  %v797_v25 = vshll.u32 %v796_v23, 16 }
 0x5b2   : > { %v805_v20 = vpop.xlane.xlu1 %804 }
 0x5b3   : > { %vm806_vm11 = vcmp.eq.f32.partialorder %v803_v14, %v805_v20  ;;  %v811_v28 = vcvt.f32.s32 %v805_v20  ;;  %v1072_v14 = vmul.f32 %v1818_v0, %v2213_v13 }
 0x5b4   : > { %v807_v22 = vsel %vm806_vm11, %v802_v21, inf  ;;  %v1704_v21 = vld [vmem:[%s2469_s7 + $0x18] sm:$0xff] }
 0x5b5   : > { %808 = vmin.xlane.f32.xlu0 %v807_v22  ;;  %v812_v34 = vshll.u32 %v811_v28, 16  ;;  %v1076_v22 = vsel %vm595_vm0, %v1072_v14, 0.0 }
 0x620   : > { %v794_v24 = vpop.xlane.xlu2 %793 }
 0x621   : > { %v795_v26 = vcvt.f32.s32 %v794_v24 }
 0x623   : > { %v798_v27 = vadd.s32 %v797_v25, %v795_v26 }
 0x625   : > { %vm814_vm12 = vcmp.eq.s32.totalorder %v2231_v55, %v798_v27  ;;  %v1703_v27 = vld [vmem:[%s2469_s7 + $0x10] sm:$0xff] }
 0x626   : > { %v820_v29 = vsel %vm814_vm12, -inf, %v772_v53  ;;  %v816_v30 = vsel %vm814_vm12, %v2223_v42, 0.0  ;;  %vm868_vm12 = vcmask 31744  }
 0x627   : > { %v822_v31 = vsel %vm627_vm1, %v820_v29, -inf  ;;  %v2272_v32 = vadd.f32 %v816_v30, %v770_v57 }
 0x628   : > { %823 = vmax.xlane.f32.xlu1 %v822_v31  ;;  %v809_v33 = vpop.xlane.xlu0 %808 }
 0x629   : > { %v810_v35 = vcvt.f32.s32 %v809_v33  ;;  %v941_v33 = vpop.f32.mrf.mxu2 }
 0x62b   : > { %v813_v36 = vadd.s32 %v812_v34, %v810_v35 }
 0x62d   : > { %vm815_vm13 = vcmp.eq.s32.totalorder %v2231_v55, %v813_v36  ;;  %v1702_v36 = vld [vmem:[%s2469_s7 + $0x8] sm:$0xff] }
 0x62e   : > { %v821_v37 = vsel %vm815_vm13, -inf, %v773_v63  ;;  %v817_v38 = vsel %vm815_vm13, %v2227_v52, 0.0  ;;  %v1707_v63 = vld [vmem:[%s2469_s7 + $0x30] sm:$0xff] }
 0x62f   : > { %v825_v39 = vsel %vm627_vm1, %v821_v37, -inf  ;;  %v2277_v40 = vadd.f32 %v817_v38, %v771_v2  ;;  %v1828_v2 = vpop.eup %1827  ;;  %1054 = vmatpush.bf16.msra.mxu3 %v1707_v63 }
 0x630   : > { %826 = vmax.xlane.f32.xlu2 %v825_v39  ;;  %v952_v5 = vadd.f32 1.0, %v1828_v2  ;;  %v1830_v15 = vpop.eup %1829 }
 0x631   : > { %v953_v17 = vadd.f32 1.0, %v1830_v15 }
 0x632   : > { %1831 = vrcp.f32 %v952_v5  ;;  %vm959_vm3 = vweird.f32 %v952_v5  ;;  %v965_v13 = vand.u32 2147483648, %v952_v5  ;;  %v963_v26 = vand.u32 2147483647, %v952_v5 }
 0x633   : > { %1055 = vmatpush.bf16.msra.mxu3 %v1706_v8  ;;  %1833 = vrcp.f32 %v953_v17  ;;  %vm974_vm7 = vweird.f32 %v953_v17  ;;  %v978_v39 = vand.u32 2147483647, %v953_v17 }
 0x634   : > { %v966_v31 = vor.u32 1.1754944e-38, %v965_v13  ;;  %vm964_vm6 = vcmp.eq.f32.partialorder %v963_v26, 8.507059e+37 }
 0x635   : > { %vm979_vm10 = vcmp.eq.f32.partialorder %v978_v39, 8.507059e+37 }
 0x637   : > { %1056 = vmatpush.bf16.msra.mxu3 %v1705_v12 }
 0x638   : > { %v1832_v16 = vpop.eup %1831 }
 0x639   : > { %v955_v20 = vmul.f32 %v1832_v16, %v952_v5  ;;  %vm960_vm4 = vweird.f32 %v1832_v16  ;;  %v1834_v30 = vpop.eup %1833 }
 0x63a   : > { %vm2336_vm5 = vmor %vm959_vm3, %vm960_vm4  ;;  %v970_v35 = vmul.f32 %v1834_v30, %v953_v17  ;;  %vm975_vm8 = vweird.f32 %v1834_v30 }
 0x63b   : > { %v956_v24 = vsub.f32 1.0, %v955_v20  ;;  %1057 = vmatpush.bf16.msra.mxu3 %v1704_v21  ;;  %vm976_vm9 = vmor %vm974_vm7, %vm975_vm8 }
 0x63c   : > { %v971_v38 = vsub.f32 1.0, %v970_v35 }
 0x63d   : > { %v957_v25 = vmul.f32 %v1832_v16, %v956_v24 }
 0x63e   : > { %v972_v43 = vmul.f32 %v1834_v30, %v971_v38 }
 0x63f   : > { %1058 = vmatpush.bf16.msra.mxu3 %v1703_v27 }
 0x643   : > { %1059 = vmatpush.bf16.msra.mxu3 %v1702_v36 }
 0x647   : > { %1060 = vmatpush.bf16.msra.mxu3 %v1701_v44 }
 0x69b   : > { %v824_v47 = vpop.xlane.xlu1 %823 }
 0x69c   : > { %vm828_vm14 = vcmp.ge.f32.partialorder %v820_v29, %v824_v47  ;;  %v958_v29 = vadd.f32 %v1832_v16, %v957_v25  ;;  %v973_v47 = vadd.f32 %v1834_v30, %v972_v43 }
 0x69d   : > { %v830_v48 = vsel %vm828_vm14, %v2231_v55, 8 }
 0x69e   : > { %v832_v49 = vsel %vm627_vm1, %v830_v48, 2147483647  ;;  %v962_v34 = vsel %vm2336_vm5, %v1832_v16, %v958_v29  ;;  %v977_v48 = vsel %vm976_vm9, %v1834_v30, %v973_v47 }
 0x69f   : > { %v834_v50 = vshra.s32 %v832_v49, 16  ;;  %v833_v62 = vand.u32 65535, %v832_v49  ;;  %v967_v41 = vsel %vm964_vm6, %v966_v31, %v962_v34 }
 0x6a0   : > { %v984_v46 = vmul.f32 %v967_v41, %v2299_v59 }
 0x6a1   : > { %v836_v51 = vcvt.s32.f32 %v834_v50  ;;  %v835_v7 = vcvt.s32.f32 %v833_v62  ;;  %v943_v50 = vpop.f32.mrf.mxu2 }
 0x6a3   : > { %837 = vmin.xlane.f32.xlu0 %v836_v51  ;;  %v827_v53 = vpop.xlane.xlu2 %826 }
 0x6a4   : > { %vm829_vm15 = vcmp.ge.f32.partialorder %v821_v37, %v827_v53  ;;  %v980_v37 = vand.u32 2147483648, %v953_v17  ;;  %v986_v53 = vmul.f32 %v984_v46, %v941_v33 }
 0x6a5   : > { %v831_v54 = vsel %vm829_vm15, %v2231_v55, 8 }
 0x6a6   : > { %v847_v56 = vsel %vm627_vm1, %v831_v54, 2147483647  ;;  %v981_v45 = vor.u32 1.1754944e-38, %v980_v37 }
 0x6a7   : > { %v849_v57 = vshra.s32 %v847_v56, 16  ;;  %v848_v11 = vand.u32 65535, %v847_v56 }
 0x6a8   : > { %v982_v49 = vsel %vm979_vm10, %v981_v45, %v977_v48 }
 0x6a9   : > { %v851_v58 = vcvt.s32.f32 %v849_v57  ;;  %v850_v19 = vcvt.s32.f32 %v848_v11 }
 0x6ab   : > { %852 = vmin.xlane.f32.xlu1 %v851_v58 }
 0x6b3   : > { %1074 = vadd.xlane.f32.xlu1 %v1073_v9 }
 0x716   : > { %v2315_v6 = vpop.xlane.xlu0 %837 }
 0x717   : > { %vm839_vm1 = vcmp.eq.f32.partialorder %v836_v51, %v2315_v6  ;;  %v985_v51 = vmul.f32 %v982_v49, %v2311_v1  ;;  %v844_v57 = vcvt.f32.s32 %v2315_v6 }
 0x718   : > { %v840_v10 = vsel %vm839_vm1, %v835_v7, inf }
 0x719   : > { %841 = vmin.xlane.f32.xlu2 %v840_v10  ;;  %v987_v54 = vmul.f32 %v985_v51, %v943_v50  ;;  %v845_v62 = vshll.u32 %v844_v57, 16 }
 0x71b   : > { %v988_v56 = vpack.c.bf16 %v987_v54, %v986_v53 }
 0x71d   : > { %1061 = vmatmul.bf16.vlgmr.msra.gmra.mxu3 %v988_v56 }
 0x71e   : > { %v2326_v18 = vpop.xlane.xlu1 %852 }
 0x71f   : > { %vm854_vm2 = vcmp.eq.f32.partialorder %v851_v58, %v2326_v18  ;;  %v859_v0 = vcvt.f32.s32 %v2326_v18 }
 0x720   : > { %v855_v23 = vsel %vm854_vm2, %v850_v19, inf }
 0x721   : > { %856 = vmin.xlane.f32.xlu0 %v855_v23  ;;  %1077 = vadd.xlane.f32.xlu2 %v1076_v22  ;;  %v860_v6 = vshll.u32 %v859_v0, 16 }
 0x726   : > { %v1075_v58 = vpop.xlane.xlu1 %1074 }
 0x727   : > { %v1630_v60 = vmul.f32 -1.442695, %v1075_v58 }
 0x729   : > { %1835 = vpow2.f32 %v1630_v60 }
 0x72f   : > { %v1836_v3 = vpop.eup %1835 }
 0x730   : > { %v1085_v10 = vadd.f32 1.0, %v1836_v3 }
 0x732   : > { %vm1092_vm14 = vweird.f32 %v1085_v10 }
 0x78c   : > { %v842_v61 = vpop.xlane.xlu2 %841 }
 0x78d   : > { %v843_v63 = vcvt.f32.s32 %v842_v61 }
 0x78f   : > { %v846_v59 = vadd.s32 %v845_v62, %v843_v63 }
 0x791   : > { %vm862_vm11 = vcmp.eq.s32.totalorder %v2231_v55, %v846_v59 }
 0x792   : > { %v864_v2 = vsel %vm862_vm11, %v2223_v42, 0.0 }
 0x793   : > { %v866_v1 = vadd.f32 %v864_v2, %v2272_v32 }
 0x794   : > { %v857_v4 = vpop.xlane.xlu0 %856  ;;  %v1078_v5 = vpop.xlane.xlu2 %1077 }
 0x795   : > { %v858_v7 = vcvt.f32.s32 %v857_v4  ;;  %873 = vrot.lane.b32.xlu0 %v866_v1, %s1995_s3  ;;  %v1631_v8 = vmul.f32 -1.442695, %v1078_v5  ;;  %869 = vst.msk [vmem:[#allocation3] sm:$0xff] %vm868_vm12, %v866_v1 }
 0x797   : > { %v861_v9 = vadd.s32 %v860_v6, %v858_v7  ;;  %1837 = vpow2.f32 %v1631_v8 }
 0x798   : > { %1839 = vrcp.f32 %v1085_v10 }
 0x799   : > { %vm863_vm13 = vcmp.eq.s32.totalorder %v2231_v55, %v861_v9  ;;  %v1098_v55 = vand.u32 2147483648, %v1085_v10 }
 0x79a   : > { %v865_v42 = vsel %vm863_vm13, %v2227_v52, 0.0  ;;  %v1096_v52 = vand.u32 2147483647, %v1085_v10 }
 0x79b   : > { %v867_v11 = vadd.f32 %v865_v42, %v2277_v40  ;;  %v1099_v40 = vor.u32 1.1754944e-38, %v1098_v55 }
 0x79c   : > { %vm1097_vm2 = vcmp.eq.f32.partialorder %v1096_v52, 8.507059e+37 }
 0x79d   : > { %v1838_v32 = vpop.eup %1837  ;;  %875 = vrot.lane.b32.xlu1 %v867_v11, %s1995_s3  ;;  %870 = vst.msk [vmem:[#allocation3 + $0x8] sm:$0xff] %vm868_vm12, %v867_v11 }
 0x79e   : > { %v1086_v12 = vadd.f32 1.0, %v1838_v32  ;;  %v1840_v14 = vpop.eup %1839 }
 0x79f   : > { %v1088_v15 = vmul.f32 %v1840_v14, %v1085_v10  ;;  %vm1093_vm15 = vweird.f32 %v1840_v14 }
 0x7a0   : > { %1841 = vrcp.f32 %v1086_v12  ;;  %vm1094_vm1 = vmor %vm1092_vm14, %vm1093_vm15  ;;  %vm1107_vm3 = vweird.f32 %v1086_v12  ;;  %v1113_v13 = vand.u32 2147483648, %v1086_v12  ;;  %v1111_v26 = vand.u32 2147483647, %v1086_v12  ;;  %v1062_v27 = vpop.f32.mrf.mxu3 }
 0x7a1   : > { %v1089_v16 = vsub.f32 1.0, %v1088_v15 }
 0x7a2   : > { %v1114_v29 = vor.u32 1.1754944e-38, %v1113_v13  ;;  %vm1112_vm6 = vcmp.eq.f32.partialorder %v1111_v26, 8.507059e+37 }
 0x7a3   : > { %v1090_v18 = vmul.f32 %v1840_v14, %v1089_v16 }
 0x7a5   : > { %v1091_v20 = vadd.f32 %v1840_v14, %v1090_v18 }
 0x7a6   : > { %v1842_v17 = vpop.eup %1841 }
 0x7a7   : > { %v1103_v19 = vmul.f32 %v1842_v17, %v1086_v12  ;;  %v1095_v22 = vsel %vm1094_vm1, %v1840_v14, %v1091_v20  ;;  %vm1108_vm4 = vweird.f32 %v1842_v17 }
 0x7a8   : > { %v1100_v24 = vsel %vm1097_vm2, %v1099_v40, %v1095_v22  ;;  %vm1109_vm5 = vmor %vm1107_vm3, %vm1108_vm4  ;;  %v1064_v33 = vpop.f32.mrf.mxu3 }
 0x7a9   : > { %v1104_v21 = vsub.f32 1.0, %v1103_v19  ;;  %v1117_v28 = vmul.f32 %v1100_v24, %v1062_v27 }
 0x7ab   : > { %v1105_v23 = vmul.f32 %v1842_v17, %v1104_v21  ;;  %1119 = vst.msk [vmem:[#allocation2] sm:$0xff] %vm595_vm0, %v1117_v28 }
 0x7ad   : > { %v1106_v25 = vadd.f32 %v1842_v17, %v1105_v23 }
 0x7af   : > { %v1110_v30 = vsel %vm1109_vm5, %v1842_v17, %v1106_v25 }
 0x7b0   : > { %v1115_v31 = vsel %vm1112_vm6, %v1114_v29, %v1110_v30 }
 0x7b1   : > { %v1118_v34 = vmul.f32 %v1115_v31, %v1064_v33 }
 0x7b3   : > { %1120 = vst.msk [vmem:[#allocation2 + $0x8] sm:$0xff] %vm595_vm0, %v1118_v34 }
 0x807   : > { %v874_v35 = vpop.permute.xlu0 %873 }
 0x808   : > { %880 = vst.msk [vmem:[#allocation3 + $0x10] sm:$0xff] %vm868_vm12, %v874_v35 }
 0x80f   : > { %v876_v36 = vpop.permute.xlu1 %875 }
 0x810   : > { %881 = vst.msk [vmem:[#allocation3 + $0x18] sm:$0xff] %vm868_vm12, %v876_v36 }
 0x811 PF: > { %v1710_v37 = vld [vmem:[%s507_s21 + $0x8] sm:$0xff]  ;;  %vm1200_vm7 = vcmask 1043456   ;;  %v1709_v38 = vld [vmem:[%s507_s21] sm:$0xff]  ;;  %vm1193_vm0 = vcmask 31744   ;;  %s1189_s27 = scalar_lea.vmem [#allocation3], %s2174_s11  ;;  %vm1140_vm8 = vcmask 261120  }
 0x812   : > { %v1121_v39 = vld [vmem:[%s2181_s12] sm:$0xff]  ;;  %v1712_v41 = vld [vmem:[%s514_s19 + $0x8] sm:$0xff]  ;;  %1150 = vmatpush.bf16.msra.mxu0 %v1710_v37  ;;  %v1719_v50 = vld [vmem:[%s2186_s24 + $0x30] sm:$0xff]  ;;  %p1688_p6 = scmp.ne.s32.totalorder %s1977_s22, 1 }
 0x813   : > { %v1122_v43 = vld [vmem:[%s2181_s12 + $0x8] sm:$0xff]  ;;  %v1192_v44 = vld [vmem:[%s2471_s9] sm:$0xf]  ;;  %1180 = vmatpush.bf16.msra.mxu1 %v1712_v41  ;;  %v1720_v49 = vld [vmem:[%s2186_s24 + $0x38] sm:$0xff] }
 0x814   : > { %v1711_v46 = vld [vmem:[%s514_s19] sm:$0xff]  ;;  %1651 = vmatpush.msk.msra.mxu2 %vm1200_vm7, %v1192_v44  ;;  %v1123_v47 = vpack.c.bf16 %v1122_v43, %v1121_v39  ;;  %1338 = vmatpush.bf16.msra.mxu3 %v1720_v49  ;;  %v1718_v51 = vld [vmem:[%s2186_s24 + $0x28] sm:$0xff]  ;;  %v1716_v54 = vld [vmem:[%s2186_s24 + $0x18] sm:$0xff] }
 0x815   : > { %v1717_v53 = vld [vmem:[%s2186_s24 + $0x20] sm:$0xff]  ;;  %v1715_v57 = vld [vmem:[%s2186_s24 + $0x10] sm:$0xff]  ;;  %v1714_v60 = vld [vmem:[%s2186_s24 + $0x8] sm:$0xff] }
 0x816   : > { %1151 = vmatpush.bf16.msra.mxu0 %v1709_v38  ;;  %v1713_v62 = vld [vmem:[%s2186_s24] sm:$0xff]  ;;  %v1273_v33 = vld [vmem:[#allocation2 + $0x8] sm:$0xff] }
 0x817   : > { %v1190_v45 = vld [vmem:[%s1189_s27] sm:$0xff]  ;;  %1181 = vmatpush.bf16.msra.mxu1 %v1711_v46  ;;  %v1191_v48 = vld [vmem:[%s1189_s27 + $0x8] sm:$0xff] }
 0x818   : > { %1652 = vmatmul.msk.f32.vlgmr.msra.gmra.mxu2 %vm1193_vm0, %v1190_v45  ;;  %1339 = vmatpush.bf16.msra.mxu3 %v1719_v50  ;;  %v1272_v29 = vld [vmem:[#allocation2] sm:$0xff] }
 0x819   : > { %1640 = vmatmul.msk.bf16.vlgmr.msra.gmra.mxu0 %vm1140_vm8, %v1123_v47 }
 0x81a   : > { %1649 = vmatmul.msk.bf16.vlgmr.msra.gmra.mxu1 %vm1140_vm8, %v1123_v47 }
 0x81c   : > { %1340 = vmatpush.bf16.msra.mxu3 %v1718_v51 }
 0x820   : > { %1653 = vmatmul.msk.f32.gmra.mxu2 %vm1193_vm0, %v1191_v48  ;;  %1341 = vmatpush.bf16.msra.mxu3 %v1717_v53 }
 0x824   : > { %1342 = vmatpush.bf16.msra.mxu3 %v1716_v54 }
 0x828   : > { %1343 = vmatpush.bf16.msra.mxu3 %v1715_v57 }
 0x82c   : > { %1344 = vmatpush.bf16.msra.mxu3 %v1714_v60 }
 0x830   : > { %1345 = vmatpush.bf16.msra.mxu3 %v1713_v62 }
 0x896   : > { %v1153_v56 = vpop.f32.mrf.mxu0 }
 0x897   : > { %v1654_v58 = vmul.f32 -1.442695, %v1153_v56  ;;  %v1183_v12 = vpop.f32.mrf.mxu1 }
 0x899   : > { %1843 = vpow2.f32 %v1654_v58 }
 0x89b   : > { %v1221_v14 = vpop.f32.mrf.mxu2 }
 0x89e   : > { %v1155_v61 = vpop.f32.mrf.mxu0 }
 0x89f   : > { %v1844_v63 = vpop.eup %1843  ;;  %v1655_v59 = vmul.f32 -1.442695, %v1155_v61  ;;  %v1185_v24 = vpop.f32.mrf.mxu1 }
 0x8a0   : > { %v1233_v0 = vadd.f32 1.0, %v1844_v63 }
 0x8a1   : > { %1845 = vpow2.f32 %v1655_v59 }
 0x8a2   : > { %1847 = vrcp.f32 %v1233_v0  ;;  %v1246_v7 = vand.u32 2147483648, %v1233_v0  ;;  %vm1240_vm10 = vweird.f32 %v1233_v0  ;;  %v1244_v9 = vand.u32 2147483647, %v1233_v0 }
 0x8a3   : > { %v1224_v13 = vpop.f32.mrf.mxu2 }
 0x8a4   : > { %v1247_v32 = vor.u32 1.1754944e-38, %v1246_v7  ;;  %vm1245_vm12 = vcmp.eq.f32.partialorder %v1244_v9, 8.507059e+37 }
 0x8a7   : > { %v1846_v2 = vpop.eup %1845 }
 0x8a8   : > { %v1848_v1 = vpop.eup %1847  ;;  %v1234_v3 = vadd.f32 1.0, %v1846_v2 }
 0x8a9   : > { %v1236_v4 = vmul.f32 %v1848_v1, %v1233_v0  ;;  %vm1241_vm9 = vweird.f32 %v1848_v1 }
 0x8aa   : > { %1849 = vrcp.f32 %v1234_v3  ;;  %vm1242_vm11 = vmor %vm1240_vm10, %vm1241_vm9  ;;  %v1261_v17 = vand.u32 2147483648, %v1234_v3  ;;  %v1259_v19 = vand.u32 2147483647, %v1234_v3  ;;  %vm1255_vm14 = vweird.f32 %v1234_v3 }
 0x8ab   : > { %v1237_v5 = vsub.f32 1.0, %v1236_v4 }
 0x8ac   : > { %v1262_v52 = vor.u32 1.1754944e-38, %v1261_v17  ;;  %vm1260_vm1 = vcmp.eq.f32.partialorder %v1259_v19, 8.507059e+37 }
 0x8ad   : > { %v1238_v6 = vmul.f32 %v1848_v1, %v1237_v5 }
 0x8af   : > { %v1239_v8 = vadd.f32 %v1848_v1, %v1238_v6 }
 0x8b0   : > { %v1850_v10 = vpop.eup %1849 }
 0x8b1   : > { %v1243_v42 = vsel %vm1242_vm11, %v1848_v1, %v1239_v8  ;;  %v1251_v11 = vmul.f32 %v1850_v10, %v1234_v3  ;;  %vm1256_vm13 = vweird.f32 %v1850_v10 }
 0x8b2   : > { %v1248_v16 = vsel %vm1245_vm12, %v1247_v32, %v1243_v42  ;;  %vm1257_vm15 = vmor %vm1255_vm14, %vm1256_vm13 }
 0x8b3   : > { %v1252_v15 = vsub.f32 1.0, %v1251_v11  ;;  %v1265_v55 = vmul.f32 %v1248_v16, %v1153_v56 }
 0x8b5   : > { %v1253_v18 = vmul.f32 %v1850_v10, %v1252_v15  ;;  %v1267_v23 = vmul.f32 %v1265_v55, %v1183_v12 }
 0x8b7   : > { %v1254_v20 = vadd.f32 %v1850_v10, %v1253_v18  ;;  %v1269_v26 = vmul.f32 %v1267_v23, %v1221_v14 }
 0x8b9   : > { %v1258_v21 = vsel %vm1257_vm15, %v1850_v10, %v1254_v20 }
 0x8ba   : > { %v1263_v40 = vsel %vm1260_vm1, %v1262_v52, %v1258_v21 }
 0x8bb   : > { %v1266_v22 = vmul.f32 %v1263_v40, %v1155_v61 }
 0x8bd   : > { %v1268_v25 = vmul.f32 %v1266_v22, %v1185_v24 }
 0x8bf   : > { %v1270_v27 = vmul.f32 %v1268_v25, %v1224_v13 }
 0x8c1   : > { %v1271_v28 = vpack.c.bf16 %v1270_v27, %v1269_v26 }
 0x8c3   : > { %1346 = vmatmul.bf16.vlgmr.msra.gmra.mxu3 %v1271_v28 }
 0x946   : > { %v1347_v30 = vpop.f32.mrf.mxu3 }
 0x947   : > { %v1352_v31 = vadd.f32 %v1347_v30, %v1272_v29 }
 0x949   : > { %1354 = vst.msk [vmem:[#allocation2] sm:$0xff] %vm1140_vm8, %v1352_v31 }
 0x94d   : > { %1359 = sbr.rel (%p1688_p6) target bundleno = 2394 (0x95a), region = 150 }
 0x94e   : > { %v1349_v34 = vpop.f32.mrf.mxu3 }
 0x94f   : > { %v1353_v35 = vadd.f32 %v1349_v34, %v1273_v33 }
 0x951   : > { %1355 = vst.msk [vmem:[#allocation2 + $0x8] sm:$0xff] %vm1140_vm8, %v1353_v35 }
 0x952   : > { %v1360_v36 = vld [vmem:[#allocation2] sm:$0xff] }
 0x953   : > { %1362 = vst.msk [vmem:[%s2190_s18] sm:$0xff] %vm1140_vm8, %v1360_v36 }
 0x958   : > { %v1361_v37 = vld [vmem:[#allocation2 + $0x8] sm:$0xff] }
 0x959   : > { %1363 = vst.msk [vmem:[%s2190_s18 + $0x8] sm:$0xff] %vm1140_vm8, %v1361_v37 }
 0x95a PF: > { %s1721_s19 = sshll.u32 %s1981_s23, 4  ;;  %s2507_s16 = sld [smem:[#allocation25_spill]] }
 0x95b   : > { %s1382_s22 = sshll.u32 %s2190_s18, 4  ;;  %s1365_s17 = scalar_lea.sflag [#allocation7], %s2167_s29  ;;  %s1383_s22 = int_to_ptr.vmem [resolvable:$true] %s1382_s22 }
 0x960   : > { %s1381_s11 = scalar_lea.hbm %s2507_s16, %s1721_s19  ;;  %s1871_s23 = scalar_lea.hbm %s2507_s16, 32 }
 0x961   : > { %s1384_s12 = sshll.u32 %s1381_s11, 4  ;;  %s1385_s12 = int_to_ptr.hbm [resolvable:$true] %s1384_s12 }
 0x962   : > { %s1865_s20 = sshra.s32 %s1385_s12, 4  ;;  %s1866_s20 = int_to_ptr.hbm [resolvable:$true] %s1865_s20 }
 0x963   : > { %s1867_s14 = scalar_lea.hbm %s1866_s20, 16  ;;  %p1872_p11 = scmp.lt.s32.totalorder %s1866_s20, %s2507_s16 }
 0x964   : > { %p1868_p7 = scmp.ne.s32.totalorder %s1866_s20, %s1867_s14  ;;  %p1873_p13 = scmp.lt.s32.totalorder %s1871_s23, %s1867_s14 }
 0x966   : > { %p1869_p8 = pnand %p1868_p7, %p2137_p10  ;;  %p1874_p0 = por %p1873_p13, %p1872_p11 }
 0x968   : > { %p1870_p9 = pneg %p1869_p8 }
 0x96a   : > { %p1875_p1 = pnand %p1874_p0, %p1870_p9 }
 0x96c   : > { %1878 = shalt.err (!%p1875_p1)
}
 0x96d   : > { %s1996_s18 = smov 128   ;;  %s1997_s30 = smov 8  }
 0x96e   : > { %1723 = dma.vmem_to_hbm [thread:$0]  (%p2137_p10), %s1383_s22, 256, %s1385_s12, %s1365_s17, %s1996_s18, %s1996_s18, %s1997_s30  }
 0x96f   : > { %s2508_s21 = sld [smem:[#allocation26_spill]]  ;;  %s1399_s15 = sshll.u32 %s2192_s13, 4  ;;  %s1400_s15 = int_to_ptr.vmem [resolvable:$true] %s1399_s15 }
 0x970   : > { %s1370_s20 = scalar_lea.sflag [#allocation9], %s2167_s29 }
 0x975   : > { %s2509_s11 = smov %s2508_s21  ;;  %s1398_s24 = scalar_lea.hbm %s2508_s21, %s1721_s19 }
 0x976   : > { %s1401_s25 = sshll.u32 %s1398_s24, 4  ;;  %s1899_s22 = scalar_lea.hbm %s2509_s11, 32  ;;  %s1402_s25 = int_to_ptr.hbm [resolvable:$true] %s1401_s25 }
 0x977   : > { %s1893_s14 = sshra.s32 %s1402_s25, 4  ;;  %s1894_s14 = int_to_ptr.hbm [resolvable:$true] %s1893_s14 }
 0x978   : > { %s1895_s23 = scalar_lea.hbm %s1894_s14, 16  ;;  %p1900_p5 = scmp.lt.s32.totalorder %s1894_s14, %s2509_s11 }
 0x979   : > { %p1896_p2 = scmp.ne.s32.totalorder %s1894_s14, %s1895_s23  ;;  %p1901_p6 = scmp.lt.s32.totalorder %s1899_s22, %s1895_s23 }
 0x97b   : > { %p1897_p3 = pnand %p1896_p2, %p2137_p10  ;;  %p1902_p7 = por %p1901_p6, %p1900_p5 }
 0x97d   : > { %p1898_p4 = pneg %p1897_p3 }
 0x97f   : > { %p1903_p8 = pnand %p1902_p7, %p1898_p4 }
 0x981   : > { %1906 = shalt.err (!%p1903_p8)
}
 0x982   : > { %1724 = dma.vmem_to_hbm [thread:$0]  (%p2137_p10), %s1400_s15, 256, %s1402_s25, %s1370_s20, %s1996_s18, %s1996_s18, %s1997_s30  }
 0x983 PF: > { %s2510_s13 = sld [smem:[#allocation12_spill]]  ;;  %p1734_p9 = scmp.ge.s32.totalorder %s1993_s26, 2 }
 0x985   : > { %p1728_p11 = pnand %p1734_p9, %p2144_p12 }
 0x987   : > { %p1729_p13 = pneg %p1728_p11 }
 0x989   : > { %s1416_s19 = sand.u32 1, %s2510_s13  }
 0x98a   : > { %s1417_s28 = scalar_lea.sflag [#allocation7], %s1416_s19 }
 0x98b   : > { %1948 = dma.done.wait (%p1729_p13), %s1417_s28, 256  }
 0x98c   : > { %1950 = vsyncadd (%p1729_p13), %s1417_s28, 4294967040  ;;  %s1427_s27 = scalar_lea.sflag [#allocation9], %s1416_s19 }
 0x98d   : > { %1952 = dma.done.wait (%p1729_p13), %s1427_s27, 256  }
 0x98e   : > { %1954 = vsyncadd (%p1729_p13), %s1427_s27, 4294967040  ;;  %s28_s26 = sadd.s32 1, %s1993_s26   ;;  %s2512_s17 = sld [smem:[#allocation13_spill]] }
 0x98f   : > { %p25_p0 = scmp.ge.s32.totalorder %s28_s26, 6   ;;  %s2513_s18 = sld [smem:[#allocation14_spill]] }
 0x990   : > { %s2514_s19 = sld [smem:[#allocation21_spill]] }
 0x991   : > { %s2515_s20 = sld [smem:[#allocation15_spill]] }
 0x992   : > { %s2516_s21 = sld [smem:[#allocation20_spill]]  ;;  %27 = sbr.rel (!%p25_p0) target bundleno = 13 (0xd), region = 223 }
 0x993   : > { %s2517_s22 = sld [smem:[#allocation16_spill]] }
 0x994   : > { %s2518_s23 = sld [smem:[#allocation17_spill]] }
 0x995   : > { %s2519_s24 = sld [smem:[#allocation18_spill]] }
 0x996   : > { %s2520_s25 = sld [smem:[#allocation19_spill]] }
 0x997   :  { %1433 = vsyncpa [#allocation7], 1 }
 0x998   :  { %1435 = vsyncpa [#allocation7 + $0x1], 1 }
 0x999   :  { %1436 = vsyncpa [#allocation9], 1 }
 0x99a   :  { %1438 = vsyncpa [#allocation9 + $0x1], 1 }

</bundles_post_ra>
